<compile_context>
chip_gen: v6e
topology: v6e:2x2x1
jax: 0.10.0
libtpu: 0.0.40
codegen_flags: <defaults>
</compile_context>

<pallas_src>
import functools

import jax
import jax.numpy as jnp
from jax.experimental import pallas as pl
from jax.experimental.pallas import tpu as pltpu


def _wind_attn_kernel(x_ref, wqkv_ref, bqkv_ref, wproj_ref, bproj_ref,
                      *rest, heads, scale, bt, n):
    if len(rest) == 2:
        mask_ref, o_ref = rest
    else:
        mask_ref = None
        (o_ref,) = rest

    x = x_ref[...].astype(jnp.float32)                      # (Bt*N, C)
    rows, C = x.shape
    d = C // heads

    # Fused QKV projection for all Bt windows at once: (Bt*N, C) @ (C, 3C).
    qkv = jnp.dot(x, wqkv_ref[...], preferred_element_type=jnp.float32)
    qkv = qkv + bqkv_ref[...]                               # (Bt*N, 3C)

    qkv3 = qkv.reshape(bt, n, 3 * C)                        # split window axis (leading dims)
    q3 = qkv3[:, :, 0 * C:1 * C] * scale                    # (Bt, N, C)
    k3 = qkv3[:, :, 1 * C:2 * C]
    v3 = qkv3[:, :, 2 * C:3 * C]

    # Resident (nW, N, N) mask, tiled once to the Bt windows of this step.
    if mask_ref is not None:
        m = mask_ref[...].astype(jnp.float32)               # (nW, N, N)
        mask_b = jnp.tile(m, (bt // m.shape[0], 1, 1))      # (Bt, N, N)
    else:
        mask_b = None

    wproj = wproj_ref[...]                                  # (C, C), loaded once

    out = jnp.zeros((rows, C), dtype=jnp.float32)
    for h in range(heads):                                  # heads is small & static
        qh = q3[:, :, h * d:(h + 1) * d]                    # (Bt, N, d)
        kh = k3[:, :, h * d:(h + 1) * d]
        vh = v3[:, :, h * d:(h + 1) * d]

        # Batched scores over the Bt windows, no explicit transpose.
        s = jnp.einsum("bnd,bmd->bnm", qh, kh,
                       preferred_element_type=jnp.float32)  # (Bt, N, N)
        if mask_b is not None:
            s = s + mask_b
        s = s - jnp.max(s, axis=-1, keepdims=True)
        p = jnp.exp(s)
        p = p * pl.reciprocal(jnp.sum(p, axis=-1, keepdims=True), approx=True)

        oh = jnp.einsum("bnm,bmd->bnd", p, vh,
                        preferred_element_type=jnp.float32)  # (Bt, N, d)

        # Accumulate the output projection per head (cheap sublane slice of
        # Wproj) instead of concatenating head outputs along the lane axis.
        out = out + jnp.dot(oh.reshape(rows, d),
                            wproj[h * d:(h + 1) * d, :],
                            preferred_element_type=jnp.float32)

    out = out + bproj_ref[...]
    o_ref[...] = out.astype(o_ref.dtype)


def _choose_bt(B_, N, nW, max_rows):
    """Largest windows-per-step Bt that divides B_, keeps the mask tiling exact
    (Bt % nW == 0), satisfies the (8,128) block-shape rule and keeps the
    per-step slab <= max_rows rows (VMEM headroom on v7x's 64 MiB)."""
    cands = []
    for bt in range(1, B_ + 1):
        if B_ % bt:
            continue
        if nW is not None and bt % nW:
            continue
        if (bt * N) % 8 and bt != B_:
            continue
        cands.append(bt)
    if not cands:
        return B_
    good = [bt for bt in cands if bt * N <= max_rows]
    return max(good) if good else min(cands)


def wind_attention_4d(x, wqkv, bqkv, wproj, bproj, heads, mask=None,
                      max_rows_per_step=2048):
    """Pallas implementation of WindAttention4D.forward.

    x:     (B_, N, C) float32
    wqkv:  (C, 3C), bqkv: (3C,)
    wproj: (C, C),  bproj: (C,)
    mask:  optional (nW, N, N) additive mask, added before softmax.
    """
    B_, N, C = x.shape
    scale = float((C // heads) ** (-0.5))

    nW = None
    if mask is not None:
        nW = mask.shape[0]
        assert B_ % nW == 0, "B_ must be a multiple of the number of masks"

    bt = _choose_bt(B_, N, nW, max_rows_per_step)
    grid = (B_ // bt,)

    x2d = x.reshape(B_ * N, C)
    bqkv2 = bqkv.reshape(1, -1)
    bproj2 = bproj.reshape(1, -1)

    inputs = [x2d, wqkv, bqkv2, wproj, bproj2]
    in_specs = [
        pl.BlockSpec((bt * N, C), lambda i: (i, 0)),
        # Weights / biases: constant index maps -> DMA'd once, resident in VMEM.
        pl.BlockSpec((C, 3 * C), lambda i: (0, 0)),
        pl.BlockSpec((1, 3 * C), lambda i: (0, 0)),
        pl.BlockSpec((C, C), lambda i: (0, 0)),
        pl.BlockSpec((1, C), lambda i: (0, 0)),
    ]
    if mask is not None:
        inputs.append(mask)
        # Whole mask resident (constant index map); tiled to Bt windows in-kernel.
        in_specs.append(pl.BlockSpec((nW, N, N), lambda i: (0, 0, 0)))

    kernel = functools.partial(_wind_attn_kernel, heads=heads, scale=scale,
                               bt=bt, n=N)

    out2d = pl.pallas_call(
        kernel,
        out_shape=jax.ShapeDtypeStruct((B_ * N, C), x.dtype),
        grid_spec=pltpu.PrefetchScalarGridSpec(
            num_scalar_prefetch=0,
            grid=grid,
            in_specs=in_specs,
            out_specs=pl.BlockSpec((bt * N, C), lambda i: (i, 0)),
        ),
        compiler_params=pltpu.CompilerParams(
            dimension_semantics=("parallel",),      # window groups are independent
            vmem_limit_bytes=32 * 1024 * 1024,
        ),
    )(*inputs)
    return out2d.reshape(B_, N, C)


def wind_attention_4d_ref(x, wqkv, bqkv, wproj, bproj, heads, mask=None):
    """Pure-JAX reference mirroring the PyTorch forward."""
    B_, N, C = x.shape
    d = C // heads
    scale = (C // heads) ** (-0.5)
    qkv = x @ wqkv + bqkv                                   # (B_, N, 3C)
    qkv = qkv.reshape(B_, N, 3, heads, d).transpose(2, 0, 3, 1, 4)
    q, k, v = qkv[0], qkv[1], qkv[2]                        # (B_, H, N, d)
    q = q * scale
    attn = jnp.einsum("bhnd,bhmd->bhnm", q, k)              # (B_, H, N, N)
    if mask is not None:
        nW = mask.shape[0]
        attn = attn.reshape(B_ // nW, nW, heads, N, N) + mask[None, :, None]
        attn = attn.reshape(B_, heads, N, N)
    attn = jax.nn.softmax(attn, axis=-1)
    out = jnp.einsum("bhnm,bhmd->bhnd", attn, v)            # (B_, H, N, d)
    out = out.transpose(0, 2, 1, 3).reshape(B_, N, C)
    return out @ wproj + bproj


if __name__ == "__main__":
    # Small shapes consistent with the module: dim=32, heads=4,
    # N = tokens per window, B_ = num_windows * batch.
    B_, N, C, H = 8, 16, 32, 4
    nW = 2  # number of distinct window masks (B_ % nW == 0)

    key = jax.random.PRNGKey(0)
    kx, kw1, kb1, kw2, kb2, km = jax.random.split(key, 6)

    x = jax.random.normal(kx, (B_, N, C), dtype=jnp.float32)
    wqkv = jax.random.normal(kw1, (C, 3 * C), dtype=jnp.float32) * 0.05
    bqkv = jax.random.normal(kb1, (3 * C,), dtype=jnp.float32) * 0.05
    wproj = jax.random.normal(kw2, (C, C), dtype=jnp.float32) * 0.05
    bproj = jax.random.normal(kb2, (C,), dtype=jnp.float32) * 0.05
    mask = jnp.where(jax.random.uniform(km, (nW, N, N)) > 0.5, 0.0, -100.0)

    tol = dict(atol=5e-3, rtol=5e-3)   # approx reciprocal in the softmax denom

    # mask=None path (single grid step, all windows batched)
    out = jax.block_until_ready(
        wind_attention_4d(x, wqkv, bqkv, wproj, bproj, H, mask=None))
    ref = wind_attention_4d_ref(x, wqkv, bqkv, wproj, bproj, H, mask=None)
    assert jnp.allclose(out, ref, **tol), "mismatch (no mask)"

    # mask path (single grid step)
    out_m = jax.block_until_ready(
        wind_attention_4d(x, wqkv, bqkv, wproj, bproj, H, mask=mask))
    ref_m = wind_attention_4d_ref(x, wqkv, bqkv, wproj, bproj, H, mask=mask)
    assert jnp.allclose(out_m, ref_m, **tol), "mismatch (mask)"

    # mask path with a forced multi-step grid (Bt=4 -> 2 grid steps),
    # exercising the resident-mask tiling across steps.
    out_s = jax.block_until_ready(
        wind_attention_4d(x, wqkv, bqkv, wproj, bproj, H, mask=mask,
                          max_rows_per_step=64))
    assert jnp.allclose(out_s, ref_m, **tol), "mismatch (mask, multi-step grid)"

    # TODO(synk): attn_drop / proj_drop are identity for the default p=0.0; no RNG dropout emitted.
    print("KERNEL_OK")
</pallas_src>

<mosaic_0001>
module attributes {stable_mosaic.version = 11 : i64} {
  func.func @_wind_attn_kernel(%arg0: i32, %arg1: memref<128x32xf32, #tpu.memory_space<vmem>>, %arg2: memref<32x96xf32, #tpu.memory_space<vmem>>, %arg3: memref<1x96xf32, #tpu.memory_space<vmem>>, %arg4: memref<32x32xf32, #tpu.memory_space<vmem>>, %arg5: memref<1x32xf32, #tpu.memory_space<vmem>>, %arg6: memref<128x32xf32, #tpu.memory_space<vmem>>) attributes {dimension_semantics = [#tpu.dimension_semantics<parallel>], iteration_bounds = array<i64: 1>, scalar_prefetch = 0 : i64, scratch_operands = 0 : i64, tpu.core_type = #tpu.core_type<tc>, window_params = [{transform_indices = @transform_0, window_bounds = array<i64: 128, 32>}, {pipeline_mode = #tpu.pipeline_mode<synchronous>, transform_indices = @transform_1, window_bounds = array<i64: 32, 96>}, {pipeline_mode = #tpu.pipeline_mode<synchronous>, transform_indices = @transform_2, window_bounds = array<i64: 1, 96>}, {pipeline_mode = #tpu.pipeline_mode<synchronous>, transform_indices = @transform_3, window_bounds = array<i64: 32, 32>}, {pipeline_mode = #tpu.pipeline_mode<synchronous>, transform_indices = @transform_4, window_bounds = array<i64: 1, 32>}, {transform_indices = @transform_5, window_bounds = array<i64: 128, 32>}]} {
    %c0 = arith.constant 0 : index
    %c0_0 = arith.constant 0 : index
    %0 = vector.load %arg1[%c0, %c0_0] : memref<128x32xf32, #tpu.memory_space<vmem>>, vector<128x32xf32>
    %c0_1 = arith.constant 0 : index
    %c0_2 = arith.constant 0 : index
    %1 = vector.load %arg2[%c0_1, %c0_2] : memref<32x96xf32, #tpu.memory_space<vmem>>, vector<32x96xf32>
    %cst = arith.constant dense<0.000000e+00> : vector<128x96xf32>
    %2 = tpu.matmul %0, %1, %cst {dimension_numbers = #tpu.dot_dimension_numbers<[1], [0], [0], [1], [0, 0, 1, 1], [], []>} : vector<128x32xf32>, vector<32x96xf32>, vector<128x96xf32> -> vector<128x96xf32>
    %c0_3 = arith.constant 0 : index
    %c0_4 = arith.constant 0 : index
    %3 = vector.load %arg3[%c0_3, %c0_4] : memref<1x96xf32, #tpu.memory_space<vmem>>, vector<1x96xf32>
    %4 = vector.broadcast %3 : vector<1x96xf32> to vector<128x96xf32>
    %5 = arith.addf %2, %4 : vector<128x96xf32>
    %6 = vector.shape_cast %5 : vector<128x96xf32> to vector<8x16x96xf32>
    %7 = vector.extract_strided_slice %6 {offsets = [0, 0, 0], sizes = [8, 16, 32], strides = [1, 1, 1]} : vector<8x16x96xf32> to vector<8x16x32xf32>
    %cst_5 = arith.constant 0.353553385 : f32
    %8 = vector.broadcast %cst_5 : f32 to vector<8x16x32xf32>
    %9 = arith.mulf %7, %8 : vector<8x16x32xf32>
    %10 = vector.extract_strided_slice %6 {offsets = [0, 0, 32], sizes = [8, 16, 32], strides = [1, 1, 1]} : vector<8x16x96xf32> to vector<8x16x32xf32>
    %11 = vector.extract_strided_slice %6 {offsets = [0, 0, 64], sizes = [8, 16, 32], strides = [1, 1, 1]} : vector<8x16x96xf32> to vector<8x16x32xf32>
    %c0_6 = arith.constant 0 : index
    %c0_7 = arith.constant 0 : index
    %12 = vector.load %arg4[%c0_6, %c0_7] : memref<32x32xf32, #tpu.memory_space<vmem>>, vector<32x32xf32>
    %cst_8 = arith.constant 0.000000e+00 : f32
    %13 = vector.broadcast %cst_8 : f32 to vector<128x32xf32>
    %14 = vector.extract_strided_slice %9 {offsets = [0, 0, 0], sizes = [8, 16, 8], strides = [1, 1, 1]} : vector<8x16x32xf32> to vector<8x16x8xf32>
    %15 = vector.extract_strided_slice %10 {offsets = [0, 0, 0], sizes = [8, 16, 8], strides = [1, 1, 1]} : vector<8x16x32xf32> to vector<8x16x8xf32>
    %16 = vector.extract_strided_slice %11 {offsets = [0, 0, 0], sizes = [8, 16, 8], strides = [1, 1, 1]} : vector<8x16x32xf32> to vector<8x16x8xf32>
    "tpu.trace_start"() <{level = 10 : i32, message = "bnd,bmd->bnm"}> : () -> ()
    %cst_9 = arith.constant dense<0.000000e+00> : vector<8x16x16xf32>
    %17 = tpu.matmul %14, %15, %cst_9 {dimension_numbers = #tpu.dot_dimension_numbers<[2], [2], [1], [1], [0, 0, 0, 1, 1, 1], [0], [0]>} : vector<8x16x8xf32>, vector<8x16x8xf32>, vector<8x16x16xf32> -> vector<8x16x16xf32>
    "tpu.trace_stop"() : () -> ()
    %cst_10 = arith.constant dense<0xFF800000> : vector<8x16xf32>
    %18 = vector.multi_reduction <maximumf>, %17, %cst_10 [2] : vector<8x16x16xf32> to vector<8x16xf32>
    %19 = vector.shape_cast %18 : vector<8x16xf32> to vector<8x16x1xf32>
    %20 = vector.broadcast %19 : vector<8x16x1xf32> to vector<8x16x16xf32>
    %21 = arith.subf %17, %20 : vector<8x16x16xf32>
    %22 = math.exp %21 : vector<8x16x16xf32>
    %cst_11 = arith.constant dense<0.000000e+00> : vector<8x16xf32>
    %23 = vector.multi_reduction <add>, %22, %cst_11 [2] : vector<8x16x16xf32> to vector<8x16xf32>
    %24 = vector.shape_cast %23 : vector<8x16xf32> to vector<8x16x1xf32>
    %25 = tpu.reciprocal %24 {approx = true} : vector<8x16x1xf32> -> vector<8x16x1xf32>
    %26 = vector.broadcast %25 : vector<8x16x1xf32> to vector<8x16x16xf32>
    %27 = arith.mulf %22, %26 : vector<8x16x16xf32>
    "tpu.trace_start"() <{level = 10 : i32, message = "bnm,bmd->bnd"}> : () -> ()
    %cst_12 = arith.constant dense<0.000000e+00> : vector<8x16x8xf32>
    %28 = tpu.matmul %27, %16, %cst_12 {dimension_numbers = #tpu.dot_dimension_numbers<[2], [1], [1], [2], [0, 0, 0, 1, 1, 2], [0], [0]>} : vector<8x16x16xf32>, vector<8x16x8xf32>, vector<8x16x8xf32> -> vector<8x16x8xf32>
    "tpu.trace_stop"() : () -> ()
    %29 = vector.shape_cast %28 : vector<8x16x8xf32> to vector<128x8xf32>
    %30 = vector.extract_strided_slice %12 {offsets = [0, 0], sizes = [8, 32], strides = [1, 1]} : vector<32x32xf32> to vector<8x32xf32>
    %cst_13 = arith.constant dense<0.000000e+00> : vector<128x32xf32>
    %31 = tpu.matmul %29, %30, %cst_13 {dimension_numbers = #tpu.dot_dimension_numbers<[1], [0], [0], [1], [0, 0, 1, 1], [], []>} : vector<128x8xf32>, vector<8x32xf32>, vector<128x32xf32> -> vector<128x32xf32>
    %32 = arith.addf %13, %31 : vector<128x32xf32>
    %33 = vector.extract_strided_slice %9 {offsets = [0, 0, 8], sizes = [8, 16, 8], strides = [1, 1, 1]} : vector<8x16x32xf32> to vector<8x16x8xf32>
    %34 = vector.extract_strided_slice %10 {offsets = [0, 0, 8], sizes = [8, 16, 8], strides = [1, 1, 1]} : vector<8x16x32xf32> to vector<8x16x8xf32>
    %35 = vector.extract_strided_slice %11 {offsets = [0, 0, 8], sizes = [8, 16, 8], strides = [1, 1, 1]} : vector<8x16x32xf32> to vector<8x16x8xf32>
    "tpu.trace_start"() <{level = 10 : i32, message = "bnd,bmd->bnm"}> : () -> ()
    %cst_14 = arith.constant dense<0.000000e+00> : vector<8x16x16xf32>
    %36 = tpu.matmul %33, %34, %cst_14 {dimension_numbers = #tpu.dot_dimension_numbers<[2], [2], [1], [1], [0, 0, 0, 1, 1, 1], [0], [0]>} : vector<8x16x8xf32>, vector<8x16x8xf32>, vector<8x16x16xf32> -> vector<8x16x16xf32>
    "tpu.trace_stop"() : () -> ()
    %cst_15 = arith.constant dense<0xFF800000> : vector<8x16xf32>
    %37 = vector.multi_reduction <maximumf>, %36, %cst_15 [2] : vector<8x16x16xf32> to vector<8x16xf32>
    %38 = vector.shape_cast %37 : vector<8x16xf32> to vector<8x16x1xf32>
    %39 = vector.broadcast %38 : vector<8x16x1xf32> to vector<8x16x16xf32>
    %40 = arith.subf %36, %39 : vector<8x16x16xf32>
    %41 = math.exp %40 : vector<8x16x16xf32>
    %cst_16 = arith.constant dense<0.000000e+00> : vector<8x16xf32>
    %42 = vector.multi_reduction <add>, %41, %cst_16 [2] : vector<8x16x16xf32> to vector<8x16xf32>
    %43 = vector.shape_cast %42 : vector<8x16xf32> to vector<8x16x1xf32>
    %44 = tpu.reciprocal %43 {approx = true} : vector<8x16x1xf32> -> vector<8x16x1xf32>
    %45 = vector.broadcast %44 : vector<8x16x1xf32> to vector<8x16x16xf32>
    %46 = arith.mulf %41, %45 : vector<8x16x16xf32>
    "tpu.trace_start"() <{level = 10 : i32, message = "bnm,bmd->bnd"}> : () -> ()
    %cst_17 = arith.constant dense<0.000000e+00> : vector<8x16x8xf32>
    %47 = tpu.matmul %46, %35, %cst_17 {dimension_numbers = #tpu.dot_dimension_numbers<[2], [1], [1], [2], [0, 0, 0, 1, 1, 2], [0], [0]>} : vector<8x16x16xf32>, vector<8x16x8xf32>, vector<8x16x8xf32> -> vector<8x16x8xf32>
    "tpu.trace_stop"() : () -> ()
    %48 = vector.shape_cast %47 : vector<8x16x8xf32> to vector<128x8xf32>
    %49 = vector.extract_strided_slice %12 {offsets = [8, 0], sizes = [8, 32], strides = [1, 1]} : vector<32x32xf32> to vector<8x32xf32>
    %cst_18 = arith.constant dense<0.000000e+00> : vector<128x32xf32>
    %50 = tpu.matmul %48, %49, %cst_18 {dimension_numbers = #tpu.dot_dimension_numbers<[1], [0], [0], [1], [0, 0, 1, 1], [], []>} : vector<128x8xf32>, vector<8x32xf32>, vector<128x32xf32> -> vector<128x32xf32>
    %51 = arith.addf %32, %50 : vector<128x32xf32>
    %52 = vector.extract_strided_slice %9 {offsets = [0, 0, 16], sizes = [8, 16, 8], strides = [1, 1, 1]} : vector<8x16x32xf32> to vector<8x16x8xf32>
    %53 = vector.extract_strided_slice %10 {offsets = [0, 0, 16], sizes = [8, 16, 8], strides = [1, 1, 1]} : vector<8x16x32xf32> to vector<8x16x8xf32>
    %54 = vector.extract_strided_slice %11 {offsets = [0, 0, 16], sizes = [8, 16, 8], strides = [1, 1, 1]} : vector<8x16x32xf32> to vector<8x16x8xf32>
    "tpu.trace_start"() <{level = 10 : i32, message = "bnd,bmd->bnm"}> : () -> ()
    %cst_19 = arith.constant dense<0.000000e+00> : vector<8x16x16xf32>
    %55 = tpu.matmul %52, %53, %cst_19 {dimension_numbers = #tpu.dot_dimension_numbers<[2], [2], [1], [1], [0, 0, 0, 1, 1, 1], [0], [0]>} : vector<8x16x8xf32>, vector<8x16x8xf32>, vector<8x16x16xf32> -> vector<8x16x16xf32>
    "tpu.trace_stop"() : () -> ()
    %cst_20 = arith.constant dense<0xFF800000> : vector<8x16xf32>
    %56 = vector.multi_reduction <maximumf>, %55, %cst_20 [2] : vector<8x16x16xf32> to vector<8x16xf32>
    %57 = vector.shape_cast %56 : vector<8x16xf32> to vector<8x16x1xf32>
    %58 = vector.broadcast %57 : vector<8x16x1xf32> to vector<8x16x16xf32>
    %59 = arith.subf %55, %58 : vector<8x16x16xf32>
    %60 = math.exp %59 : vector<8x16x16xf32>
    %cst_21 = arith.constant dense<0.000000e+00> : vector<8x16xf32>
    %61 = vector.multi_reduction <add>, %60, %cst_21 [2] : vector<8x16x16xf32> to vector<8x16xf32>
    %62 = vector.shape_cast %61 : vector<8x16xf32> to vector<8x16x1xf32>
    %63 = tpu.reciprocal %62 {approx = true} : vector<8x16x1xf32> -> vector<8x16x1xf32>
    %64 = vector.broadcast %63 : vector<8x16x1xf32> to vector<8x16x16xf32>
    %65 = arith.mulf %60, %64 : vector<8x16x16xf32>
    "tpu.trace_start"() <{level = 10 : i32, message = "bnm,bmd->bnd"}> : () -> ()
    %cst_22 = arith.constant dense<0.000000e+00> : vector<8x16x8xf32>
    %66 = tpu.matmul %65, %54, %cst_22 {dimension_numbers = #tpu.dot_dimension_numbers<[2], [1], [1], [2], [0, 0, 0, 1, 1, 2], [0], [0]>} : vector<8x16x16xf32>, vector<8x16x8xf32>, vector<8x16x8xf32> -> vector<8x16x8xf32>
    "tpu.trace_stop"() : () -> ()
    %67 = vector.shape_cast %66 : vector<8x16x8xf32> to vector<128x8xf32>
    %68 = vector.extract_strided_slice %12 {offsets = [16, 0], sizes = [8, 32], strides = [1, 1]} : vector<32x32xf32> to vector<8x32xf32>
    %cst_23 = arith.constant dense<0.000000e+00> : vector<128x32xf32>
    %69 = tpu.matmul %67, %68, %cst_23 {dimension_numbers = #tpu.dot_dimension_numbers<[1], [0], [0], [1], [0, 0, 1, 1], [], []>} : vector<128x8xf32>, vector<8x32xf32>, vector<128x32xf32> -> vector<128x32xf32>
    %70 = arith.addf %51, %69 : vector<128x32xf32>
    %71 = vector.extract_strided_slice %9 {offsets = [0, 0, 24], sizes = [8, 16, 8], strides = [1, 1, 1]} : vector<8x16x32xf32> to vector<8x16x8xf32>
    %72 = vector.extract_strided_slice %10 {offsets = [0, 0, 24], sizes = [8, 16, 8], strides = [1, 1, 1]} : vector<8x16x32xf32> to vector<8x16x8xf32>
    %73 = vector.extract_strided_slice %11 {offsets = [0, 0, 24], sizes = [8, 16, 8], strides = [1, 1, 1]} : vector<8x16x32xf32> to vector<8x16x8xf32>
    "tpu.trace_start"() <{level = 10 : i32, message = "bnd,bmd->bnm"}> : () -> ()
    %cst_24 = arith.constant dense<0.000000e+00> : vector<8x16x16xf32>
    %74 = tpu.matmul %71, %72, %cst_24 {dimension_numbers = #tpu.dot_dimension_numbers<[2], [2], [1], [1], [0, 0, 0, 1, 1, 1], [0], [0]>} : vector<8x16x8xf32>, vector<8x16x8xf32>, vector<8x16x16xf32> -> vector<8x16x16xf32>
    "tpu.trace_stop"() : () -> ()
    %cst_25 = arith.constant dense<0xFF800000> : vector<8x16xf32>
    %75 = vector.multi_reduction <maximumf>, %74, %cst_25 [2] : vector<8x16x16xf32> to vector<8x16xf32>
    %76 = vector.shape_cast %75 : vector<8x16xf32> to vector<8x16x1xf32>
    %77 = vector.broadcast %76 : vector<8x16x1xf32> to vector<8x16x16xf32>
    %78 = arith.subf %74, %77 : vector<8x16x16xf32>
    %79 = math.exp %78 : vector<8x16x16xf32>
    %cst_26 = arith.constant dense<0.000000e+00> : vector<8x16xf32>
    %80 = vector.multi_reduction <add>, %79, %cst_26 [2] : vector<8x16x16xf32> to vector<8x16xf32>
    %81 = vector.shape_cast %80 : vector<8x16xf32> to vector<8x16x1xf32>
    %82 = tpu.reciprocal %81 {approx = true} : vector<8x16x1xf32> -> vector<8x16x1xf32>
    %83 = vector.broadcast %82 : vector<8x16x1xf32> to vector<8x16x16xf32>
    %84 = arith.mulf %79, %83 : vector<8x16x16xf32>
    "tpu.trace_start"() <{level = 10 : i32, message = "bnm,bmd->bnd"}> : () -> ()
    %cst_27 = arith.constant dense<0.000000e+00> : vector<8x16x8xf32>
    %85 = tpu.matmul %84, %73, %cst_27 {dimension_numbers = #tpu.dot_dimension_numbers<[2], [1], [1], [2], [0, 0, 0, 1, 1, 2], [0], [0]>} : vector<8x16x16xf32>, vector<8x16x8xf32>, vector<8x16x8xf32> -> vector<8x16x8xf32>
    "tpu.trace_stop"() : () -> ()
    %86 = vector.shape_cast %85 : vector<8x16x8xf32> to vector<128x8xf32>
    %87 = vector.extract_strided_slice %12 {offsets = [24, 0], sizes = [8, 32], strides = [1, 1]} : vector<32x32xf32> to vector<8x32xf32>
    %cst_28 = arith.constant dense<0.000000e+00> : vector<128x32xf32>
    %88 = tpu.matmul %86, %87, %cst_28 {dimension_numbers = #tpu.dot_dimension_numbers<[1], [0], [0], [1], [0, 0, 1, 1], [], []>} : vector<128x8xf32>, vector<8x32xf32>, vector<128x32xf32> -> vector<128x32xf32>
    %89 = arith.addf %70, %88 : vector<128x32xf32>
    %c0_29 = arith.constant 0 : index
    %c0_30 = arith.constant 0 : index
    %90 = vector.load %arg5[%c0_29, %c0_30] : memref<1x32xf32, #tpu.memory_space<vmem>>, vector<1x32xf32>
    %91 = vector.broadcast %90 : vector<1x32xf32> to vector<128x32xf32>
    %92 = arith.addf %89, %91 : vector<128x32xf32>
    %c0_31 = arith.constant 0 : index
    %c0_32 = arith.constant 0 : index
    %93 = vector.load %arg6[%c0_31, %c0_32] : memref<128x32xf32, #tpu.memory_space<vmem>>, vector<128x32xf32>
    tpu.vector_store %arg6[%c0_31, %c0_32], %92 {strides = array<i32>} : memref<128x32xf32, #tpu.memory_space<vmem>>, vector<128x32xf32>,
    return
  }
  func.func @transform_0(%arg0: i32) -> (i32, i32) {
    %c0_i32 = arith.constant 0 : i32
    %c0_i32_0 = arith.constant 0 : i32
    return %arg0, %c0_i32 : i32, i32
  }
  func.func @transform_1(%arg0: i32) -> (i32, i32) {
    %c0_i32 = arith.constant 0 : i32
    %c0_i32_0 = arith.constant 0 : i32
    %c0_i32_1 = arith.constant 0 : i32
    return %c0_i32, %c0_i32_0 : i32, i32
  }
  func.func @transform_2(%arg0: i32) -> (i32, i32) {
    %c0_i32 = arith.constant 0 : i32
    %c0_i32_0 = arith.constant 0 : i32
    %c0_i32_1 = arith.constant 0 : i32
    return %c0_i32, %c0_i32_0 : i32, i32
  }
  func.func @transform_3(%arg0: i32) -> (i32, i32) {
    %c0_i32 = arith.constant 0 : i32
    %c0_i32_0 = arith.constant 0 : i32
    %c0_i32_1 = arith.constant 0 : i32
    return %c0_i32, %c0_i32_0 : i32, i32
  }
  func.func @transform_4(%arg0: i32) -> (i32, i32) {
    %c0_i32 = arith.constant 0 : i32
    %c0_i32_0 = arith.constant 0 : i32
    %c0_i32_1 = arith.constant 0 : i32
    return %c0_i32, %c0_i32_0 : i32, i32
  }
  func.func @transform_5(%arg0: i32) -> (i32, i32) {
    %c0_i32 = arith.constant 0 : i32
    %c0_i32_0 = arith.constant 0 : i32
    return %arg0, %c0_i32 : i32, i32
  }
}

</mosaic_0001>

<bundles_post_ra>
// kernel: tpu_custom_call.1
= control target key start
LH: loop header
LB: loop body
LE: loop exit
PB: predicated region body
PF: predicated region fallthrough
CT: control target
= control target key end

     0   :  { %vm47_vm0 = vcmask 261120   ;;  %vm267_vm1 = vcmask 64512   ;;  %s8984_s9 = smov 120   ;;  %vm990_vm2 = vcmask 130048   ;;  %s8985_s10 = smov 56   ;;  %s11003_s1 = inlined_call_operand.vmem [shape: f32[32,96], index: 1, kind: input, shape index: {}]   ;;  %s11004_s0 = inlined_call_operand.vmem [shape: f32[128,32], index: 0, kind: input, shape index: {}]   ;;  %s11005_s2 = inlined_call_operand.vmem [shape: f32[1,96], index: 2, kind: input, shape index: {}]   ;;  %s11006_s3 = inlined_call_operand.vmem [shape: f32[32,32], index: 3, kind: input, shape index: {}]   ;;  %s11007_s4 = inlined_call_operand.vmem [shape: f32[1,32], index: 4, kind: input, shape index: {}]   ;;  %s11008_s5 = inlined_call_operand.vmem [shape: f32[128,32], index: 5, kind: output, shape index: {}]  }
   0x1   :  { %v39_v0 = vld [vmem:[%s11003_s1 + $0x18] sm:$0xff]  ;;  %v38_v1 = vld [vmem:[%s11003_s1 + $0x10] sm:$0xff]  ;;  %v20_v2 = vld [vmem:[%s11004_s0] sm:$0xff]  ;;  %s8986_s11 = smov 80   ;;  %s8987_s12 = smov 112  }
   0x2   :  { %8128 = vmatprep.subr.mxu0 %v39_v0  ;;  %v37_v3 = vld [vmem:[%s11003_s1 + $0x8] sm:$0xff]  ;;  %8136 = vmatprep.mubr.msk.f32.mxu0 %vm47_vm0, %v20_v2  ;;  %v36_v4 = vld [vmem:[%s11003_s1] sm:$0xff]  ;;  %v22_v6 = vld [vmem:[%s11004_s0 + $0x10] sm:$0xff]  ;;  %s8981_s1 = smov 96   ;;  %s8988_s13 = smov 48  }
   0x3   :  { %8129 = vmatpush3.msra.mxu0 %v39_v0  ;;  %v21_v5 = vld [vmem:[%s11004_s0 + $0x8] sm:$0xff]  ;;  %v23_v7 = vld [vmem:[%s11004_s0 + $0x18] sm:$0xff]  ;;  %v24_v8 = vld [vmem:[%s11004_s0 + $0x20] sm:$0xff]  ;;  %s8989_s18 = smov 72   ;;  %s8990_s19 = smov 104  }
   0x4   :  { %8130 = vmatprep.subr.mxu0 %v38_v1  ;;  %v25_v9 = vld [vmem:[%s11004_s0 + $0x28] sm:$0xff]  ;;  %v26_v10 = vld [vmem:[%s11004_s0 + $0x30] sm:$0xff]  ;;  %v27_v11 = vld [vmem:[%s11004_s0 + $0x38] sm:$0xff]  ;;  %s8991_s22 = smov 40  }
   0x5   :  { %8131 = vmatpush3.msra.mxu0 %v38_v1  ;;  %v28_v12 = vld [vmem:[%s11004_s0 + $0x40] sm:$0xff]  ;;  %v29_v13 = vld [vmem:[%s11004_s0 + $0x48] sm:$0xff]  ;;  %v30_v14 = vld [vmem:[%s11004_s0 + $0x50] sm:$0xff] }
   0x6   :  { %8132 = vmatprep.subr.mxu0 %v37_v3  ;;  %v31_v15 = vld [vmem:[%s11004_s0 + $0x58] sm:$0xff]  ;;  %v32_v16 = vld [vmem:[%s11004_s0 + $0x60] sm:$0xff]  ;;  %v33_v17 = vld [vmem:[%s11004_s0 + $0x68] sm:$0xff] }
   0x7   :  { %8133 = vmatpush3.msra.mxu0 %v37_v3  ;;  %v34_v18 = vld [vmem:[%s11004_s0 + $0x70] sm:$0xff]  ;;  %v35_v19 = vld [vmem:[%s11004_s0 + $0x78] sm:$0xff]  ;;  %v7510_v20 = vld [vmem:[%s11005_s2] ss:$0 sm:$0xff]  ;;  %s8982_s0 = smov 64   ;;  %s8983_s2 = smov 88  }
   0x8   :  { %8134 = vmatprep.subr.mxu0 %v36_v4 }
   0x9   :  { %8135 = vmatpush3.msra.mxu0 %v36_v4 }
   0xa   :  { %8137 = vmatmul.mubr.msk.f32.vlgmr.msra.gmra.mxu0 %vm47_vm0, %v21_v5 }
   0xb   :  { %8139 = vmatprep.mubr.msk.f32.mxu0 %vm47_vm0, %v22_v6 }
   0xe   :  { %8140 = vmatmul.mubr.msk.f32.gmra.mxu0 %vm47_vm0, %v23_v7 }
   0xf   :  { %8142 = vmatprep.mubr.msk.f32.mxu0 %vm47_vm0, %v24_v8 }
  0x12   :  { %8143 = vmatmul.mubr.msk.f32.gmra.mxu0 %vm47_vm0, %v25_v9 }
  0x13   :  { %8145 = vmatprep.mubr.msk.f32.mxu0 %vm47_vm0, %v26_v10 }
  0x16   :  { %8146 = vmatmul.mubr.msk.f32.gmra.mxu0 %vm47_vm0, %v27_v11 }
  0x17   :  { %8148 = vmatprep.mubr.msk.f32.mxu0 %vm47_vm0, %v28_v12 }
  0x1a   :  { %8149 = vmatmul.mubr.msk.f32.gmra.mxu0 %vm47_vm0, %v29_v13 }
  0x1b   :  { %8151 = vmatprep.mubr.msk.f32.mxu0 %vm47_vm0, %v30_v14 }
  0x1e   :  { %8152 = vmatmul.mubr.msk.f32.gmra.mxu0 %vm47_vm0, %v31_v15 }
  0x1f   :  { %8154 = vmatprep.mubr.msk.f32.mxu0 %vm47_vm0, %v32_v16 }
  0x22   :  { %8155 = vmatmul.mubr.msk.f32.gmra.mxu0 %vm47_vm0, %v33_v17 }
  0x23   :  { %8157 = vmatprep.mubr.msk.f32.mxu0 %vm47_vm0, %v34_v18 }
  0x26   :  { %8158 = vmatmul.mubr.msk.f32.gmra.mxu0 %vm47_vm0, %v35_v19 }
  0xca   :  { %v8138_v21 = vpop.f32.mrf.mxu0 }
  0xcb   :  { %v9101_v22 = vadd.f32 %v8138_v21, %v7510_v20 }
  0xcc   :  { %v162_v23 = vpop.f32.mrf.mxu0 }
  0xcd   :  { %v9103_v24 = vadd.f32 %v7510_v20, %v162_v23  ;;  %265 = vrot.lane.b32.xlu0 %v9101_v22, %s8981_s1  ;;  %v9192_v55 = vmul.f32 0.35355338, %v9101_v22 }
  0xce   :  { %v8141_v25 = vpop.f32.mrf.mxu0 }
  0xcf   :  { %v9107_v26 = vadd.f32 %v8141_v25, %v7510_v20  ;;  %v9110_v27 = vmul.f32 0.35355338, %v9103_v24  ;;  %11041 = vst [vmem:[#allocation4_spill] sm:$0xff] %v9192_v55 }
  0xd0   :  { %v172_v28 = vpop.f32.mrf.mxu0 }
  0xd1   :  { %11039 = vst [vmem:[#allocation2_spill] sm:$0xff] %v9110_v27  ;;  %v9112_v29 = vadd.f32 %v7510_v20, %v172_v28  ;;  %357 = vrot.lane.b32.xlu1 %v9107_v26, %s8981_s1  ;;  %263 = vrot.lane.b32.xlu0 %v9103_v24, %s8981_s1  ;;  %v9202_v56 = vmul.f32 0.35355338, %v9107_v26 }
  0xd2   :  { %8164 = vmatprep.mubr.msk.f32.mxu1 %vm267_vm1, %v9110_v27  ;;  %v8144_v30 = vpop.f32.mrf.mxu0 }
  0xd3   :  { %v9120_v31 = vadd.f32 %v8144_v30, %v7510_v20  ;;  %11042 = vst [vmem:[#allocation5_spill] sm:$0xff] %v9202_v56  ;;  %v9214_v57 = vmul.f32 0.35355338, %v9112_v29 }
  0xd4   :  { %v182_v32 = vpop.f32.mrf.mxu0 }
  0xd5   :  { %v9122_v33 = vadd.f32 %v7510_v20, %v182_v32  ;;  %355 = vrot.lane.b32.xlu1 %v9112_v29, %s8981_s1  ;;  %448 = vrot.lane.b32.xlu0 %v9120_v31, %s8981_s1  ;;  %11043 = vst [vmem:[#allocation6_spill] sm:$0xff] %v9214_v57  ;;  %v9248_v6 = vmul.f32 0.35355338, %v9120_v31 }
  0xd6   :  { %v8147_v34 = vpop.f32.mrf.mxu0 }
  0xd7   :  { %v9128_v35 = vadd.f32 %v8147_v34, %v7510_v20  ;;  %v9234_v3 = vmul.f32 0.35355338, %v9122_v33  ;;  %11045 = vst [vmem:[#allocation8_spill] sm:$0xff] %v9248_v6 }
  0xd8   :  { %v192_v36 = vpop.f32.mrf.mxu0 }
  0xd9   :  { %v9130_v37 = vadd.f32 %v7510_v20, %v192_v36  ;;  %446 = vrot.lane.b32.xlu1 %v9122_v33, %s8981_s1  ;;  %539 = vrot.lane.b32.xlu0 %v9128_v35, %s8981_s1  ;;  %11044 = vst [vmem:[#allocation7_spill] sm:$0xff] %v9234_v3  ;;  %v9276_v13 = vmul.f32 0.35355338, %v9128_v35 }
  0xda   :  { %v8150_v38 = vpop.f32.mrf.mxu0 }
  0xdb   :  { %v9136_v39 = vadd.f32 %v8150_v38, %v7510_v20  ;;  %v9258_v10 = vmul.f32 0.35355338, %v9130_v37  ;;  %11048 = vst [vmem:[#allocation11_spill] sm:$0xff] %v9276_v13 }
  0xdc   :  { %v202_v40 = vpop.f32.mrf.mxu0 }
  0xdd   :  { %11040 = vst [vmem:[#allocation3_spill] sm:$0xff] %v9136_v39  ;;  %v9138_v41 = vadd.f32 %v7510_v20, %v202_v40  ;;  %537 = vrot.lane.b32.xlu1 %v9130_v37, %s8981_s1  ;;  %630 = vrot.lane.b32.xlu0 %v9136_v39, %s8981_s1  ;;  %v9252_v9 = vmul.f32 0.35355338, %v9136_v39  ;;  %11047 = vst [vmem:[#allocation10_spill] sm:$0xff] %v9258_v10 }
  0xde   :  { %v8153_v42 = vpop.f32.mrf.mxu0 }
  0xdf   :  { %v9144_v43 = vadd.f32 %v8153_v42, %v7510_v20  ;;  %v9147_v44 = vmul.f32 0.35355338, %v9138_v41  ;;  %11046 = vst [vmem:[#allocation9_spill] sm:$0xff] %v9252_v9 }
  0xe0   :  { %v212_v45 = vpop.f32.mrf.mxu0 }
  0xe1   :  { %v9149_v46 = vadd.f32 %v7510_v20, %v212_v45  ;;  %628 = vrot.lane.b32.xlu1 %v9138_v41, %s8981_s1  ;;  %721 = vrot.lane.b32.xlu0 %v9144_v43, %s8981_s1 }
  0xe2   :  { %v8156_v47 = vpop.f32.mrf.mxu0  ;;  %8192 = vmatprep.mubr.msk.f32.mxu0 %vm267_vm1, %v9147_v44 }
  0xe3   :  { %v9157_v48 = vadd.f32 %v8156_v47, %v7510_v20  ;;  %v9285_v17 = vmul.f32 0.35355338, %v9149_v46 }
  0xe4   :  { %v222_v49 = vpop.f32.mrf.mxu0 }
  0xe5   :  { %v9159_v50 = vadd.f32 %v7510_v20, %v222_v49  ;;  %719 = vrot.lane.b32.xlu1 %v9149_v46, %s8981_s1  ;;  %812 = vrot.lane.b32.xlu0 %v9157_v48, %s8981_s1  ;;  %v9280_v16 = vmul.f32 0.35355338, %v9157_v48 }
  0xe6   :  { %v8159_v51 = vpop.f32.mrf.mxu0 }
  0xe7   :  { %v9165_v52 = vadd.f32 %v8159_v51, %v7510_v20  ;;  %v9264_v11 = vmul.f32 0.35355338, %v9159_v50  ;;  %11049 = vst [vmem:[#allocation12_spill] sm:$0xff] %v9280_v16 }
  0xe8   :  { %v232_v53 = vpop.f32.mrf.mxu0 }
  0xe9   :  { %810 = vrot.lane.b32.xlu1 %v9159_v50, %s8981_s1  ;;  %903 = vrot.lane.b32.xlu0 %v9165_v52, %s8981_s1  ;;  %v9171_v54 = vadd.f32 %v7510_v20, %v232_v53  ;;  %v9295_v20 = vmul.f32 0.35355338, %v9144_v43  ;;  %v9312_v30 = vmul.f32 0.35355338, %v9165_v52 }
  0xeb   :  { %11050 = vst [vmem:[#allocation13_spill] sm:$0xff] %v9295_v20  ;;  %v9299_v23 = vmul.f32 0.35355338, %v9171_v54  ;;  %11052 = vst [vmem:[#allocation15_spill] sm:$0xff] %v9312_v30 }
  0xed   :  { %901 = vrot.lane.b32.xlu1 %v9171_v54, %s8981_s1  ;;  %1167 = vrot.lane.b32.xlu0 %v9103_v24, %s8982_s0  ;;  %11051 = vst [vmem:[#allocation14_spill] sm:$0xff] %v9299_v23 }
  0xf1   :  { %1169 = vrot.lane.b32.xlu1 %v9101_v22, %s8982_s0  ;;  %1254 = vrot.lane.b32.xlu0 %v9112_v29, %s8982_s0 }
  0xf5   :  { %1256 = vrot.lane.b32.xlu1 %v9107_v26, %s8982_s0  ;;  %1430 = vrot.lane.b32.xlu0 %v9128_v35, %s8982_s0 }
  0xf9   :  { %1343 = vrot.lane.b32.xlu1 %v9120_v31, %s8982_s0  ;;  %1428 = vrot.lane.b32.xlu0 %v9130_v37, %s8982_s0 }
  0xfd   :  { %1341 = vrot.lane.b32.xlu1 %v9122_v33, %s8982_s0  ;;  %1604 = vrot.lane.b32.xlu0 %v9144_v43, %s8982_s0 }
 0x101   :  { %1517 = vrot.lane.b32.xlu1 %v9136_v39, %s8982_s0  ;;  %1602 = vrot.lane.b32.xlu0 %v9149_v46, %s8982_s0 }
 0x105   :  { %1515 = vrot.lane.b32.xlu1 %v9138_v41, %s8982_s0  ;;  %1778 = vrot.lane.b32.xlu0 %v9165_v52, %s8982_s0 }
 0x109   :  { %1691 = vrot.lane.b32.xlu1 %v9157_v48, %s8982_s0  ;;  %1960 = vrot.lane.b32.xlu0 %v9107_v26, %s8983_s2 }
 0x10d   :  { %1689 = vrot.lane.b32.xlu1 %v9159_v50, %s8982_s0  ;;  %1865 = vrot.lane.b32.xlu0 %v9192_v55, %s8984_s9 }
 0x111   :  { %1869 = vrot.lane.b32.xlu1 %v9101_v22, %s8983_s2  ;;  %2051 = vrot.lane.b32.xlu0 %v9120_v31, %s8983_s2 }
 0x115   :  { %1867 = vrot.lane.b32.xlu1 %v9103_v24, %s8983_s2  ;;  %1956 = vrot.lane.b32.xlu0 %v9202_v56, %s8984_s9 }
 0x119   :  { %1863 = vrot.lane.b32.xlu1 %v9110_v27, %s8984_s9  ;;  %1776 = vrot.lane.b32.xlu0 %v9171_v54, %s8982_s0 }
 0x11d   :  { %1958 = vrot.lane.b32.xlu1 %v9112_v29, %s8983_s2 }
 0x121   :  { %1954 = vrot.lane.b32.xlu1 %v9214_v57, %s8984_s9 }
 0x125   :  { %2049 = vrot.lane.b32.xlu1 %v9122_v33, %s8983_s2 }
 0x13f   :  { %v266_v58 = vpop.permute.xlu0 %265 }
 0x140   :  { %8160 = vmatprep.subr.msk.mxu1 %vm267_vm1, %v266_v58 }
 0x141   :  { %8161 = vmatpush3.xpose.msk.msra.mxu1 %vm267_vm1, %v266_v58 }
 0x143   :  { %v358_v59 = vpop.permute.xlu1 %357  ;;  %v264_v60 = vpop.permute.xlu0 %263 }
 0x144   :  { %8162 = vmatprep.subr.msk.mxu1 %vm267_vm1, %v264_v60 }
 0x145   :  { %8163 = vmatpush3.xpose.msk.msra.mxu1 %vm267_vm1, %v264_v60 }
 0x146   :  { %8167 = vmatprep.subr.msk.mxu1 %vm267_vm1, %v358_v59 }
 0x147   :  { %v356_v61 = vpop.permute.xlu1 %355  ;;  %v449_v62 = vpop.permute.xlu0 %448 }
 0x148   :  { %8165 = vmatmul.mubr.msk.f32.vlgmr.msra.gmra.mxu1 %vm267_vm1, %v9192_v55 }
 0x149   :  { %8168 = vmatpush3.xpose.msk.msra.mxu1 %vm267_vm1, %v358_v59  ;;  %8171 = vmatprep.mubr.msk.f32.mxu1 %vm267_vm1, %v9214_v57 }
 0x14a   :  { %8169 = vmatprep.subr.msk.mxu1 %vm267_vm1, %v356_v61 }
 0x14b   :  { %v447_v63 = vpop.permute.xlu1 %446  ;;  %v540_v0 = vpop.permute.xlu0 %539 }
 0x14d   :  { %8170 = vmatpush3.xpose.msk.msra.mxu1 %vm267_vm1, %v356_v61 }
 0x14e   :  { %8174 = vmatprep.subr.msk.mxu1 %vm267_vm1, %v449_v62 }
 0x14f   :  { %v538_v1 = vpop.permute.xlu1 %537  ;;  %v631_v2 = vpop.permute.xlu0 %630 }
 0x150   :  { %8172 = vmatmul.mubr.msk.f32.vlgmr.msra.gmra.mxu1 %vm267_vm1, %v9202_v56  ;;  %8188 = vmatprep.subr.msk.mxu0 %vm267_vm1, %v631_v2 }
 0x151   :  { %8175 = vmatpush3.xpose.msk.msra.mxu1 %vm267_vm1, %v449_v62  ;;  %8178 = vmatprep.mubr.msk.f32.mxu1 %vm267_vm1, %v9234_v3 }
 0x152   :  { %8189 = vmatpush3.xpose.msk.msra.mxu0 %vm267_vm1, %v631_v2  ;;  %8176 = vmatprep.subr.msk.mxu1 %vm267_vm1, %v447_v63 }
 0x153   :  { %v629_v4 = vpop.permute.xlu1 %628  ;;  %v722_v5 = vpop.permute.xlu0 %721 }
 0x154   :  { %8190 = vmatprep.subr.msk.mxu0 %vm267_vm1, %v629_v4 }
 0x155   :  { %8177 = vmatpush3.xpose.msk.msra.mxu1 %vm267_vm1, %v447_v63 }
 0x156   :  { %8191 = vmatpush3.xpose.msk.msra.mxu0 %vm267_vm1, %v629_v4  ;;  %8181 = vmatprep.subr.msk.mxu1 %vm267_vm1, %v540_v0 }
 0x157   :  { %v720_v7 = vpop.permute.xlu1 %719  ;;  %v813_v8 = vpop.permute.xlu0 %812 }
 0x158   :  { %8179 = vmatmul.mubr.msk.f32.vlgmr.msra.gmra.mxu1 %vm267_vm1, %v9248_v6  ;;  %8202 = vmatprep.subr.msk.mxu0 %vm267_vm1, %v813_v8 }
 0x159   :  { %8193 = vmatmul.mubr.msk.f32.vlgmr.msra.gmra.mxu0 %vm267_vm1, %v9252_v9  ;;  %8182 = vmatpush3.xpose.msk.msra.mxu1 %vm267_vm1, %v540_v0 }
 0x15a   :  { %8185 = vmatprep.mubr.msk.f32.mxu1 %vm267_vm1, %v9258_v10  ;;  %8203 = vmatpush3.xpose.msk.msra.mxu0 %vm267_vm1, %v813_v8 }
 0x15b   :  { %8206 = vmatprep.mubr.msk.f32.mxu0 %vm267_vm1, %v9264_v11  ;;  %8183 = vmatprep.subr.msk.mxu1 %vm267_vm1, %v538_v1  ;;  %v811_v12 = vpop.permute.xlu1 %810  ;;  %v904_v14 = vpop.permute.xlu0 %903 }
 0x15c   :  { %8204 = vmatprep.subr.msk.mxu0 %vm267_vm1, %v811_v12 }
 0x15d   :  { %8184 = vmatpush3.xpose.msk.msra.mxu1 %vm267_vm1, %v538_v1 }
 0x15e   :  { %8205 = vmatpush3.xpose.msk.msra.mxu0 %vm267_vm1, %v811_v12  ;;  %8195 = vmatprep.subr.msk.mxu1 %vm267_vm1, %v722_v5 }
 0x15f   :  { %v902_v15 = vpop.permute.xlu1 %901  ;;  %v1168_v19 = vpop.permute.xlu0 %1167 }
 0x160   :  { %8186 = vmatmul.mubr.msk.f32.vlgmr.msra.gmra.mxu1 %vm267_vm1, %v9276_v13 }
 0x161   :  { %8207 = vmatmul.mubr.msk.f32.vlgmr.msra.gmra.mxu0 %vm267_vm1, %v9280_v16  ;;  %8196 = vmatpush3.xpose.msk.msra.mxu1 %vm267_vm1, %v722_v5 }
 0x162   :  { %8199 = vmatprep.mubr.msk.f32.mxu1 %vm267_vm1, %v9285_v17  ;;  %8197 = vmatprep.subr.msk.mxu1 %vm267_vm1, %v720_v7 }
 0x163   :  { %v1170_v18 = vpop.permute.xlu1 %1169  ;;  %v1255_v28 = vpop.permute.xlu0 %1254 }
 0x164   :  { %8216 = vmatprep.subr.mxu0 %v1170_v18 }
 0x165   :  { %8198 = vmatpush3.xpose.msk.msra.mxu1 %vm267_vm1, %v720_v7  ;;  %8217 = vmatpush3.msra.mxu0 %v1170_v18 }
 0x166   :  { %8218 = vmatprep.subr.mxu0 %v1168_v19  ;;  %8209 = vmatprep.subr.msk.mxu1 %vm267_vm1, %v904_v14 }
 0x167   :  { %v1257_v21 = vpop.permute.xlu1 %1256  ;;  %8219 = vmatpush3.msra.mxu0 %v1168_v19  ;;  %v9316_v32 = vpop.permute.xlu0 %1430 }
 0x168   :  { %8200 = vmatmul.mubr.msk.f32.vlgmr.msra.gmra.mxu1 %vm267_vm1, %v9295_v20 }
 0x169   :  { %8210 = vmatpush3.xpose.msk.msra.mxu1 %vm267_vm1, %v904_v14  ;;  %8213 = vmatprep.mubr.msk.f32.mxu1 %vm267_vm1, %v9299_v23 }
 0x16a   :  { %8211 = vmatprep.subr.msk.mxu1 %vm267_vm1, %v902_v15 }
 0x16b   :  { %v9307_v25 = vpop.permute.xlu1 %1343 }
 0x16c   :  { %8230 = vmatprep.subr.mxu0 %v9307_v25 }
 0x16d   :  { %8212 = vmatpush3.xpose.msk.msra.mxu1 %vm267_vm1, %v902_v15 }
 0x16e   :  { %8223 = vmatprep.subr.mxu1 %v1257_v21 }
 0x170   :  { %8214 = vmatmul.mubr.msk.f32.vlgmr.msra.gmra.mxu1 %vm267_vm1, %v9312_v30 }
 0x171   :  { %8224 = vmatpush3.msra.mxu1 %v1257_v21 }
 0x172   :  { %8225 = vmatprep.subr.mxu1 %v1255_v28 }
 0x173   :  { %8226 = vmatpush3.msra.mxu1 %v1255_v28 }
 0x174   :  { %8237 = vmatprep.subr.mxu1 %v9316_v32 }
 0x208   :  { %v9319_v34 = vpop.f32.mrf.mxu1 }
 0x209   :  { %v994_v36 = vsel %vm990_vm2, %v9319_v34, -inf }
 0x20a   :  { %995 = vmax.xlane.f32.xlu1 %v994_v36  ;;  %v9323_v38 = vpop.f32.mrf.mxu1  ;;  %v9389_v36 = vpop.permute.xlu1 %1341 }
 0x20b   :  { %v991_v40 = vsel %vm990_vm2, %v9323_v38, -inf }
 0x20c   :  { %992 = vmax.xlane.f32.xlu0 %v991_v40 }
 0x20e   :  { %v9391_v40 = vpop.permute.xlu1 %1517 }
 0x210   :  { %v9327_v42 = vpop.f32.mrf.mxu1 }
 0x211   :  { %v1000_v45 = vsel %vm990_vm2, %v9327_v42, -inf }
 0x212   :  { %1001 = vmax.xlane.f32.xlu1 %v1000_v45  ;;  %v9331_v47 = vpop.f32.mrf.mxu1  ;;  %v9393_v45 = vpop.permute.xlu1 %1515 }
 0x213   :  { %v997_v49 = vsel %vm990_vm2, %v9331_v47, -inf }
 0x214   :  { %998 = vmax.xlane.f32.xlu0 %v997_v49  ;;  %v9395_v49 = vpop.permute.xlu0 %1428 }
 0x218   :  { %v9335_v51 = vpop.f32.mrf.mxu1 }
 0x219   :  { %v1006_v53 = vsel %vm990_vm2, %v9335_v51, -inf  ;;  %v9339_v58 = vpop.f32.mrf.mxu0 }
 0x21a   :  { %1007 = vmax.xlane.f32.xlu0 %v1006_v53  ;;  %v1018_v59 = vsel %vm990_vm2, %v9339_v58, -inf  ;;  %v9343_v60 = vpop.f32.mrf.mxu1 }
 0x21b   :  { %v1003_v62 = vsel %vm990_vm2, %v9343_v60, -inf  ;;  %v9351_v0 = vpop.f32.mrf.mxu0 }
 0x21c   :  { %v1015_v2 = vsel %vm990_vm2, %v9351_v0, -inf }
 0x21e   :  { %1019 = vmax.xlane.f32.xlu0 %v1018_v59  ;;  %v9399_v59 = vpop.permute.xlu1 %1691 }
 0x220   :  { %v9345_v61 = vpop.f32.mrf.mxu1 }
 0x221   :  { %v1012_v63 = vsel %vm990_vm2, %v9345_v61, -inf  ;;  %v9359_v5 = vpop.f32.mrf.mxu0 }
 0x222   :  { %1004 = vmax.xlane.f32.xlu0 %v1003_v62  ;;  %1013 = vmax.xlane.f32.xlu1 %v1012_v63  ;;  %v9353_v1 = vpop.f32.mrf.mxu1  ;;  %v1030_v8 = vsel %vm990_vm2, %v9359_v5, -inf  ;;  %v9403_v63 = vpop.permute.xlu0 %1604 }
 0x223   :  { %v1009_v4 = vsel %vm990_vm2, %v9353_v1, -inf  ;;  %v9367_v14 = vpop.f32.mrf.mxu0 }
 0x224   :  { %v1027_v18 = vsel %vm990_vm2, %v9367_v14, -inf }
 0x226   :  { %1016 = vmax.xlane.f32.xlu0 %v1015_v2  ;;  %1010 = vmax.xlane.f32.xlu1 %v1009_v4  ;;  %v9405_v2 = vpop.permute.xlu1 %1689  ;;  %v9407_v4 = vpop.permute.xlu0 %1602 }
 0x228   :  { %v9361_v7 = vpop.f32.mrf.mxu1 }
 0x229   :  { %v1024_v12 = vsel %vm990_vm2, %v9361_v7, -inf }
 0x22a   :  { %1031 = vmax.xlane.f32.xlu0 %v1030_v8  ;;  %1025 = vmax.xlane.f32.xlu1 %v1024_v12  ;;  %v9369_v15 = vpop.f32.mrf.mxu1  ;;  %v9409_v8 = vpop.permute.xlu1 %1869 }
 0x22b   :  { %v1021_v19 = vsel %vm990_vm2, %v9369_v15, -inf  ;;  %11053 = vst [vmem:[#allocation16_spill] sm:$0xff] %v9409_v8  ;;  %v9411_v12 = vpop.permute.xlu0 %1778 }
 0x22e   :  { %1028 = vmax.xlane.f32.xlu0 %v1027_v18  ;;  %1022 = vmax.xlane.f32.xlu1 %v1021_v19  ;;  %v9413_v18 = vpop.permute.xlu1 %1867 }
 0x22f   :  { %11054 = vst [vmem:[#allocation17_spill] sm:$0xff] %v9413_v18  ;;  %v9417_v19 = vpop.permute.xlu0 %1960 }
 0x230   :  { %v9375_v21 = vpop.f32.mrf.mxu1  ;;  %11055 = vst [vmem:[#allocation18_spill] sm:$0xff] %v9417_v19 }
 0x231   :  { %v1036_v28 = vsel %vm990_vm2, %v9375_v21, -inf }
 0x232   :  { %1037 = vmax.xlane.f32.xlu0 %v1036_v28  ;;  %v9397_v53 = vpop.f32.mrf.mxu1  ;;  %v9419_v28 = vpop.permute.xlu1 %1863 }
 0x233   :  { %v1033_v62 = vsel %vm990_vm2, %v9397_v53, -inf  ;;  %11056 = vst [vmem:[#allocation19_spill] sm:$0xff] %v9419_v28 }
 0x23f   :  { %2045 = vrot.lane.b32.xlu1 %v9234_v3, %s8984_s9  ;;  %v9423_v3 = vpop.permute.xlu1 %1958 }
 0x240   :  { %11058 = vst [vmem:[#allocation21_spill] sm:$0xff] %v9423_v3 }
 0x243   :  { %2140 = vrot.lane.b32.xlu1 %v9130_v37, %s8983_s2  ;;  %v9427_v27 = vpop.permute.xlu1 %1954 }
 0x244   :  { %11060 = vst [vmem:[#allocation23_spill] sm:$0xff] %v9427_v27 }
 0x247   :  { %v9431_v56 = vpop.permute.xlu1 %2049 }
 0x248   :  { %2142 = vrot.lane.b32.xlu0 %v9128_v35, %s8983_s2  ;;  %11062 = vst [vmem:[#allocation25_spill] sm:$0xff] %v9431_v56 }
 0x24c   :  { %2047 = vrot.lane.b32.xlu0 %v9248_v6, %s8984_s9 }
 0x250   :  { %2233 = vrot.lane.b32.xlu0 %v9136_v39, %s8983_s2 }
 0x267   :  { %1034 = vmax.xlane.f32.xlu1 %v1033_v62  ;;  %v9421_v62 = vpop.permute.xlu0 %1865 }
 0x268   :  { %11057 = vst [vmem:[#allocation20_spill] sm:$0xff] %v9421_v62 }
 0x26b   :  { %v9425_v57 = vpop.permute.xlu0 %2051 }
 0x26c   :  { %11059 = vst [vmem:[#allocation22_spill] sm:$0xff] %v9425_v57 }
 0x26f   :  { %v9429_v6 = vpop.permute.xlu0 %1956 }
 0x270   :  { %11061 = vst [vmem:[#allocation24_spill] sm:$0xff] %v9429_v6 }
 0x273   :  { %v9433_v55 = vpop.permute.xlu0 %1776 }
 0x274   :  { %11063 = vst [vmem:[#allocation26_spill] sm:$0xff] %v9433_v55 }
 0x278   :  { %2136 = vrot.lane.b32.xlu1 %v9258_v10, %s8984_s9 }
 0x293   :  { %v996_v39 = vpop.xlane.xlu1 %995 }
 0x294   :  { %v1040_v10 = vsub.f32 %v9319_v34, %v996_v39 }
 0x295   :  { %v993_v19 = vpop.xlane.xlu0 %992 }
 0x296   :  { %v1057_v18 = vmul.f32 1.442695, %v1040_v10  ;;  %v1039_v28 = vsub.f32 %v9323_v38, %v993_v19 }
 0x298   :  { %8725 = vpow2.f32 %v1057_v18  ;;  %v1055_v62 = vmul.f32 1.442695, %v1039_v28 }
 0x29a   :  { %8727 = vpow2.f32 %v1055_v62 }
 0x29b   :  { %v1002_v3 = vpop.xlane.xlu1 %1001 }
 0x29c   :  { %v1042_v57 = vsub.f32 %v9327_v42, %v1002_v3 }
 0x29d   :  { %v999_v27 = vpop.xlane.xlu0 %998 }
 0x29e   :  { %v1061_v8 = vmul.f32 1.442695, %v1042_v57  ;;  %v1041_v6 = vsub.f32 %v9331_v47, %v999_v27 }
 0x2a0   :  { %8729 = vpow2.f32 %v1061_v8  ;;  %v1059_v56 = vmul.f32 1.442695, %v1041_v6 }
 0x2a2   :  { %8731 = vpow2.f32 %v1059_v56 }
 0x2a3   :  { %v1008_v55 = vpop.xlane.xlu0 %1007 }
 0x2a4   :  { %v1044_v39 = vsub.f32 %v9335_v51, %v1008_v55 }
 0x2a5   :  { %v9440_v34 = vpop.eup %8725 }
 0x2a6   :  { %v1065_v10 = vmul.f32 1.442695, %v1044_v39  ;;  %v1090_v38 = vsel %vm990_vm2, %v9440_v34, 0.0 }
 0x2a7   :  { %v9444_v18 = vpop.eup %8727  ;;  %v1020_v19 = vpop.xlane.xlu0 %1019  ;;  %1091 = vadd.xlane.f32.xlu0 %v1090_v38 }
 0x2a8   :  { %8733 = vpow2.f32 %v1065_v10  ;;  %v1048_v57 = vsub.f32 %v9339_v58, %v1020_v19  ;;  %v1087_v27 = vsel %vm990_vm2, %v9444_v18, 0.0 }
 0x2a9   :  { %1088 = vadd.xlane.f32.xlu1 %v1087_v27 }
 0x2aa   :  { %v1073_v56 = vmul.f32 1.442695, %v1048_v57 }
 0x2ab   :  { %v1005_v3 = vpop.xlane.xlu0 %1004  ;;  %v1014_v55 = vpop.xlane.xlu1 %1013 }
 0x2ac   :  { %8735 = vpow2.f32 %v1073_v56  ;;  %v1043_v6 = vsub.f32 %v9343_v60, %v1005_v3  ;;  %v1046_v42 = vsub.f32 %v9345_v61, %v1014_v55 }
 0x2ad   :  { %v9451_v47 = vpop.eup %8729 }
 0x2ae   :  { %v1063_v51 = vmul.f32 1.442695, %v1043_v6  ;;  %v1069_v8 = vmul.f32 1.442695, %v1046_v42  ;;  %v1096_v28 = vsel %vm990_vm2, %v9451_v47, 0.0 }
 0x2af   :  { %v9455_v58 = vpop.eup %8731  ;;  %v1017_v62 = vpop.xlane.xlu0 %1016  ;;  %1097 = vadd.xlane.f32.xlu1 %v1096_v28 }
 0x2b0   :  { %v1011_v39 = vpop.xlane.xlu1 %1010  ;;  %8737 = vpow2.f32 %v1063_v51  ;;  %v1047_v10 = vsub.f32 %v9351_v0, %v1017_v62  ;;  %v1093_v19 = vsel %vm990_vm2, %v9455_v58, 0.0 }
 0x2b1   :  { %v1045_v38 = vsub.f32 %v9353_v1, %v1011_v39  ;;  %8739 = vpow2.f32 %v1069_v8 }
 0x2b2   :  { %v1071_v60 = vmul.f32 1.442695, %v1047_v10 }
 0x2b3   :  { %v1067_v61 = vmul.f32 1.442695, %v1045_v38  ;;  %v1032_v57 = vpop.xlane.xlu0 %1031  ;;  %1094 = vadd.xlane.f32.xlu1 %v1093_v19 }
 0x2b4   :  { %v1026_v27 = vpop.xlane.xlu1 %1025  ;;  %8741 = vpow2.f32 %v1071_v60  ;;  %v1052_v56 = vsub.f32 %v9359_v5, %v1032_v57 }
 0x2b5   :  { %v1050_v3 = vsub.f32 %v9361_v7, %v1026_v27  ;;  %v9463_v55 = vpop.eup %8733  ;;  %8743 = vpow2.f32 %v1067_v61 }
 0x2b6   :  { %v1081_v0 = vmul.f32 1.442695, %v1052_v56  ;;  %v1102_v1 = vsel %vm990_vm2, %v9463_v55, 0.0 }
 0x2b7   :  { %v1077_v6 = vmul.f32 1.442695, %v1050_v3  ;;  %v1029_v42 = vpop.xlane.xlu0 %1028  ;;  %1103 = vadd.xlane.f32.xlu0 %v1102_v1 }
 0x2b8   :  { %v1023_v51 = vpop.xlane.xlu1 %1022  ;;  %8745 = vpow2.f32 %v1081_v0  ;;  %v1051_v8 = vsub.f32 %v9367_v14, %v1029_v42 }
 0x2b9   :  { %v1049_v28 = vsub.f32 %v9369_v15, %v1023_v51  ;;  %v9469_v62 = vpop.eup %8735  ;;  %8747 = vpow2.f32 %v1077_v6 }
 0x2ba   :  { %v1079_v5 = vmul.f32 1.442695, %v1051_v8  ;;  %v1114_v39 = vsel %vm990_vm2, %v9469_v62, 0.0 }
 0x2bb   :  { %v1075_v7 = vmul.f32 1.442695, %v1049_v28  ;;  %1115 = vadd.xlane.f32.xlu0 %v1114_v39  ;;  %v1038_v10 = vpop.xlane.xlu0 %1037 }
 0x2bc   :  { %8749 = vpow2.f32 %v1079_v5  ;;  %v1054_v38 = vsub.f32 %v9375_v21, %v1038_v10  ;;  %v9514_v39 = vpop.permute.xlu1 %2045 }
 0x2bd   :  { %v9474_v60 = vpop.eup %8737  ;;  %8751 = vpow2.f32 %v1075_v7 }
 0x2be   :  { %v9476_v61 = vpop.eup %8739  ;;  %v1085_v14 = vmul.f32 1.442695, %v1054_v38  ;;  %v1099_v15 = vsel %vm990_vm2, %v9474_v60, 0.0 }
 0x2bf   :  { %1100 = vadd.xlane.f32.xlu0 %v1099_v15  ;;  %v1108_v19 = vsel %vm990_vm2, %v9476_v61, 0.0 }
 0x2c0   :  { %8753 = vpow2.f32 %v1085_v14  ;;  %1109 = vadd.xlane.f32.xlu1 %v1108_v19  ;;  %v9518_v10 = vpop.permute.xlu1 %2140 }
 0x2c1   :  { %v9482_v57 = vpop.eup %8741 }
 0x2c2   :  { %v9484_v27 = vpop.eup %8743  ;;  %v1111_v21 = vsel %vm990_vm2, %v9482_v57, 0.0 }
 0x2c3   :  { %1112 = vadd.xlane.f32.xlu0 %v1111_v21  ;;  %v1105_v56 = vsel %vm990_vm2, %v9484_v27, 0.0  ;;  %v9549_v21 = vpop.permute.xlu0 %2142 }
 0x2c4   :  { %1106 = vadd.xlane.f32.xlu1 %v1105_v56 }
 0x2c5   :  { %v9490_v3 = vpop.eup %8745 }
 0x2c6   :  { %v9492_v0 = vpop.eup %8747  ;;  %v1126_v6 = vsel %vm990_vm2, %v9490_v3, 0.0 }
 0x2c7   :  { %1127 = vadd.xlane.f32.xlu0 %v1126_v6  ;;  %v1120_v1 = vsel %vm990_vm2, %v9492_v0, 0.0  ;;  %v9555_v56 = vpop.permute.xlu0 %2047 }
 0x2c8   :  { %1121 = vadd.xlane.f32.xlu1 %v1120_v1 }
 0x2c9   :  { %v9498_v42 = vpop.eup %8749 }
 0x2ca   :  { %v9500_v51 = vpop.eup %8751  ;;  %v1123_v8 = vsel %vm990_vm2, %v9498_v42, 0.0 }
 0x2cb   :  { %1124 = vadd.xlane.f32.xlu0 %v1123_v8  ;;  %v1117_v28 = vsel %vm990_vm2, %v9500_v51, 0.0  ;;  %v9559_v6 = vpop.permute.xlu0 %2233 }
 0x2cc   :  { %1118 = vadd.xlane.f32.xlu1 %v1117_v28 }
 0x2cd   :  { %v9506_v5 = vpop.eup %8753 }
 0x2ce   :  { %v1132_v7 = vsel %vm990_vm2, %v9506_v5, 0.0 }
 0x2cf   :  { %1133 = vadd.xlane.f32.xlu0 %v1132_v7 }
 0x2dd   :  { %2231 = vrot.lane.b32.xlu1 %v9138_v41, %s8983_s2 }
 0x2e5   :  { %2138 = vrot.lane.b32.xlu0 %v9276_v13, %s8984_s9 }
 0x2e9   :  { %2324 = vrot.lane.b32.xlu0 %v9144_v43, %s8983_s2 }
 0x2ed   :  { %2229 = vrot.lane.b32.xlu0 %v9252_v9, %s8984_s9 }
 0x2f0   :  { %v1035_v38 = vpop.xlane.xlu1 %1034 }
 0x2f1   :  { %v1053_v14 = vsub.f32 %v9397_v53, %v1035_v38  ;;  %2415 = vrot.lane.b32.xlu0 %v9157_v48, %s8983_s2 }
 0x2f3   :  { %v1083_v15 = vmul.f32 1.442695, %v1053_v14 }
 0x2f4   :  { %v9563_v1 = vpop.permute.xlu1 %2136 }
 0x2f5   :  { %8755 = vpow2.f32 %v1083_v15  ;;  %2320 = vrot.lane.b32.xlu0 %v9295_v20, %s8984_s9 }
 0x2f9   :  { %2506 = vrot.lane.b32.xlu0 %v9165_v52, %s8983_s2 }
 0x2fd   :  { %2411 = vrot.lane.b32.xlu0 %v9280_v16, %s8984_s9 }
 0x301   :  { %2500 = vrot.lane.b32.xlu0 %v9299_v23, %s8984_s9 }
 0x302   :  { %v9533_v19 = vpop.eup %8755 }
 0x303   :  { %v1129_v53 = vsel %vm990_vm2, %v9533_v19, 0.0 }
 0x304   :  { %1130 = vadd.xlane.f32.xlu1 %v1129_v53 }
 0x305   :  { %2767 = vrot.lane.b32.xlu0 %v9103_v24, %s8985_s10 }
 0x309   :  { %2854 = vrot.lane.b32.xlu0 %v9112_v29, %s8985_s10 }
 0x30d   :  { %3030 = vrot.lane.b32.xlu0 %v9128_v35, %s8985_s10 }
 0x315   :  { %2227 = vrot.lane.b32.xlu1 %v9147_v44, %s8984_s9 }
 0x319   :  { %2322 = vrot.lane.b32.xlu1 %v9149_v46, %s8983_s2 }
 0x31d   :  { %2318 = vrot.lane.b32.xlu1 %v9285_v17, %s8984_s9 }
 0x321   :  { %2413 = vrot.lane.b32.xlu1 %v9159_v50, %s8983_s2 }
 0x325   :  { %2409 = vrot.lane.b32.xlu1 %v9264_v11, %s8984_s9 }
 0x329   :  { %2504 = vrot.lane.b32.xlu1 %v9171_v54, %s8983_s2 }
 0x32d   :  { %2502 = vrot.lane.b32.xlu1 %v9312_v30, %s8984_s9 }
 0x330   :  { %v1092_v8 = vpop.xlane.xlu0 %1091 }
 0x331   :  { %2769 = vrot.lane.b32.xlu1 %v9101_v22, %s8985_s10  ;;  %8757 = vrcp.f32 %v1092_v8 }
 0x332   :  { %v1089_v28 = vpop.xlane.xlu1 %1088 }
 0x333   :  { %8759 = vrcp.f32 %v1089_v28 }
 0x335   :  { %2856 = vrot.lane.b32.xlu1 %v9107_v26, %s8985_s10 }
 0x338   :  { %v1098_v7 = vpop.xlane.xlu1 %1097 }
 0x339   :  { %2943 = vrot.lane.b32.xlu1 %v9120_v31, %s8985_s10  ;;  %8761 = vrcp.f32 %v1098_v7 }
 0x33c   :  { %v1095_v38 = vpop.xlane.xlu1 %1094 }
 0x33d   :  { %8763 = vrcp.f32 %v1095_v38  ;;  %2941 = vrot.lane.b32.xlu1 %v9122_v33, %s8985_s10 }
 0x33e   :  { %v8758_v14 = vpop.eup %8757 }
 0x33f   :  { %v1152_v28 = vmul.f32 %v8758_v14, %v9440_v34 }
 0x340   :  { %v8760_v15 = vpop.eup %8759  ;;  %v1104_v53 = vpop.xlane.xlu0 %1103 }
 0x341   :  { %3028 = vrot.lane.b32.xlu1 %v9130_v37, %s8985_s10  ;;  %v1151_v8 = vmul.f32 %v8760_v15, %v9444_v18  ;;  %8765 = vrcp.f32 %v1104_v53 }
 0x343   :  { %8220 = vmatprep.mubr.msk.f32.mxu0 %vm990_vm2, %v1151_v8 }
 0x344   :  { %v1116_v30 = vpop.xlane.xlu0 %1115  ;;  %8221 = vmatmul.mubr.msk.f32.vlgmr.msra.gmra.mxu0 %vm990_vm2, %v1152_v28 }
 0x345   :  { %8231 = vmatpush3.msra.mxu0 %v9307_v25 }
 0x346   :  { %8232 = vmatprep.subr.mxu0 %v9389_v36  ;;  %v8762_v38 = vpop.eup %8761 }
 0x347   :  { %8233 = vmatpush3.msra.mxu0 %v9389_v36  ;;  %v1154_v8 = vmul.f32 %v8762_v38, %v9451_v47 }
 0x348   :  { %8244 = vmatprep.subr.mxu0 %v9391_v40  ;;  %v1101_v7 = vpop.xlane.xlu0 %1100 }
 0x349   :  { %8767 = vrcp.f32 %v1101_v7  ;;  %v1110_v18 = vpop.xlane.xlu1 %1109 }
 0x34a   :  { %v8764_v15 = vpop.eup %8763  ;;  %8769 = vrcp.f32 %v1116_v30 }
 0x34b   :  { %v1153_v34 = vmul.f32 %v8764_v15, %v9455_v58  ;;  %8771 = vrcp.f32 %v1110_v18 }
 0x34c   :  { %v1113_v14 = vpop.xlane.xlu0 %1112 }
 0x34d   :  { %8773 = vrcp.f32 %v1113_v14  ;;  %v1107_v25 = vpop.xlane.xlu1 %1106  ;;  %8227 = vmatprep.mubr.msk.f32.mxu1 %vm990_vm2, %v1153_v34 }
 0x34e   :  { %8775 = vrcp.f32 %v1107_v25  ;;  %8228 = vmatmul.mubr.msk.f32.vlgmr.msra.gmra.mxu1 %vm990_vm2, %v1154_v8  ;;  %v8766_v58 = vpop.eup %8765 }
 0x34f   :  { %8238 = vmatpush3.msra.mxu1 %v9316_v32  ;;  %v1156_v32 = vmul.f32 %v8766_v58, %v9463_v55 }
 0x350   :  { %8239 = vmatprep.subr.mxu1 %v9395_v49  ;;  %v1128_v36 = vpop.xlane.xlu0 %1127 }
 0x351   :  { %8240 = vmatpush3.msra.mxu1 %v9395_v49  ;;  %v1122_v30 = vpop.xlane.xlu1 %1121  ;;  %8777 = vrcp.f32 %v1128_v36 }
 0x352   :  { %8251 = vmatprep.subr.mxu1 %v9403_v63  ;;  %8779 = vrcp.f32 %v1122_v30  ;;  %v11071_v30 = vld [vmem:[#allocation25_spill] sm:$0xff] }
 0x354   :  { %v1125_v47 = vpop.xlane.xlu0 %1124 }
 0x355   :  { %8781 = vrcp.f32 %v1125_v47  ;;  %v1119_v53 = vpop.xlane.xlu1 %1118 }
 0x356   :  { %v8768_v28 = vpop.eup %8767  ;;  %8783 = vrcp.f32 %v1119_v53 }
 0x357   :  { %v1155_v7 = vmul.f32 %v8768_v28, %v9474_v60  ;;  %v8770_v38 = vpop.eup %8769 }
 0x358   :  { %v8772_v18 = vpop.eup %8771  ;;  %v1160_v60 = vmul.f32 %v8770_v38, %v9469_v62 }
 0x359   :  { %8234 = vmatprep.mubr.msk.f32.mxu0 %vm990_vm2, %v1155_v7  ;;  %v1158_v55 = vmul.f32 %v8772_v18, %v9476_v61  ;;  %v2232_v58 = vpop.permute.xlu1 %2231 }
 0x35a   :  { %v8774_v49 = vpop.eup %8773  ;;  %8235 = vmatmul.mubr.msk.f32.vlgmr.msra.gmra.mxu0 %vm990_vm2, %v1156_v32 }
 0x35b   :  { %v8776_v15 = vpop.eup %8775  ;;  %8245 = vmatpush3.msra.mxu0 %v9391_v40  ;;  %v1159_v34 = vmul.f32 %v8774_v49, %v9482_v57  ;;  %v1134_v57 = vpop.xlane.xlu0 %1133 }
 0x35c   :  { %8246 = vmatprep.subr.mxu0 %v9393_v45  ;;  %v1157_v14 = vmul.f32 %v8776_v15, %v9484_v27  ;;  %v11064_v27 = vld [vmem:[#allocation16_spill] sm:$0xff]  ;;  %8785 = vrcp.f32 %v1134_v57 }
 0x35d   :  { %8247 = vmatpush3.msra.mxu0 %v9393_v45  ;;  %8248 = vmatprep.mubr.msk.f32.mxu0 %vm990_vm2, %v1159_v34 }
 0x35e   :  { %8241 = vmatprep.mubr.msk.f32.mxu1 %vm990_vm2, %v1157_v14  ;;  %8258 = vmatprep.subr.mxu0 %v9399_v59  ;;  %v8778_v40 = vpop.eup %8777  ;;  %v11072_v14 = vld [vmem:[#allocation23_spill] sm:$0xff] }
 0x35f   :  { %8242 = vmatmul.mubr.msk.f32.vlgmr.msra.gmra.mxu1 %vm990_vm2, %v1158_v55  ;;  %8249 = vmatmul.mubr.msk.f32.vlgmr.msra.gmra.mxu0 %vm990_vm2, %v1160_v60  ;;  %v8780_v45 = vpop.eup %8779  ;;  %v1164_v8 = vmul.f32 %v8778_v40, %v9490_v3  ;;  %v11066_v3 = vld [vmem:[#allocation26_spill] sm:$0xff]  ;;  %v11073_v55 = vld [vmem:[#allocation21_spill] sm:$0xff]  ;;  %v11074_v40 = vld [vmem:[#allocation24_spill] sm:$0xff] }
 0x360   :  { %8252 = vmatpush3.msra.mxu1 %v9403_v63  ;;  %8259 = vmatpush3.msra.mxu0 %v9399_v59  ;;  %v1162_v25 = vmul.f32 %v8780_v45, %v9492_v0  ;;  %v11068_v0 = vld [vmem:[#allocation18_spill] sm:$0xff] }
 0x361   :  { %8253 = vmatprep.subr.mxu1 %v9407_v4  ;;  %8260 = vmatprep.subr.mxu0 %v9405_v2 }
 0x362   :  { %v8782_v61 = vpop.eup %8781  ;;  %8254 = vmatpush3.msra.mxu1 %v9407_v4  ;;  %8261 = vmatpush3.msra.mxu0 %v9405_v2  ;;  %v11065_v2 = vld [vmem:[#allocation17_spill] sm:$0xff]  ;;  %v2139_v4 = vpop.permute.xlu0 %2138 }
 0x363   :  { %v8784_v62 = vpop.eup %8783  ;;  %8265 = vmatprep.subr.mxu1 %v9411_v12  ;;  %8272 = vmatprep.subr.msk.mxu0 %vm267_vm1, %v11064_v27  ;;  %v1163_v63 = vmul.f32 %v8782_v61, %v9498_v42  ;;  %v11067_v42 = vld [vmem:[#allocation19_spill] sm:$0xff] }
 0x364   :  { %v1161_v59 = vmul.f32 %v8784_v62, %v9500_v51  ;;  %v11069_v51 = vld [vmem:[#allocation22_spill] sm:$0xff] }
 0x365   :  { %8262 = vmatprep.mubr.msk.f32.mxu0 %vm990_vm2, %v1163_v63 }
 0x366   :  { %8255 = vmatprep.mubr.msk.f32.mxu1 %vm990_vm2, %v1161_v59  ;;  %8263 = vmatmul.mubr.msk.f32.vlgmr.msra.gmra.mxu0 %vm990_vm2, %v1164_v8  ;;  %v2325_v36 = vpop.permute.xlu0 %2324 }
 0x367   :  { %8256 = vmatmul.mubr.msk.f32.vlgmr.msra.gmra.mxu1 %vm990_vm2, %v1162_v25  ;;  %8273 = vmatpush3.xpose.msk.msra.mxu0 %vm267_vm1, %v11064_v27 }
 0x368   :  { %8266 = vmatpush3.msra.mxu1 %v9411_v12  ;;  %8274 = vmatprep.subr.msk.mxu0 %vm267_vm1, %v11065_v2  ;;  %v11070_v12 = vld [vmem:[#allocation20_spill] sm:$0xff] }
 0x369   :  { %8267 = vmatprep.subr.mxu1 %v11066_v3  ;;  %8276 = vmatprep.mubr.msk.f32.mxu0 %vm267_vm1, %v11067_v42  ;;  %v8786_v38 = vpop.eup %8785 }
 0x36a   :  { %8268 = vmatpush3.msra.mxu1 %v11066_v3  ;;  %v2230_v47 = vpop.permute.xlu0 %2229  ;;  %v1166_v34 = vmul.f32 %v8786_v38, %v9506_v5 }
 0x36b   :  { %8279 = vmatprep.subr.msk.mxu1 %vm267_vm1, %v11068_v0  ;;  %8275 = vmatpush3.xpose.msk.msra.mxu0 %vm267_vm1, %v11065_v2 }
 0x36c   :  { %8286 = vmatprep.subr.msk.mxu0 %vm267_vm1, %v11069_v51 }
 0x36e   :  { %8277 = vmatmul.mubr.msk.f32.vlgmr.msra.gmra.mxu0 %vm267_vm1, %v11070_v12 }
 0x36f   :  { %8287 = vmatpush3.xpose.msk.msra.mxu0 %vm267_vm1, %v11069_v51  ;;  %8290 = vmatprep.mubr.msk.f32.mxu0 %vm267_vm1, %v9514_v39  ;;  %v2416_v39 = vpop.permute.xlu0 %2415 }
 0x370   :  { %8288 = vmatprep.subr.msk.mxu0 %vm267_vm1, %v11071_v30 }
 0x373   :  { %8289 = vmatpush3.xpose.msk.msra.mxu0 %vm267_vm1, %v11071_v30  ;;  %v2321_v7 = vpop.permute.xlu0 %2320 }
 0x374   :  { %8300 = vmatprep.subr.msk.mxu0 %vm267_vm1, %v9559_v6 }
 0x376   :  { %8291 = vmatmul.mubr.msk.f32.vlgmr.msra.gmra.mxu0 %vm267_vm1, %v9555_v56 }
 0x377   :  { %8301 = vmatpush3.xpose.msk.msra.mxu0 %vm267_vm1, %v9559_v6  ;;  %v2507_v18 = vpop.permute.xlu0 %2506 }
 0x378   :  { %8302 = vmatprep.subr.msk.mxu0 %vm267_vm1, %v2232_v58 }
 0x37b   :  { %8303 = vmatpush3.xpose.msk.msra.mxu0 %vm267_vm1, %v2232_v58  ;;  %v2412_v60 = vpop.permute.xlu0 %2411 }
 0x37c   :  { %8314 = vmatprep.subr.msk.mxu0 %vm267_vm1, %v2416_v39 }
 0x37f   :  { %v2501_v61 = vpop.permute.xlu0 %2500 }
 0x383   :  { %v2768_v57 = vpop.permute.xlu0 %2767 }
 0x38d   :  { %v1131_v53 = vpop.xlane.xlu1 %1130 }
 0x38e   :  { %8787 = vrcp.f32 %v1131_v53 }
 0x391   :  { %v2228_v28 = vpop.permute.xlu1 %2227 }
 0x392   :  { %8304 = vmatprep.mubr.msk.f32.mxu0 %vm267_vm1, %v2228_v28 }
 0x393   :  { %8305 = vmatmul.mubr.msk.f32.vlgmr.msra.gmra.mxu0 %vm267_vm1, %v2230_v47 }
 0x394   :  { %8315 = vmatpush3.xpose.msk.msra.mxu0 %vm267_vm1, %v2416_v39 }
 0x395   :  { %v2323_v56 = vpop.permute.xlu1 %2322 }
 0x399   :  { %v2319_v6 = vpop.permute.xlu1 %2318 }
 0x39b   :  { %v8788_v32 = vpop.eup %8787 }
 0x39c   :  { %v1165_v49 = vmul.f32 %v8788_v32, %v9533_v19 }
 0x39d   :  { %v2414_v15 = vpop.permute.xlu1 %2413 }
 0x39e   :  { %8269 = vmatprep.mubr.msk.f32.mxu1 %vm990_vm2, %v1165_v49  ;;  %8316 = vmatprep.subr.msk.mxu0 %vm267_vm1, %v2414_v15 }
 0x39f   :  { %8270 = vmatmul.mubr.msk.f32.vlgmr.msra.gmra.mxu1 %vm990_vm2, %v1166_v34  ;;  %8317 = vmatpush3.xpose.msk.msra.mxu0 %vm267_vm1, %v2414_v15 }
 0x3a0   :  { %8280 = vmatpush3.xpose.msk.msra.mxu1 %vm267_vm1, %v11068_v0  ;;  %8283 = vmatprep.mubr.msk.f32.mxu1 %vm267_vm1, %v11072_v14 }
 0x3a1   :  { %8281 = vmatprep.subr.msk.mxu1 %vm267_vm1, %v11073_v55  ;;  %v2410_v19 = vpop.permute.xlu1 %2409 }
 0x3a2   :  { %8318 = vmatprep.mubr.msk.f32.mxu0 %vm267_vm1, %v2410_v19 }
 0x3a3   :  { %8319 = vmatmul.mubr.msk.f32.vlgmr.msra.gmra.mxu0 %vm267_vm1, %v2412_v60 }
 0x3a4   :  { %8282 = vmatpush3.xpose.msk.msra.mxu1 %vm267_vm1, %v11073_v55 }
 0x3a5   :  { %8293 = vmatprep.subr.msk.mxu1 %vm267_vm1, %v9549_v21  ;;  %v2505_v5 = vpop.permute.xlu1 %2504 }
 0x3a7   :  { %8284 = vmatmul.mubr.msk.f32.vlgmr.msra.gmra.mxu1 %vm267_vm1, %v11074_v40 }
 0x3a8   :  { %8294 = vmatpush3.xpose.msk.msra.mxu1 %vm267_vm1, %v9549_v21  ;;  %8297 = vmatprep.mubr.msk.f32.mxu1 %vm267_vm1, %v9563_v1  ;;  %v2855_v1 = vpop.permute.xlu0 %2854 }
 0x3a9   :  { %8295 = vmatprep.subr.msk.mxu1 %vm267_vm1, %v9518_v10  ;;  %v2503_v45 = vpop.permute.xlu1 %2502 }
 0x3ac   :  { %8296 = vmatpush3.xpose.msk.msra.mxu1 %vm267_vm1, %v9518_v10  ;;  %v9705_v27 = vpop.permute.xlu0 %3030 }
 0x3ad   :  { %8307 = vmatprep.subr.msk.mxu1 %vm267_vm1, %v2325_v36  ;;  %v2770_v62 = vpop.permute.xlu1 %2769 }
 0x3ae   :  { %8328 = vmatprep.subr.mxu0 %v2770_v62 }
 0x3af   :  { %8298 = vmatmul.mubr.msk.f32.vlgmr.msra.gmra.mxu1 %vm267_vm1, %v2139_v4  ;;  %8329 = vmatpush3.msra.mxu0 %v2770_v62 }
 0x3b0   :  { %8308 = vmatpush3.xpose.msk.msra.mxu1 %vm267_vm1, %v2325_v36  ;;  %8311 = vmatprep.mubr.msk.f32.mxu1 %vm267_vm1, %v2319_v6 }
 0x3b1   :  { %8309 = vmatprep.subr.msk.mxu1 %vm267_vm1, %v2323_v56  ;;  %8330 = vmatprep.subr.mxu0 %v2768_v57  ;;  %v2857_v21 = vpop.permute.xlu1 %2856 }
 0x3b2   :  { %8331 = vmatpush3.msra.mxu0 %v2768_v57 }
 0x3b4   :  { %8310 = vmatpush3.xpose.msk.msra.mxu1 %vm267_vm1, %v2323_v56 }
 0x3b5   :  { %8321 = vmatprep.subr.msk.mxu1 %vm267_vm1, %v2507_v18  ;;  %v9696_v10 = vpop.permute.xlu1 %2943 }
 0x3b6   :  { %8342 = vmatprep.subr.mxu0 %v9696_v10 }
 0x3b7   :  { %8312 = vmatmul.mubr.msk.f32.vlgmr.msra.gmra.mxu1 %vm267_vm1, %v2321_v7 }
 0x3b8   :  { %8322 = vmatpush3.xpose.msk.msra.mxu1 %vm267_vm1, %v2507_v18  ;;  %8325 = vmatprep.mubr.msk.f32.mxu1 %vm267_vm1, %v2501_v61 }
 0x3b9   :  { %8323 = vmatprep.subr.msk.mxu1 %vm267_vm1, %v2505_v5 }
 0x3bc   :  { %8324 = vmatpush3.xpose.msk.msra.mxu1 %vm267_vm1, %v2505_v5 }
 0x3bd   :  { %8335 = vmatprep.subr.mxu1 %v2857_v21 }
 0x3bf   :  { %8326 = vmatmul.mubr.msk.f32.vlgmr.msra.gmra.mxu1 %vm267_vm1, %v2503_v45 }
 0x3c0   :  { %8336 = vmatpush3.msra.mxu1 %v2857_v21 }
 0x3c1   :  { %8337 = vmatprep.subr.mxu1 %v2855_v1 }
 0x3c2   :  { %8338 = vmatpush3.msra.mxu1 %v2855_v1 }
 0x3c3   :  { %8349 = vmatprep.subr.mxu1 %v9705_v27 }
 0x404   :  { %v9708_v63 = vpop.f32.mrf.mxu0 }
 0x405   :  { %11075 = vst [vmem:[#allocation16_spill] sm:$0xff] %v9708_v63 }
 0x406   :  { %v9710_v59 = vpop.f32.mrf.mxu0 }
 0x407   :  { %11076 = vst [vmem:[#allocation17_spill] sm:$0xff] %v9710_v59 }
 0x40e   :  { %v9737_v53 = vpop.f32.mrf.mxu1 }
 0x40f   :  { %11081 = vst [vmem:[#allocation20_spill] sm:$0xff] %v9737_v53 }
 0x410   :  { %v9739_v28 = vpop.f32.mrf.mxu1 }
 0x411   :  { %11082 = vst [vmem:[#allocation25_spill] sm:$0xff] %v9739_v28 }
 0x41a   :  { %v9712_v8 = vpop.f32.mrf.mxu0 }
 0x41b   :  { %11077 = vst [vmem:[#allocation26_spill] sm:$0xff] %v9712_v8 }
 0x41c   :  { %v9714_v25 = vpop.f32.mrf.mxu0 }
 0x41d   :  { %11078 = vst [vmem:[#allocation19_spill] sm:$0xff] %v9714_v25 }
 0x41f   :  { %v9716_v2 = vpop.f32.mrf.mxu0  ;;  %v9743_v7 = vpop.f32.mrf.mxu1 }
 0x421   :  { %v9718_v4 = vpop.f32.mrf.mxu0  ;;  %v9749_v32 = vpop.f32.mrf.mxu1 }
 0x426   :  { %v9720_v3 = vpop.f32.mrf.mxu0 }
 0x427   :  { %11079 = vst [vmem:[#allocation18_spill] sm:$0xff] %v9720_v3  ;;  %v9751_v18 = vpop.f32.mrf.mxu1 }
 0x428   :  { %v9722_v42 = vpop.f32.mrf.mxu0  ;;  %11083 = vst [vmem:[#allocation23_spill] sm:$0xff] %v9751_v18 }
 0x429   :  { %11080 = vst [vmem:[#allocation22_spill] sm:$0xff] %v9722_v42  ;;  %v9753_v49 = vpop.f32.mrf.mxu1 }
 0x42a   :  { %11084 = vst [vmem:[#allocation21_spill] sm:$0xff] %v9753_v49 }
 0x42e   :  { %v9724_v0 = vpop.f32.mrf.mxu0 }
 0x42f   :  { %v2594_v51 = vsel %vm990_vm2, %v9724_v0, -inf }
 0x430   :  { %2595 = vmax.xlane.f32.xlu1 %v2594_v51  ;;  %v9728_v12 = vpop.f32.mrf.mxu0 }
 0x431   :  { %v2591_v36 = vsel %vm990_vm2, %v9728_v12, -inf }
 0x432   :  { %2592 = vmax.xlane.f32.xlu0 %v2591_v36 }
 0x436   :  { %v8292_v30 = vpop.f32.mrf.mxu0 }
 0x437   :  { %v2606_v47 = vsel %vm990_vm2, %v8292_v30, -inf }
 0x438   :  { %2607 = vmax.xlane.f32.xlu0 %v2606_v47  ;;  %v9733_v58 = vpop.f32.mrf.mxu0 }
 0x439   :  { %v2603_v39 = vsel %vm990_vm2, %v9733_v58, -inf }
 0x43a   :  { %2604 = vmax.xlane.f32.xlu1 %v2603_v39  ;;  %v11087_v39 = vld [vmem:[#allocation3_spill] sm:$0xff] }
 0x453   :  { %v9741_v56 = vpop.f32.mrf.mxu0 }
 0x454   :  { %v2618_v19 = vsel %vm990_vm2, %v9741_v56, -inf }
 0x455   :  { %v9745_v6 = vpop.f32.mrf.mxu0 }
 0x456   :  { %v2615_v38 = vsel %vm990_vm2, %v9745_v6, -inf }
 0x457   :  { %2616 = vmax.xlane.f32.xlu1 %v2615_v38 }
 0x45f   :  { %v9755_v15 = vpop.f32.mrf.mxu1 }
 0x460   :  { %11085 = vst [vmem:[#allocation24_spill] sm:$0xff] %v9755_v15 }
 0x461   :  { %v9757_v34 = vpop.f32.mrf.mxu1 }
 0x462   :  { %11086 = vst [vmem:[#allocation27_spill] sm:$0xff] %v9757_v34 }
 0x463   :  { %v9764_v5 = vpop.f32.mrf.mxu0 }
 0x464   :  { %v2630_v51 = vsel %vm990_vm2, %v9764_v5, -inf }
 0x465   :  { %v9774_v57 = vpop.f32.mrf.mxu0 }
 0x466   :  { %v2627_v1 = vsel %vm990_vm2, %v9774_v57, -inf }
 0x467   :  { %v8285_v14 = vpop.f32.mrf.mxu1 }
 0x468   :  { %v2600_v55 = vsel %vm990_vm2, %v8285_v14, -inf }
 0x469   :  { %2601 = vmax.xlane.f32.xlu0 %v2600_v55  ;;  %v9762_v60 = vpop.f32.mrf.mxu1 }
 0x46a   :  { %v2597_v45 = vsel %vm990_vm2, %v9762_v60, -inf }
 0x46d   :  { %2619 = vmax.xlane.f32.xlu0 %v2618_v19 }
 0x46f   :  { %v9766_v40 = vpop.f32.mrf.mxu1 }
 0x470   :  { %v2612_v21 = vsel %vm990_vm2, %v9766_v40, -inf }
 0x471   :  { %v9770_v61 = vpop.f32.mrf.mxu1  ;;  %2598 = vmax.xlane.f32.xlu0 %v2597_v45 }
 0x472   :  { %v2609_v62 = vsel %vm990_vm2, %v9770_v61, -inf }
 0x473   :  { %2610 = vmax.xlane.f32.xlu1 %v2609_v62  ;;  %v9800_v62 = vpop.permute.xlu1 %2941 }
 0x475   :  { %2613 = vmax.xlane.f32.xlu0 %v2612_v21 }
 0x477   :  { %2628 = vmax.xlane.f32.xlu1 %v2627_v1  ;;  %v9782_v36 = vpop.f32.mrf.mxu1  ;;  %v9804_v21 = vpop.permute.xlu1 %3028 }
 0x478   :  { %v2624_v47 = vsel %vm990_vm2, %v9782_v36, -inf }
 0x479   :  { %2631 = vmax.xlane.f32.xlu0 %v2630_v51  ;;  %v9790_v38 = vpop.f32.mrf.mxu1 }
 0x47a   :  { %v2621_v55 = vsel %vm990_vm2, %v9790_v38, -inf }
 0x47d   :  { %2625 = vmax.xlane.f32.xlu0 %v2624_v47 }
 0x47f   :  { %v9794_v19 = vpop.f32.mrf.mxu1 }
 0x480   :  { %v2636_v45 = vsel %vm990_vm2, %v9794_v19, -inf }
 0x481   :  { %v9809_v53 = vpop.f32.mrf.mxu1 }
 0x482   :  { %v2633_v28 = vsel %vm990_vm2, %v9809_v53, -inf }
 0x488   :  { %3115 = vrot.lane.b32.xlu1 %v9138_v41, %s8985_s10 }
 0x493   :  { %3117 = vrot.lane.b32.xlu0 %v11087_v39, %s8985_s10 }
 0x4ac   :  { %2622 = vmax.xlane.f32.xlu1 %v2621_v55 }
 0x4b2   :  { %2637 = vmax.xlane.f32.xlu0 %v2636_v45 }
 0x4b9   :  { %v2596_v1 = vpop.xlane.xlu1 %2595 }
 0x4ba   :  { %v2640_v47 = vsub.f32 %v9724_v0, %v2596_v1 }
 0x4bb   :  { %v2593_v51 = vpop.xlane.xlu0 %2592 }
 0x4bc   :  { %v2657_v8 = vmul.f32 1.442695, %v2640_v47 }
 0x4bd   :  { %3202 = vrot.lane.b32.xlu1 %v9149_v46, %s8985_s10 }
 0x4be   :  { %8789 = vpow2.f32 %v2657_v8 }
 0x4c1   :  { %v2608_v55 = vpop.xlane.xlu0 %2607 }
 0x4c2   :  { %v2644_v45 = vsub.f32 %v8292_v30, %v2608_v55 }
 0x4c4   :  { %v2665_v25 = vmul.f32 1.442695, %v2644_v45  ;;  %v2639_v45 = vsub.f32 %v9728_v12, %v2593_v51 }
 0x4c6   :  { %8791 = vpow2.f32 %v2665_v25  ;;  %v2655_v42 = vmul.f32 1.442695, %v2639_v45 }
 0x4c8   :  { %3204 = vrot.lane.b32.xlu0 %v9144_v43, %s8985_s10 }
 0x4cb   :  { %v9813_v63 = vpop.eup %8789 }
 0x4cc   :  { %3291 = vrot.lane.b32.xlu0 %v9157_v48, %s8985_s10  ;;  %v2690_v59 = vsel %vm990_vm2, %v9813_v63, 0.0 }
 0x4d3   :  { %v9817_v15 = vpop.eup %8791 }
 0x4d4   :  { %v2702_v0 = vsel %vm990_vm2, %v9817_v15, 0.0 }
 0x4e1   :  { %2634 = vmax.xlane.f32.xlu1 %v2633_v28 }
 0x4eb   :  { %2691 = vadd.xlane.f32.xlu0 %v2690_v59  ;;  %v2605_v59 = vpop.xlane.xlu1 %2604 }
 0x4ef   :  { %2703 = vadd.xlane.f32.xlu0 %v2702_v0  ;;  %v2643_v0 = vsub.f32 %v9733_v58, %v2605_v59 }
 0x4f2   :  { %v2602_v8 = vpop.xlane.xlu0 %2601  ;;  %3289 = vrot.lane.b32.xlu1 %v9159_v50, %s8985_s10 }
 0x4f3   :  { %v2642_v25 = vsub.f32 %v8285_v14, %v2602_v8 }
 0x4f5   :  { %v2661_v30 = vmul.f32 1.442695, %v2642_v25  ;;  %v2617_v25 = vpop.xlane.xlu1 %2616 }
 0x4f6   :  { %v2620_v1 = vpop.xlane.xlu0 %2619 }
 0x4f7   :  { %8793 = vpow2.f32 %v2661_v30  ;;  %v2648_v28 = vsub.f32 %v9741_v56, %v2620_v1  ;;  %v2663_v56 = vmul.f32 1.442695, %v2643_v0 }
 0x4f9   :  { %v2673_v47 = vmul.f32 1.442695, %v2648_v28 }
 0x4fa   :  { %v2599_v55 = vpop.xlane.xlu0 %2598 }
 0x4fb   :  { %8795 = vpow2.f32 %v2673_v47  ;;  %v2641_v30 = vsub.f32 %v9762_v60, %v2599_v55 }
 0x4fe   :  { %v2614_v34 = vpop.xlane.xlu0 %2613 }
 0x4ff   :  { %v2646_v3 = vsub.f32 %v9766_v40, %v2614_v34 }
 0x501   :  { %v2669_v18 = vmul.f32 1.442695, %v2646_v3 }
 0x502   :  { %v2632_v49 = vpop.xlane.xlu0 %2631 }
 0x503   :  { %8797 = vpow2.f32 %v2669_v18  ;;  %v2652_v14 = vsub.f32 %v9764_v5, %v2632_v49  ;;  %v2611_v18 = vpop.xlane.xlu1 %2610  ;;  %v2647_v49 = vsub.f32 %v9745_v6, %v2617_v25  ;;  %v2659_v5 = vmul.f32 1.442695, %v2641_v30 }
 0x504   :  { %v9828_v8 = vpop.eup %8793  ;;  %8799 = vpow2.f32 %v2655_v42  ;;  %v2645_v1 = vsub.f32 %v9770_v61, %v2611_v18 }
 0x505   :  { %v2681_v12 = vmul.f32 1.442695, %v2652_v14  ;;  %v2696_v51 = vsel %vm990_vm2, %v9828_v8, 0.0  ;;  %v2671_v60 = vmul.f32 1.442695, %v2647_v49 }
 0x506   :  { %v2626_v34 = vpop.xlane.xlu0 %2625  ;;  %2697 = vadd.xlane.f32.xlu0 %v2696_v51 }
 0x507   :  { %8801 = vpow2.f32 %v2681_v12  ;;  %v2650_v3 = vsub.f32 %v9782_v36, %v2626_v34  ;;  %v2629_v28 = vpop.xlane.xlu1 %2628  ;;  %v2667_v36 = vmul.f32 1.442695, %v2645_v1 }
 0x508   :  { %v9834_v58 = vpop.eup %8795  ;;  %8803 = vpow2.f32 %v2663_v56  ;;  %v2651_v55 = vsub.f32 %v9774_v57, %v2629_v28 }
 0x509   :  { %v2677_v40 = vmul.f32 1.442695, %v2650_v3  ;;  %v2714_v42 = vsel %vm990_vm2, %v9834_v58, 0.0 }
 0x50a   :  { %2715 = vadd.xlane.f32.xlu0 %v2714_v42  ;;  %v2679_v14 = vmul.f32 1.442695, %v2651_v55  ;;  %v9880_v28 = vpop.permute.xlu0 %3117 }
 0x50b   :  { %8805 = vpow2.f32 %v2677_v40  ;;  %v9877_v42 = vpop.permute.xlu1 %3115 }
 0x50c   :  { %8807 = vpow2.f32 %v2659_v5 }
 0x50d   :  { %8809 = vpow2.f32 %v2671_v60 }
 0x50e   :  { %8811 = vpow2.f32 %v2667_v36 }
 0x50f   :  { %8813 = vpow2.f32 %v2679_v14 }
 0x510   :  { %v9840_v47 = vpop.eup %8797 }
 0x511   :  { %v2708_v6 = vsel %vm990_vm2, %v9840_v47, 0.0  ;;  %v9845_v45 = vpop.eup %8799 }
 0x512   :  { %2709 = vadd.xlane.f32.xlu0 %v2708_v6  ;;  %v2687_v61 = vsel %vm990_vm2, %v9845_v45, 0.0 }
 0x514   :  { %v9847_v59 = vpop.eup %8801 }
 0x515   :  { %v9849_v0 = vpop.eup %8803  ;;  %v2726_v56 = vsel %vm990_vm2, %v9847_v59, 0.0 }
 0x516   :  { %2688 = vadd.xlane.f32.xlu1 %v2687_v61  ;;  %2727 = vadd.xlane.f32.xlu0 %v2726_v56  ;;  %v2699_v30 = vsel %vm990_vm2, %v9849_v0, 0.0 }
 0x518   :  { %v9855_v57 = vpop.eup %8805 }
 0x519   :  { %v2720_v25 = vsel %vm990_vm2, %v9855_v57, 0.0  ;;  %v9861_v12 = vpop.eup %8807 }
 0x51a   :  { %2721 = vadd.xlane.f32.xlu0 %v2720_v25  ;;  %2700 = vadd.xlane.f32.xlu1 %v2699_v30  ;;  %v2693_v51 = vsel %vm990_vm2, %v9861_v12, 0.0  ;;  %v9865_v34 = vpop.eup %8809 }
 0x51b   :  { %v2711_v3 = vsel %vm990_vm2, %v9865_v34, 0.0  ;;  %v9869_v18 = vpop.eup %8811 }
 0x51c   :  { %v2705_v49 = vsel %vm990_vm2, %v9869_v18, 0.0  ;;  %v9873_v5 = vpop.eup %8813 }
 0x51d   :  { %v2723_v40 = vsel %vm990_vm2, %v9873_v5, 0.0 }
 0x51e   :  { %2694 = vadd.xlane.f32.xlu1 %v2693_v51 }
 0x522   :  { %2712 = vadd.xlane.f32.xlu1 %v2711_v3 }
 0x526   :  { %2706 = vadd.xlane.f32.xlu1 %v2705_v49  ;;  %v11088_v49 = vld [vmem:[#allocation4_spill] sm:$0xff] }
 0x52a   :  { %2724 = vadd.xlane.f32.xlu1 %v2723_v40  ;;  %v11089_v40 = vld [vmem:[#allocation5_spill] sm:$0xff] }
 0x535   :  { %v2623_v60 = vpop.xlane.xlu1 %2622 }
 0x536   :  { %v2649_v1 = vsub.f32 %v9790_v38, %v2623_v60 }
 0x538   :  { %v2675_v36 = vmul.f32 1.442695, %v2649_v1  ;;  %v11090_v1 = vld [vmem:[#allocation8_spill] sm:$0xff] }
 0x539   :  { %v9893_v30 = vpop.permute.xlu1 %3202 }
 0x53a   :  { %8815 = vpow2.f32 %v2675_v36 }
 0x53b   :  { %v2638_v55 = vpop.xlane.xlu0 %2637 }
 0x53c   :  { %v2654_v6 = vsub.f32 %v9794_v19, %v2638_v55 }
 0x53e   :  { %v2685_v14 = vmul.f32 1.442695, %v2654_v6 }
 0x53f   :  { %v9918_v36 = vpop.permute.xlu0 %3204 }
 0x540   :  { %8817 = vpow2.f32 %v2685_v14  ;;  %v11091_v14 = vld [vmem:[#allocation2_spill] sm:$0xff] }
 0x543   :  { %v9926_v55 = vpop.permute.xlu0 %3291 }
 0x547   :  { %v9883_v61 = vpop.eup %8815 }
 0x548   :  { %v2717_v56 = vsel %vm990_vm2, %v9883_v61, 0.0 }
 0x549   :  { %2718 = vadd.xlane.f32.xlu1 %v2717_v56 }
 0x54d   :  { %v9887_v25 = vpop.eup %8817 }
 0x54e   :  { %v2732_v38 = vsel %vm990_vm2, %v9887_v25, 0.0 }
 0x54f   :  { %2733 = vadd.xlane.f32.xlu0 %v2732_v38 }
 0x565   :  { %3378 = vrot.lane.b32.xlu0 %v9165_v52, %s8985_s10 }
 0x569   :  { %3855 = vrot.lane.b32.xlu0 %v9101_v22, %s8986_s11 }
 0x56a   :  { %v2635_v19 = vpop.xlane.xlu1 %2634 }
 0x56b   :  { %v2653_v51 = vsub.f32 %v9809_v53, %v2635_v19  ;;  %v11092_v19 = vld [vmem:[#allocation6_spill] sm:$0xff] }
 0x56d   :  { %v2683_v3 = vmul.f32 1.442695, %v2653_v51  ;;  %3946 = vrot.lane.b32.xlu0 %v9107_v26, %s8986_s11 }
 0x56e   :  { %v9936_v56 = vpop.permute.xlu1 %3289 }
 0x56f   :  { %8819 = vpow2.f32 %v2683_v3 }
 0x571   :  { %3851 = vrot.lane.b32.xlu0 %v11088_v49, %s8987_s12 }
 0x574   :  { %v2692_v6 = vpop.xlane.xlu0 %2691 }
 0x575   :  { %4037 = vrot.lane.b32.xlu0 %v9120_v31, %s8986_s11  ;;  %8821 = vrcp.f32 %v2692_v6 }
 0x578   :  { %v2704_v38 = vpop.xlane.xlu0 %2703 }
 0x579   :  { %3942 = vrot.lane.b32.xlu0 %v11089_v40, %s8987_s12 }
 0x57c   :  { %v9906_v60 = vpop.eup %8819 }
 0x57d   :  { %4128 = vrot.lane.b32.xlu0 %v9128_v35, %s8986_s11  ;;  %v2729_v53 = vsel %vm990_vm2, %v9906_v60, 0.0 }
 0x57e   :  { %2730 = vadd.xlane.f32.xlu1 %v2729_v53 }
 0x581   :  { %4033 = vrot.lane.b32.xlu0 %v11090_v1, %s8987_s12 }
 0x585   :  { %4219 = vrot.lane.b32.xlu0 %v11087_v39, %s8986_s11 }
 0x589   :  { %4124 = vrot.lane.b32.xlu0 %v9276_v13, %s8987_s12 }
 0x58d   :  { %4310 = vrot.lane.b32.xlu0 %v9144_v43, %s8986_s11 }
 0x58f   :  { %3376 = vrot.lane.b32.xlu1 %v9171_v54, %s8985_s10  ;;  %v2698_v3 = vpop.xlane.xlu0 %2697 }
 0x591   :  { %4215 = vrot.lane.b32.xlu0 %v9252_v9, %s8987_s12  ;;  %v11093_v9 = vld [vmem:[#allocation7_spill] sm:$0xff] }
 0x593   :  { %3853 = vrot.lane.b32.xlu1 %v9103_v24, %s8986_s11 }
 0x595   :  { %4401 = vrot.lane.b32.xlu0 %v9157_v48, %s8986_s11 }
 0x597   :  { %3849 = vrot.lane.b32.xlu1 %v11091_v14, %s8987_s12 }
 0x599   :  { %4306 = vrot.lane.b32.xlu0 %v9295_v20, %s8987_s12  ;;  %v2716_v20 = vpop.xlane.xlu0 %2715 }
 0x59b   :  { %3944 = vrot.lane.b32.xlu1 %v9112_v29, %s8986_s11 }
 0x59d   :  { %4492 = vrot.lane.b32.xlu0 %v9165_v52, %s8986_s11 }
 0x59f   :  { %3940 = vrot.lane.b32.xlu1 %v11092_v19, %s8987_s12  ;;  %v2689_v51 = vpop.xlane.xlu1 %2688 }
 0x5a0   :  { %8823 = vrcp.f32 %v2689_v51  ;;  %v2710_v51 = vpop.xlane.xlu0 %2709 }
 0x5a1   :  { %4397 = vrot.lane.b32.xlu0 %v9280_v16, %s8987_s12  ;;  %8825 = vrcp.f32 %v2704_v38 }
 0x5a3   :  { %4035 = vrot.lane.b32.xlu1 %v9122_v33, %s8986_s11  ;;  %v2701_v53 = vpop.xlane.xlu1 %2700 }
 0x5a4   :  { %8827 = vrcp.f32 %v2701_v53  ;;  %v8822_v53 = vpop.eup %8821  ;;  %v2728_v13 = vpop.xlane.xlu0 %2727 }
 0x5a5   :  { %4486 = vrot.lane.b32.xlu0 %v9299_v23, %s8987_s12  ;;  %8829 = vrcp.f32 %v2698_v3  ;;  %v11094_v23 = vld [vmem:[#allocation10_spill] sm:$0xff] }
 0x5a7   :  { %4031 = vrot.lane.b32.xlu1 %v11093_v9, %s8987_s12  ;;  %v2695_v6 = vpop.xlane.xlu1 %2694 }
 0x5a8   :  { %8831 = vrcp.f32 %v2695_v6 }
 0x5a9   :  { %4753 = vrot.lane.b32.xlu0 %v9103_v24, %s8988_s13  ;;  %8833 = vrcp.f32 %v2716_v20  ;;  %v2752_v20 = vmul.f32 %v8822_v53, %v9813_v63 }
 0x5ab   :  { %4126 = vrot.lane.b32.xlu1 %v9130_v37, %s8986_s11  ;;  %v2713_v38 = vpop.xlane.xlu1 %2712 }
 0x5ac   :  { %8835 = vrcp.f32 %v2713_v38 }
 0x5ad   :  { %4840 = vrot.lane.b32.xlu0 %v9112_v29, %s8988_s13  ;;  %v8824_v3 = vpop.eup %8823  ;;  %8837 = vrcp.f32 %v2710_v51 }
 0x5ae   :  { %v2751_v16 = vmul.f32 %v8824_v3, %v9845_v45  ;;  %v8826_v1 = vpop.eup %8825 }
 0x5af   :  { %4122 = vrot.lane.b32.xlu1 %v11094_v23, %s8987_s12  ;;  %v2707_v6 = vpop.xlane.xlu1 %2706  ;;  %v2756_v63 = vmul.f32 %v8826_v1, %v9817_v15 }
 0x5b0   :  { %8839 = vrcp.f32 %v2707_v6  ;;  %8332 = vmatprep.mubr.msk.f32.mxu0 %vm990_vm2, %v2751_v16 }
 0x5b1   :  { %5016 = vrot.lane.b32.xlu0 %v9128_v35, %s8988_s13  ;;  %v8828_v38 = vpop.eup %8827  ;;  %8333 = vmatmul.mubr.msk.f32.vlgmr.msra.gmra.mxu0 %vm990_vm2, %v2752_v20  ;;  %8841 = vrcp.f32 %v2728_v13 }
 0x5b2   :  { %8343 = vmatpush3.msra.mxu0 %v9696_v10  ;;  %v2755_v51 = vmul.f32 %v8828_v38, %v9849_v0  ;;  %v8830_v3 = vpop.eup %8829 }
 0x5b3   :  { %4217 = vrot.lane.b32.xlu1 %v9138_v41, %s8986_s11  ;;  %v2725_v45 = vpop.xlane.xlu1 %2724  ;;  %8344 = vmatprep.subr.mxu0 %v9800_v62  ;;  %v2754_v10 = vmul.f32 %v8830_v3, %v9828_v8 }
 0x5b4   :  { %8843 = vrcp.f32 %v2725_v45  ;;  %8345 = vmatpush3.msra.mxu0 %v9800_v62  ;;  %8346 = vmatprep.mubr.msk.f32.mxu0 %vm990_vm2, %v2755_v51 }
 0x5b5   :  { %v8832_v16 = vpop.eup %8831  ;;  %8356 = vmatprep.subr.mxu0 %v9880_v28  ;;  %5103 = vrot.lane.b32.xlu0 %v11087_v39, %s8988_s13 }
 0x5b6   :  { %v2753_v13 = vmul.f32 %v8832_v16, %v9861_v12  ;;  %8347 = vmatmul.mubr.msk.f32.vlgmr.msra.gmra.mxu0 %vm990_vm2, %v2756_v63  ;;  %v8834_v0 = vpop.eup %8833 }
 0x5b7   :  { %4213 = vrot.lane.b32.xlu1 %v9147_v44, %s8987_s12  ;;  %8357 = vmatpush3.msra.mxu0 %v9880_v28  ;;  %v2760_v12 = vmul.f32 %v8834_v0, %v9834_v58 }
 0x5b8   :  { %8339 = vmatprep.mubr.msk.f32.mxu1 %vm990_vm2, %v2753_v13  ;;  %8358 = vmatprep.subr.mxu0 %v9877_v42 }
 0x5b9   :  { %v8836_v15 = vpop.eup %8835  ;;  %8340 = vmatmul.mubr.msk.f32.vlgmr.msra.gmra.mxu1 %vm990_vm2, %v2754_v10  ;;  %8359 = vmatpush3.msra.mxu0 %v9877_v42 }
 0x5ba   :  { %8350 = vmatpush3.msra.mxu1 %v9705_v27  ;;  %v2759_v62 = vmul.f32 %v8836_v15, %v9865_v34  ;;  %8370 = vmatprep.subr.mxu0 %v9926_v55  ;;  %v8838_v8 = vpop.eup %8837 }
 0x5bb   :  { %8351 = vmatprep.subr.mxu1 %v9804_v21  ;;  %4308 = vrot.lane.b32.xlu1 %v9149_v46, %s8986_s11 }
 0x5bc   :  { %8352 = vmatpush3.msra.mxu1 %v9804_v21  ;;  %8360 = vmatprep.mubr.msk.f32.mxu0 %vm990_vm2, %v2759_v62  ;;  %v2758_v21 = vmul.f32 %v8838_v8, %v9840_v47  ;;  %v2722_v47 = vpop.xlane.xlu0 %2721 }
 0x5bd   :  { %v8840_v28 = vpop.eup %8839  ;;  %8363 = vmatprep.subr.mxu1 %v9918_v36  ;;  %8361 = vmatmul.mubr.msk.f32.vlgmr.msra.gmra.mxu0 %vm990_vm2, %v2760_v12  ;;  %8845 = vrcp.f32 %v2722_v47 }
 0x5be   :  { %v2757_v27 = vmul.f32 %v8840_v28, %v9869_v18  ;;  %8371 = vmatpush3.msra.mxu0 %v9926_v55  ;;  %v8842_v34 = vpop.eup %8841 }
 0x5bf   :  { %8372 = vmatprep.subr.mxu0 %v9936_v56  ;;  %4304 = vrot.lane.b32.xlu1 %v9285_v17, %s8987_s12  ;;  %v2764_v18 = vmul.f32 %v8842_v34, %v9847_v59 }
 0x5c0   :  { %8373 = vmatpush3.msra.mxu0 %v9936_v56  ;;  %8353 = vmatprep.mubr.msk.f32.mxu1 %vm990_vm2, %v2757_v27 }
 0x5c1   :  { %v8844_v58 = vpop.eup %8843  ;;  %8354 = vmatmul.mubr.msk.f32.vlgmr.msra.gmra.mxu1 %vm990_vm2, %v2758_v21 }
 0x5c2   :  { %v2763_v42 = vmul.f32 %v8844_v58, %v9873_v5  ;;  %8364 = vmatpush3.msra.mxu1 %v9918_v36  ;;  %v11095_v5 = vld [vmem:[#allocation15_spill] sm:$0xff] }
 0x5c3   :  { %8365 = vmatprep.subr.mxu1 %v9893_v30  ;;  %4399 = vrot.lane.b32.xlu1 %v9159_v50, %s8986_s11 }
 0x5c4   :  { %8366 = vmatpush3.msra.mxu1 %v9893_v30  ;;  %8374 = vmatprep.mubr.msk.f32.mxu0 %vm990_vm2, %v2763_v42  ;;  %v11097_v42 = vld [vmem:[#allocation23_spill] sm:$0xff] }
 0x5c5   :  { %8375 = vmatmul.mubr.msk.f32.vlgmr.msra.gmra.mxu0 %vm990_vm2, %v2764_v18 }
 0x5c7   :  { %4395 = vrot.lane.b32.xlu1 %v9264_v11, %s8987_s12 }
 0x5ca   :  { %v8846_v36 = vpop.eup %8845 }
 0x5cb   :  { %4490 = vrot.lane.b32.xlu1 %v9171_v54, %s8986_s11  ;;  %v2762_v53 = vmul.f32 %v8846_v36, %v9855_v57  ;;  %v10048_v57 = vld [vmem:[%s11006_s3] sm:$0xff] }
 0x5cf   :  { %4488 = vrot.lane.b32.xlu1 %v11095_v5, %s8987_s12 }
 0x5d2   :  { %v2719_v1 = vpop.xlane.xlu1 %2718 }
 0x5d3   :  { %8847 = vrcp.f32 %v2719_v1  ;;  %4755 = vrot.lane.b32.xlu1 %v9101_v22, %s8988_s13  ;;  %v11100_v1 = vld [vmem:[#allocation27_spill] sm:$0xff] }
 0x5d7   :  { %4842 = vrot.lane.b32.xlu1 %v9107_v26, %s8988_s13 }
 0x5d8   :  { %v2734_v59 = vpop.xlane.xlu0 %2733 }
 0x5d9   :  { %8849 = vrcp.f32 %v2734_v59 }
 0x5db   :  { %4929 = vrot.lane.b32.xlu1 %v9120_v31, %s8988_s13 }
 0x5dc   :  { %v3379_v30 = vpop.permute.xlu0 %3378 }
 0x5dd   :  { %8377 = vmatprep.subr.mxu1 %v3379_v30 }
 0x5df   :  { %4927 = vrot.lane.b32.xlu1 %v9122_v33, %s8988_s13 }
 0x5e0   :  { %v8848_v55 = vpop.eup %8847  ;;  %v10036_v6 = vpop.permute.xlu0 %3855 }
 0x5e1   :  { %v2761_v56 = vmul.f32 %v8848_v55, %v9883_v61  ;;  %v258_v61 = vld [vmem:[%s11006_s3 + $0x8] sm:$0xff] }
 0x5e2   :  { %8384 = vmatprep.subr.mxu0 %v258_v61 }
 0x5e3   :  { %8367 = vmatprep.mubr.msk.f32.mxu1 %vm990_vm2, %v2761_v56  ;;  %5014 = vrot.lane.b32.xlu1 %v9130_v37, %s8988_s13 }
 0x5e4   :  { %8368 = vmatmul.mubr.msk.f32.vlgmr.msra.gmra.mxu1 %vm990_vm2, %v2762_v53  ;;  %v3947_v20 = vpop.permute.xlu0 %3946  ;;  %8385 = vmatpush3.msra.mxu0 %v258_v61 }
 0x5e5   :  { %8378 = vmatpush3.msra.mxu1 %v3379_v30  ;;  %8410 = vmatprep.subr.mxu0 %v10048_v57  ;;  %v11101_v30 = vld [vmem:[#allocation24_spill] sm:$0xff] }
 0x5e6   :  { %v8850_v62 = vpop.eup %8849 }
 0x5e7   :  { %5101 = vrot.lane.b32.xlu1 %v9138_v41, %s8988_s13  ;;  %v2766_v34 = vmul.f32 %v8850_v62, %v9887_v25 }
 0x5e8   :  { %v10043_v38 = vpop.permute.xlu0 %3851 }
 0x5ec   :  { %v10051_v45 = vpop.permute.xlu0 %4037 }
 0x5f0   :  { %v3943_v51 = vpop.permute.xlu0 %3942 }
 0x5f4   :  { %v4129_v3 = vpop.permute.xlu0 %4128 }
 0x5f8   :  { %v10053_v63 = vpop.permute.xlu0 %4033 }
 0x5fc   :  { %v10058_v0 = vpop.permute.xlu0 %4219 }
 0x600   :  { %v4125_v28 = vpop.permute.xlu0 %4124 }
 0x604   :  { %v4311_v58 = vpop.permute.xlu0 %4310 }
 0x607   :  { %v2731_v16 = vpop.xlane.xlu1 %2730 }
 0x608   :  { %8851 = vrcp.f32 %v2731_v16 }
 0x60b   :  { %v3377_v13 = vpop.permute.xlu1 %3376 }
 0x60c   :  { %8379 = vmatprep.subr.mxu1 %v3377_v13 }
 0x60d   :  { %8380 = vmatpush3.msra.mxu1 %v3377_v13 }
 0x60e   :  { %8712 = vmatprep.subr.mxu1 %v10048_v57 }
 0x60f   :  { %v10056_v10 = vpop.permute.xlu1 %3853 }
 0x613   :  { %v10060_v15 = vpop.permute.xlu1 %3849 }
 0x615   :  { %v8852_v8 = vpop.eup %8851 }
 0x616   :  { %v2765_v12 = vmul.f32 %v8852_v8, %v9906_v60  ;;  %v10083_v60 = vpop.permute.xlu0 %4215 }
 0x617   :  { %v3945_v27 = vpop.permute.xlu1 %3944 }
 0x618   :  { %8381 = vmatprep.mubr.msk.f32.mxu1 %vm990_vm2, %v2765_v12 }
 0x619   :  { %8382 = vmatmul.mubr.msk.f32.vlgmr.msra.gmra.mxu1 %vm990_vm2, %v2766_v34 }
 0x61a   :  { %8713 = vmatpush3.msra.mxu1 %v10048_v57  ;;  %8421 = vmatprep.mubr.msk.f32.mxu1 %vm267_vm1, %v9749_v32  ;;  %v11096_v32 = vld [vmem:[#allocation21_spill] sm:$0xff]  ;;  %v10092_v47 = vpop.permute.xlu0 %4401 }
 0x61b   :  { %8443 = vmatprep.subr.msk.mxu1 %vm267_vm1, %v3947_v20  ;;  %v3941_v21 = vpop.permute.xlu1 %3940 }
 0x61d   :  { %8422 = vmatmul.mubr.msk.f32.vlgmr.msra.gmra.mxu1 %vm267_vm1, %v9743_v7 }
 0x61e   :  { %8444 = vmatpush3.xpose.msk.msra.mxu1 %vm267_vm1, %v3947_v20  ;;  %8424 = vmatprep.mubr.msk.f32.mxu1 %vm267_vm1, %v9718_v4  ;;  %v11098_v4 = vld [vmem:[#allocation22_spill] sm:$0xff]  ;;  %v4307_v36 = vpop.permute.xlu0 %4306 }
 0x61f   :  { %8445 = vmatprep.subr.msk.mxu1 %vm267_vm1, %v3945_v27  ;;  %v10076_v25 = vpop.permute.xlu1 %4035 }
 0x621   :  { %8425 = vmatmul.mubr.msk.f32.gmra.mxu1 %vm267_vm1, %v9716_v2  ;;  %v11099_v2 = vld [vmem:[#allocation18_spill] sm:$0xff] }
 0x622   :  { %8446 = vmatpush3.xpose.msk.msra.mxu1 %vm267_vm1, %v3945_v27  ;;  %8427 = vmatprep.mubr.msk.f32.mxu1 %vm267_vm1, %v11096_v32  ;;  %v4493_v53 = vpop.permute.xlu0 %4492 }
 0x623   :  { %8457 = vmatprep.subr.msk.mxu1 %vm267_vm1, %v4129_v3  ;;  %v10086_v7 = vpop.permute.xlu1 %4031 }
 0x625   :  { %8428 = vmatmul.mubr.msk.f32.gmra.mxu1 %vm267_vm1, %v11097_v42 }
 0x626   :  { %8430 = vmatprep.mubr.msk.f32.mxu1 %vm267_vm1, %v11098_v4  ;;  %v10113_v61 = vpop.permute.xlu0 %4397 }
 0x627   :  { %v4127_v18 = vpop.permute.xlu1 %4126 }
 0x629   :  { %8431 = vmatmul.mubr.msk.f32.gmra.mxu1 %vm267_vm1, %v11099_v2 }
 0x62a   :  { %8433 = vmatprep.mubr.msk.f32.mxu1 %vm267_vm1, %v11100_v1  ;;  %v4487_v16 = vpop.permute.xlu0 %4486 }
 0x62b   :  { %v4123_v59 = vpop.permute.xlu1 %4122 }
 0x62d   :  { %8434 = vmatmul.mubr.msk.f32.gmra.mxu1 %vm267_vm1, %v11101_v30 }
 0x62e   :  { %8447 = vmatprep.mubr.msk.f32.mxu1 %vm267_vm1, %v3941_v21  ;;  %v10128_v8 = vpop.permute.xlu0 %4753 }
 0x62f   :  { %v10101_v55 = vpop.permute.xlu1 %4217 }
 0x631   :  { %8448 = vmatmul.mubr.msk.f32.vlgmr.msra.gmra.mxu1 %vm267_vm1, %v3943_v51 }
 0x632   :  { %8458 = vmatpush3.xpose.msk.msra.mxu1 %vm267_vm1, %v4129_v3  ;;  %8461 = vmatprep.mubr.msk.f32.mxu1 %vm267_vm1, %v4123_v59  ;;  %v4841_v27 = vpop.permute.xlu0 %4840 }
 0x633   :  { %8459 = vmatprep.subr.msk.mxu1 %vm267_vm1, %v4127_v18  ;;  %v10107_v56 = vpop.permute.xlu1 %4213 }
 0x636   :  { %8460 = vmatpush3.xpose.msk.msra.mxu1 %vm267_vm1, %v4127_v18  ;;  %v10133_v21 = vpop.permute.xlu0 %5016 }
 0x637   :  { %8471 = vmatprep.subr.msk.mxu1 %vm267_vm1, %v4311_v58  ;;  %v4309_v20 = vpop.permute.xlu1 %4308 }
 0x639   :  { %8462 = vmatmul.mubr.msk.f32.vlgmr.msra.gmra.mxu1 %vm267_vm1, %v4125_v28 }
 0x63a   :  { %8472 = vmatpush3.xpose.msk.msra.mxu1 %vm267_vm1, %v4311_v58 }
 0x63b   :  { %8473 = vmatprep.subr.msk.mxu1 %vm267_vm1, %v4309_v20  ;;  %v4305_v51 = vpop.permute.xlu1 %4304 }
 0x63c   :  { %8475 = vmatprep.mubr.msk.f32.mxu1 %vm267_vm1, %v4305_v51 }
 0x63e   :  { %8474 = vmatpush3.xpose.msk.msra.mxu1 %vm267_vm1, %v4309_v20 }
 0x63f   :  { %8485 = vmatprep.subr.msk.mxu1 %vm267_vm1, %v4493_v53  ;;  %v10119_v3 = vpop.permute.xlu1 %4399 }
 0x641   :  { %8476 = vmatmul.mubr.msk.f32.vlgmr.msra.gmra.mxu1 %vm267_vm1, %v4307_v36 }
 0x642   :  { %8486 = vmatpush3.xpose.msk.msra.mxu1 %vm267_vm1, %v4493_v53  ;;  %8489 = vmatprep.mubr.msk.f32.mxu1 %vm267_vm1, %v4487_v16 }
 0x643   :  { %v10124_v13 = vpop.permute.xlu1 %4395 }
 0x647   :  { %v4491_v62 = vpop.permute.xlu1 %4490 }
 0x648   :  { %8487 = vmatprep.subr.msk.mxu1 %vm267_vm1, %v4491_v62 }
 0x649   :  { %8488 = vmatpush3.xpose.msk.msra.mxu1 %vm267_vm1, %v4491_v62 }
 0x64b   :  { %v4489_v12 = vpop.permute.xlu1 %4488 }
 0x64c   :  { %8490 = vmatmul.mubr.msk.f32.vlgmr.msra.gmra.mxu1 %vm267_vm1, %v4489_v12 }
 0x64f   :  { %v10131_v28 = vpop.permute.xlu1 %4755 }
 0x653   :  { %v4843_v34 = vpop.permute.xlu1 %4842 }
 0x654   :  { %8499 = vmatprep.subr.mxu1 %v4843_v34 }
 0x655   :  { %8500 = vmatpush3.msra.mxu1 %v4843_v34 }
 0x656   :  { %8501 = vmatprep.subr.mxu1 %v4841_v27 }
 0x657   :  { %8502 = vmatpush3.msra.mxu1 %v4841_v27  ;;  %v11103_v27 = vld [vmem:[#allocation17_spill] sm:$0xff] }
 0x658   :  { %8513 = vmatprep.subr.mxu1 %v10133_v21 }
 0x671   :  { %v8334_v58 = vpop.f32.mrf.mxu0 }
 0x673   :  { %v2845_v32 = vpop.f32.mrf.mxu0 }
 0x674   :  { %8386 = vmatprep.mubr.msk.f32.mxu0 %vm267_vm1, %v2845_v32 }
 0x675   :  { %8387 = vmatmul.mubr.msk.f32.vlgmr.msra.gmra.mxu0 %vm267_vm1, %v8334_v58  ;;  %v11105_v58 = vld [vmem:[#allocation16_spill] sm:$0xff] }
 0x676   :  { %8411 = vmatpush3.msra.mxu0 %v10048_v57  ;;  %v8348_v42 = vpop.f32.mrf.mxu0 }
 0x677   :  { %8436 = vmatprep.subr.msk.mxu0 %vm267_vm1, %v10036_v6 }
 0x678   :  { %v3019_v2 = vpop.f32.mrf.mxu0 }
 0x679   :  { %v8341_v4 = vpop.f32.mrf.mxu1 }
 0x67b   :  { %v2932_v18 = vpop.f32.mrf.mxu1 }
 0x67c   :  { %8389 = vmatprep.mubr.msk.f32.mxu0 %vm267_vm1, %v2932_v18  ;;  %v11109_v18 = vld [vmem:[#allocation20_spill] sm:$0xff] }
 0x67d   :  { %8390 = vmatmul.mubr.msk.f32.gmra.mxu0 %vm267_vm1, %v8341_v4  ;;  %v8362_v1 = vpop.f32.mrf.mxu0 }
 0x67e   :  { %8392 = vmatprep.mubr.msk.f32.mxu0 %vm267_vm1, %v3019_v2 }
 0x67f   :  { %v3193_v57 = vpop.f32.mrf.mxu0 }
 0x681   :  { %8393 = vmatmul.mubr.msk.f32.gmra.mxu0 %vm267_vm1, %v8348_v42  ;;  %v8355_v59 = vpop.f32.mrf.mxu1  ;;  %v11107_v42 = vld [vmem:[#allocation25_spill] sm:$0xff] }
 0x683   :  { %v3106_v30 = vpop.f32.mrf.mxu1 }
 0x684   :  { %8395 = vmatprep.mubr.msk.f32.mxu0 %vm267_vm1, %v3106_v30 }
 0x685   :  { %8396 = vmatmul.mubr.msk.f32.gmra.mxu0 %vm267_vm1, %v8355_v59  ;;  %v8376_v36 = vpop.f32.mrf.mxu0  ;;  %v11113_v59 = vld [vmem:[#allocation26_spill] sm:$0xff] }
 0x686   :  { %8398 = vmatprep.mubr.msk.f32.mxu0 %vm267_vm1, %v3193_v57 }
 0x687   :  { %v3367_v51 = vpop.f32.mrf.mxu0 }
 0x689   :  { %8399 = vmatmul.mubr.msk.f32.gmra.mxu0 %vm267_vm1, %v8362_v1  ;;  %v11111_v1 = vld [vmem:[#allocation19_spill] sm:$0xff] }
 0x6a4   :  { %v8369_v53 = vpop.f32.mrf.mxu1 }
 0x6a6   :  { %v3280_v20 = vpop.f32.mrf.mxu1 }
 0x6a7   :  { %8401 = vmatprep.mubr.msk.f32.mxu0 %vm267_vm1, %v3280_v20 }
 0x6a8   :  { %8402 = vmatmul.mubr.msk.f32.gmra.mxu0 %vm267_vm1, %v8369_v53 }
 0x6a9   :  { %8404 = vmatprep.mubr.msk.f32.mxu0 %vm267_vm1, %v3367_v51 }
 0x6ac   :  { %8405 = vmatmul.mubr.msk.f32.gmra.mxu0 %vm267_vm1, %v8376_v36 }
 0x6d9   :  { %v8383_v16 = vpop.f32.mrf.mxu1 }
 0x6db   :  { %v3454_v62 = vpop.f32.mrf.mxu1 }
 0x6dc   :  { %8407 = vmatprep.mubr.msk.f32.mxu0 %vm267_vm1, %v3454_v62 }
 0x6dd   :  { %8408 = vmatmul.mubr.msk.f32.gmra.mxu0 %vm267_vm1, %v8383_v16  ;;  %v10155_v12 = vpop.f32.mrf.mxu1 }
 0x6de   :  { %11102 = vst [vmem:[#allocation3_spill] sm:$0xff] %v10155_v12  ;;  %8412 = vmatprep.mubr.msk.f32.mxu0 %vm267_vm1, %v11103_v27 }
 0x6df   :  { %v10159_v34 = vpop.f32.mrf.mxu1 }
 0x6e0   :  { %11104 = vst [vmem:[#allocation4_spill] sm:$0xff] %v10159_v34 }
 0x6e1   :  { %8413 = vmatmul.mubr.msk.f32.vlgmr.msra.gmra.mxu0 %vm267_vm1, %v11105_v58  ;;  %v10163_v32 = vpop.f32.mrf.mxu1  ;;  %v10261_v58 = vpop.permute.xlu0 %5103 }
 0x6e2   :  { %11106 = vst [vmem:[#allocation5_spill] sm:$0xff] %v10163_v32  ;;  %8437 = vmatpush3.xpose.msk.msra.mxu0 %vm267_vm1, %v10036_v6  ;;  %8415 = vmatprep.mubr.msk.f32.mxu0 %vm267_vm1, %v11107_v42 }
 0x6e3   :  { %8438 = vmatprep.subr.msk.mxu0 %vm267_vm1, %v10056_v10  ;;  %v10171_v4 = vpop.f32.mrf.mxu1 }
 0x6e4   :  { %11108 = vst [vmem:[#allocation2_spill] sm:$0xff] %v10171_v4 }
 0x6e5   :  { %8416 = vmatmul.mubr.msk.f32.gmra.mxu0 %vm267_vm1, %v11109_v18  ;;  %v10175_v2 = vpop.f32.mrf.mxu1 }
 0x6e6   :  { %11110 = vst [vmem:[#allocation6_spill] sm:$0xff] %v10175_v2  ;;  %8439 = vmatpush3.xpose.msk.msra.mxu0 %vm267_vm1, %v10056_v10  ;;  %8418 = vmatprep.mubr.msk.f32.mxu0 %vm267_vm1, %v11111_v1 }
 0x6e7   :  { %8450 = vmatprep.subr.msk.mxu0 %vm267_vm1, %v10051_v45  ;;  %v10183_v6 = vpop.f32.mrf.mxu1 }
 0x6e8   :  { %11112 = vst [vmem:[#allocation7_spill] sm:$0xff] %v10183_v6 }
 0x6e9   :  { %8419 = vmatmul.mubr.msk.f32.gmra.mxu0 %vm267_vm1, %v11113_v59  ;;  %v10187_v30 = vpop.f32.mrf.mxu1 }
 0x6ea   :  { %11114 = vst [vmem:[#allocation10_spill] sm:$0xff] %v10187_v30  ;;  %8440 = vmatprep.mubr.msk.f32.mxu0 %vm267_vm1, %v10060_v15 }
 0x6eb   :  { %v10191_v57 = vpop.f32.mrf.mxu1 }
 0x6ec   :  { %11115 = vst [vmem:[#allocation15_spill] sm:$0xff] %v10191_v57 }
 0x6ed   :  { %v10193_v36 = vpop.f32.mrf.mxu1  ;;  %8441 = vmatmul.mubr.msk.f32.vlgmr.msra.gmra.mxu0 %vm267_vm1, %v10043_v38 }
 0x6ee   :  { %11116 = vst [vmem:[#allocation21_spill] sm:$0xff] %v10193_v36  ;;  %8451 = vmatpush3.xpose.msk.msra.mxu0 %vm267_vm1, %v10051_v45  ;;  %8454 = vmatprep.mubr.msk.f32.mxu0 %vm267_vm1, %v10086_v7 }
 0x6ef   :  { %8452 = vmatprep.subr.msk.mxu0 %vm267_vm1, %v10076_v25  ;;  %v10203_v10 = vpop.f32.mrf.mxu1 }
 0x6f0   :  { %11117 = vst [vmem:[#allocation23_spill] sm:$0xff] %v10203_v10 }
 0x6f1   :  { %v8449_v53 = vpop.f32.mrf.mxu1 }
 0x6f2   :  { %8453 = vmatpush3.xpose.msk.msra.mxu0 %vm267_vm1, %v10076_v25  ;;  %v4586_v15 = vsel %vm990_vm2, %v8449_v53, -inf }
 0x6f3   :  { %8464 = vmatprep.subr.msk.mxu0 %vm267_vm1, %v10058_v0  ;;  %4587 = vmax.xlane.f32.xlu0 %v4586_v15  ;;  %v4022_v38 = vpop.f32.mrf.mxu1 }
 0x6f4   :  { %v4583_v45 = vsel %vm990_vm2, %v4022_v38, -inf }
 0x6f5   :  { %8455 = vmatmul.mubr.msk.f32.vlgmr.msra.gmra.mxu0 %vm267_vm1, %v10053_v63 }
 0x6f6   :  { %8465 = vmatpush3.xpose.msk.msra.mxu0 %vm267_vm1, %v10058_v0  ;;  %8468 = vmatprep.mubr.msk.f32.mxu0 %vm267_vm1, %v10107_v56 }
 0x6f7   :  { %8466 = vmatprep.subr.msk.mxu0 %vm267_vm1, %v10101_v55  ;;  %4584 = vmax.xlane.f32.xlu0 %v4583_v45 }
 0x6f9   :  { %v8463_v25 = vpop.f32.mrf.mxu1 }
 0x6fa   :  { %8467 = vmatpush3.xpose.msk.msra.mxu0 %vm267_vm1, %v10101_v55  ;;  %v4598_v7 = vsel %vm990_vm2, %v8463_v25, -inf }
 0x6fb   :  { %v4204_v20 = vpop.f32.mrf.mxu1  ;;  %8478 = vmatprep.subr.msk.mxu0 %vm267_vm1, %v10092_v47  ;;  %4599 = vmax.xlane.f32.xlu0 %v4598_v7 }
 0x6fc   :  { %v4595_v63 = vsel %vm990_vm2, %v4204_v20, -inf }
 0x6fd   :  { %4596 = vmax.xlane.f32.xlu1 %v4595_v63  ;;  %8469 = vmatmul.mubr.msk.f32.vlgmr.msra.gmra.mxu0 %vm267_vm1, %v10083_v60 }
 0x6fe   :  { %8479 = vmatpush3.xpose.msk.msra.mxu0 %vm267_vm1, %v10092_v47  ;;  %8482 = vmatprep.mubr.msk.f32.mxu0 %vm267_vm1, %v10124_v13  ;;  %v10242_v47 = vpop.permute.xlu1 %4929 }
 0x6ff   :  { %8480 = vmatprep.subr.msk.mxu0 %vm267_vm1, %v10119_v3 }
 0x701   :  { %v8477_v0 = vpop.f32.mrf.mxu1 }
 0x702   :  { %8481 = vmatpush3.xpose.msk.msra.mxu0 %vm267_vm1, %v10119_v3  ;;  %v4610_v55 = vsel %vm990_vm2, %v8477_v0, -inf }
 0x703   :  { %4611 = vmax.xlane.f32.xlu0 %v4610_v55  ;;  %v4386_v56 = vpop.f32.mrf.mxu1  ;;  %8492 = vmatprep.subr.mxu0 %v10131_v28 }
 0x704   :  { %v4607_v60 = vsel %vm990_vm2, %v4386_v56, -inf }
 0x705   :  { %4608 = vmax.xlane.f32.xlu1 %v4607_v60  ;;  %8483 = vmatmul.mubr.msk.f32.vlgmr.msra.gmra.mxu0 %vm267_vm1, %v10113_v61 }
 0x706   :  { %8493 = vmatpush3.msra.mxu0 %v10131_v28 }
 0x707   :  { %8494 = vmatprep.subr.mxu0 %v10128_v8 }
 0x708   :  { %8495 = vmatpush3.msra.mxu0 %v10128_v8  ;;  %v10259_v8 = vpop.permute.xlu1 %4927 }
 0x709   :  { %8506 = vmatprep.subr.mxu0 %v10242_v47 }
 0x70c   :  { %v8491_v3 = vpop.f32.mrf.mxu1  ;;  %v10265_v18 = vpop.permute.xlu1 %5014 }
 0x70d   :  { %v4622_v13 = vsel %vm990_vm2, %v8491_v3, -inf }
 0x70e   :  { %4623 = vmax.xlane.f32.xlu0 %v4622_v13  ;;  %v10247_v51 = vpop.f32.mrf.mxu1 }
 0x70f   :  { %v4619_v16 = vsel %vm990_vm2, %v10247_v51, -inf }
 0x710   :  { %4620 = vmax.xlane.f32.xlu1 %v4619_v16  ;;  %v10271_v60 = vpop.permute.xlu1 %5101 }
 0x735   :  { %v10251_v61 = vpop.f32.mrf.mxu0 }
 0x737   :  { %v10253_v28 = vpop.f32.mrf.mxu0 }
 0x73d   :  { %v10255_v62 = vpop.f32.mrf.mxu0 }
 0x73f   :  { %v10257_v27 = vpop.f32.mrf.mxu0 }
 0x740   :  { %11118 = vst [vmem:[#allocation22_spill] sm:$0xff] %v10257_v27 }
 0x741   :  { %v10263_v42 = vpop.f32.mrf.mxu0 }
 0x742   :  { %11119 = vst [vmem:[#allocation18_spill] sm:$0xff] %v10263_v42 }
 0x743   :  { %v10267_v59 = vpop.f32.mrf.mxu0 }
 0x744   :  { %11120 = vst [vmem:[#allocation27_spill] sm:$0xff] %v10267_v59 }
 0x745   :  { %v10269_v63 = vpop.f32.mrf.mxu0 }
 0x746   :  { %11121 = vst [vmem:[#allocation24_spill] sm:$0xff] %v10269_v63 }
 0x747   :  { %v10273_v10 = vpop.f32.mrf.mxu0 }
 0x748   :  { %11122 = vst [vmem:[#allocation17_spill] sm:$0xff] %v10273_v10 }
 0x749   :  { %v10275_v2 = vpop.f32.mrf.mxu0 }
 0x74a   :  { %11123 = vst [vmem:[#allocation16_spill] sm:$0xff] %v10275_v2 }
 0x77c   :  { %v4588_v1 = vpop.xlane.xlu0 %4587 }
 0x77d   :  { %v4628_v15 = vsub.f32 %v8449_v53, %v4588_v1 }
 0x77f   :  { %v4647_v45 = vmul.f32 1.442695, %v4628_v15  ;;  %v10277_v15 = vpop.f32.mrf.mxu0 }
 0x780   :  { %v4585_v7 = vpop.xlane.xlu0 %4584  ;;  %11124 = vst [vmem:[#allocation25_spill] sm:$0xff] %v10277_v15 }
 0x781   :  { %8853 = vpow2.f32 %v4647_v45  ;;  %v4627_v55 = vsub.f32 %v4022_v38, %v4585_v7 }
 0x783   :  { %v4645_v13 = vmul.f32 1.442695, %v4627_v55  ;;  %v10281_v55 = vpop.f32.mrf.mxu0 }
 0x784   :  { %v4600_v16 = vpop.xlane.xlu0 %4599  ;;  %11125 = vst [vmem:[#allocation20_spill] sm:$0xff] %v10281_v55 }
 0x785   :  { %8855 = vpow2.f32 %v4645_v13  ;;  %v4632_v36 = vsub.f32 %v8463_v25, %v4600_v16 }
 0x786   :  { %v4597_v57 = vpop.xlane.xlu1 %4596 }
 0x787   :  { %v4655_v30 = vmul.f32 1.442695, %v4632_v36  ;;  %v4631_v6 = vsub.f32 %v4204_v20, %v4597_v57 }
 0x789   :  { %8857 = vpow2.f32 %v4655_v30  ;;  %v4653_v53 = vmul.f32 1.442695, %v4631_v6  ;;  %v10287_v6 = vpop.f32.mrf.mxu0 }
 0x78a   :  { %11126 = vst [vmem:[#allocation19_spill] sm:$0xff] %v10287_v6 }
 0x78b   :  { %8859 = vpow2.f32 %v4653_v53 }
 0x78c   :  { %v4612_v1 = vpop.xlane.xlu0 %4611 }
 0x78d   :  { %v4636_v38 = vsub.f32 %v8477_v0, %v4612_v1  ;;  %v10293_v0 = vpop.f32.mrf.mxu0 }
 0x78e   :  { %v10279_v45 = vpop.eup %8853  ;;  %v4609_v7 = vpop.xlane.xlu1 %4608  ;;  %11127 = vst [vmem:[#allocation26_spill] sm:$0xff] %v10293_v0 }
 0x78f   :  { %v4663_v4 = vmul.f32 1.442695, %v4636_v38  ;;  %v4635_v13 = vsub.f32 %v4386_v56, %v4609_v7  ;;  %v4682_v36 = vsel %vm990_vm2, %v10279_v45, 0.0 }
 0x790   :  { %4683 = vadd.xlane.f32.xlu0 %v4682_v36  ;;  %v10302_v36 = vpop.f32.mrf.mxu0 }
 0x791   :  { %8861 = vpow2.f32 %v4663_v4  ;;  %v4661_v57 = vmul.f32 1.442695, %v4635_v13  ;;  %11128 = vst [vmem:[#allocation28_spill] sm:$0xff] %v10302_v36 }
 0x792   :  { %v10285_v30 = vpop.eup %8855 }
 0x793   :  { %8863 = vpow2.f32 %v4661_v57  ;;  %v4679_v25 = vsel %vm990_vm2, %v10285_v30, 0.0 }
 0x794   :  { %4680 = vadd.xlane.f32.xlu1 %v4679_v25 }
 0x796   :  { %v10291_v20 = vpop.eup %8857 }
 0x797   :  { %v4624_v56 = vpop.xlane.xlu0 %4623  ;;  %v4694_v16 = vsel %vm990_vm2, %v10291_v20, 0.0 }
 0x798   :  { %v10297_v53 = vpop.eup %8859  ;;  %v4640_v4 = vsub.f32 %v8491_v3, %v4624_v56  ;;  %4695 = vadd.xlane.f32.xlu0 %v4694_v16 }
 0x799   :  { %v4691_v1 = vsel %vm990_vm2, %v10297_v53, 0.0  ;;  %v4621_v38 = vpop.xlane.xlu1 %4620 }
 0x79a   :  { %v4671_v7 = vmul.f32 1.442695, %v4640_v4  ;;  %4692 = vadd.xlane.f32.xlu1 %v4691_v1  ;;  %v4639_v13 = vsub.f32 %v10247_v51, %v4621_v38 }
 0x79c   :  { %8865 = vpow2.f32 %v4671_v7  ;;  %v4669_v57 = vmul.f32 1.442695, %v4639_v13 }
 0x79d   :  { %v10304_v25 = vpop.f32.mrf.mxu0 }
 0x79e   :  { %11129 = vst [vmem:[#allocation29_spill] sm:$0xff] %v10304_v25  ;;  %v10306_v0 = vpop.eup %8861  ;;  %8867 = vpow2.f32 %v4669_v57 }
 0x79f   :  { %v10308_v6 = vpop.f32.mrf.mxu0  ;;  %v4706_v3 = vsel %vm990_vm2, %v10306_v0, 0.0 }
 0x7a0   :  { %11130 = vst [vmem:[#allocation30_spill] sm:$0xff] %v10308_v6  ;;  %v10312_v56 = vpop.eup %8863  ;;  %4707 = vadd.xlane.f32.xlu0 %v4706_v3 }
 0x7a1   :  { %v10314_v16 = vpop.f32.mrf.mxu0  ;;  %v4703_v51 = vsel %vm990_vm2, %v10312_v56, 0.0 }
 0x7a2   :  { %4704 = vadd.xlane.f32.xlu1 %v4703_v51 }
 0x7a3   :  { %v10318_v4 = vpop.f32.mrf.mxu0 }
 0x7a5   :  { %v10320_v1 = vpop.f32.mrf.mxu0 }
 0x7a6   :  { %11131 = vst [vmem:[#allocation31_spill] sm:$0xff] %v10320_v1 }
 0x7a7   :  { %v10322_v38 = vpop.f32.mrf.mxu0 }
 0x7a8   :  { %11132 = vst [vmem:[#allocation32_spill] sm:$0xff] %v10322_v38 }
 0x7a9   :  { %v10324_v7 = vpop.eup %8865  ;;  %v10326_v13 = vpop.f32.mrf.mxu0 }
 0x7aa   :  { %11133 = vst [vmem:[#allocation33_spill] sm:$0xff] %v10326_v13  ;;  %v4718_v57 = vsel %vm990_vm2, %v10324_v7, 0.0 }
 0x7ab   :  { %v10330_v3 = vpop.eup %8867  ;;  %v10332_v6 = vpop.f32.mrf.mxu0  ;;  %4719 = vadd.xlane.f32.xlu0 %v4718_v57 }
 0x7ac   :  { %11134 = vst [vmem:[#allocation34_spill] sm:$0xff] %v10332_v6  ;;  %v4715_v51 = vsel %vm990_vm2, %v10330_v3, 0.0 }
 0x7ad   :  { %v10336_v25 = vpop.f32.mrf.mxu0  ;;  %4716 = vadd.xlane.f32.xlu1 %v4715_v51 }
 0x7ae   :  { %v4580_v15 = vsel %vm990_vm2, %v10336_v25, -inf }
 0x7af   :  { %v3931_v36 = vpop.f32.mrf.mxu0 }
 0x7b0   :  { %v4577_v55 = vsel %vm990_vm2, %v3931_v36, -inf }
 0x7b1   :  { %4578 = vmax.xlane.f32.xlu0 %v4577_v55  ;;  %4581 = vmax.xlane.f32.xlu1 %v4580_v15 }
 0x7b5   :  { %v8456_v32 = vpop.f32.mrf.mxu0 }
 0x7b6   :  { %v4592_v2 = vsel %vm990_vm2, %v8456_v32, -inf }
 0x7b7   :  { %v10342_v34 = vpop.f32.mrf.mxu0  ;;  %4593 = vmax.xlane.f32.xlu0 %v4592_v2 }
 0x7b8   :  { %v4589_v57 = vsel %vm990_vm2, %v10342_v34, -inf }
 0x7b9   :  { %4590 = vmax.xlane.f32.xlu1 %v4589_v57 }
 0x7bd   :  { %v10346_v10 = vpop.f32.mrf.mxu0 }
 0x7be   :  { %v4604_v51 = vsel %vm990_vm2, %v10346_v10, -inf }
 0x7bf   :  { %v10350_v12 = vpop.f32.mrf.mxu0  ;;  %4605 = vmax.xlane.f32.xlu0 %v4604_v51 }
 0x7c0   :  { %v4601_v15 = vsel %vm990_vm2, %v10350_v12, -inf }
 0x7c1   :  { %4602 = vmax.xlane.f32.xlu1 %v4601_v15 }
 0x7c5   :  { %v10354_v55 = vpop.f32.mrf.mxu0 }
 0x7c6   :  { %v4616_v2 = vsel %vm990_vm2, %v10354_v55, -inf }
 0x7c7   :  { %v10358_v63 = vpop.f32.mrf.mxu0  ;;  %4617 = vmax.xlane.f32.xlu0 %v4616_v2 }
 0x7c8   :  { %v4613_v57 = vsel %vm990_vm2, %v10358_v63, -inf }
 0x7c9   :  { %4614 = vmax.xlane.f32.xlu1 %v4613_v57 }
 0x7da   :  { %5188 = vrot.lane.b32.xlu1 %v9149_v46, %s8988_s13 }
 0x7dd   :  { %5190 = vrot.lane.b32.xlu0 %v9144_v43, %s8988_s13 }
 0x819   :  { %v4684_v51 = vpop.xlane.xlu0 %4683 }
 0x81a   :  { %8869 = vrcp.f32 %v4684_v51 }
 0x81d   :  { %v4681_v15 = vpop.xlane.xlu1 %4680 }
 0x81e   :  { %8871 = vrcp.f32 %v4681_v15 }
 0x821   :  { %v4696_v6 = vpop.xlane.xlu0 %4695 }
 0x822   :  { %8873 = vrcp.f32 %v4696_v6 }
 0x823   :  { %v4693_v59 = vpop.xlane.xlu1 %4692 }
 0x824   :  { %8875 = vrcp.f32 %v4693_v59 }
 0x827   :  { %v8870_v13 = vpop.eup %8869 }
 0x828   :  { %v4740_v38 = vmul.f32 %v8870_v13, %v10279_v45 }
 0x829   :  { %v4708_v6 = vpop.xlane.xlu0 %4707 }
 0x82b   :  { %v8872_v2 = vpop.eup %8871  ;;  %v4705_v42 = vpop.xlane.xlu1 %4704 }
 0x82c   :  { %8877 = vrcp.f32 %v4705_v42  ;;  %v4739_v57 = vmul.f32 %v8872_v2, %v10285_v30 }
 0x82e   :  { %8503 = vmatprep.mubr.msk.f32.mxu1 %vm990_vm2, %v4739_v57 }
 0x82f   :  { %8504 = vmatmul.mubr.msk.f32.vlgmr.msra.gmra.mxu1 %vm990_vm2, %v4740_v38  ;;  %v8874_v27 = vpop.eup %8873 }
 0x830   :  { %8514 = vmatpush3.msra.mxu1 %v10133_v21  ;;  %v4744_v42 = vmul.f32 %v8874_v27, %v10291_v20 }
 0x831   :  { %v8876_v51 = vpop.eup %8875  ;;  %8515 = vmatprep.subr.mxu1 %v10265_v18 }
 0x832   :  { %8516 = vmatpush3.msra.mxu1 %v10265_v18  ;;  %v4743_v59 = vmul.f32 %v8876_v51, %v10297_v53 }
 0x834   :  { %8517 = vmatprep.mubr.msk.f32.mxu1 %vm990_vm2, %v4743_v59  ;;  %v10377_v45 = vpop.xlane.xlu0 %4719 }
 0x835   :  { %8518 = vmatmul.mubr.msk.f32.vlgmr.msra.gmra.mxu1 %vm990_vm2, %v4744_v42 }
 0x836   :  { %v4717_v30 = vpop.xlane.xlu1 %4716 }
 0x839   :  { %v8878_v38 = vpop.eup %8877 }
 0x83a   :  { %v4579_v13 = vpop.xlane.xlu0 %4578  ;;  %v4582_v21 = vpop.xlane.xlu1 %4581  ;;  %v4747_v15 = vmul.f32 %v8878_v38, %v10312_v56 }
 0x83b   :  { %v4625_v2 = vsub.f32 %v3931_v36, %v4579_v13  ;;  %v4626_v57 = vsub.f32 %v10336_v25, %v4582_v21 }
 0x83c   :  { %8531 = vmatprep.mubr.msk.f32.mxu1 %vm990_vm2, %v4747_v15 }
 0x83d   :  { %v4641_v18 = vmul.f32 1.442695, %v4625_v2  ;;  %v4643_v53 = vmul.f32 1.442695, %v4626_v57 }
 0x83f   :  { %8879 = vpow2.f32 %v4641_v18 }
 0x840   :  { %8881 = vpow2.f32 %v4643_v53  ;;  %v4594_v27 = vpop.xlane.xlu0 %4593 }
 0x841   :  { %v4630_v20 = vsub.f32 %v8456_v32, %v4594_v27 }
 0x842   :  { %v4591_v51 = vpop.xlane.xlu1 %4590 }
 0x843   :  { %v4651_v59 = vmul.f32 1.442695, %v4630_v20  ;;  %v4629_v42 = vsub.f32 %v10342_v34, %v4591_v51 }
 0x845   :  { %8883 = vpow2.f32 %v4651_v59  ;;  %v4649_v1 = vmul.f32 1.442695, %v4629_v42 }
 0x846   :  { %8885 = vrcp.f32 %v4708_v6 }
 0x847   :  { %8887 = vpow2.f32 %v4649_v1 }
 0x848   :  { %8889 = vrcp.f32 %v4717_v30  ;;  %v4606_v36 = vpop.xlane.xlu0 %4605 }
 0x849   :  { %v4634_v25 = vsub.f32 %v10346_v10, %v4606_v36 }
 0x84a   :  { %v4603_v21 = vpop.xlane.xlu1 %4602 }
 0x84b   :  { %v4659_v56 = vmul.f32 1.442695, %v4634_v25  ;;  %v4633_v36 = vsub.f32 %v10350_v12, %v4603_v21 }
 0x84c   :  { %v10384_v38 = vpop.eup %8879 }
 0x84d   :  { %v10386_v13 = vpop.eup %8881  ;;  %8891 = vpow2.f32 %v4659_v56  ;;  %v4673_v32 = vsel %vm990_vm2, %v10384_v38, 0.0 }
 0x84e   :  { %4674 = vadd.xlane.f32.xlu1 %v4673_v32  ;;  %v4676_v34 = vsel %vm990_vm2, %v10386_v13, 0.0 }
 0x84f   :  { %4677 = vadd.xlane.f32.xlu0 %v4676_v34 }
 0x850   :  { %v4618_v1 = vpop.xlane.xlu0 %4617 }
 0x851   :  { %v4638_v25 = vsub.f32 %v10354_v55, %v4618_v1 }
 0x852   :  { %v10392_v6 = vpop.eup %8883  ;;  %v4615_v30 = vpop.xlane.xlu1 %4614 }
 0x853   :  { %v8886_v10 = vpop.eup %8885  ;;  %v4688_v15 = vsel %vm990_vm2, %v10392_v6, 0.0  ;;  %v4667_v32 = vmul.f32 1.442695, %v4638_v25 }
 0x854   :  { %v10396_v2 = vpop.eup %8887  ;;  %v5191_v57 = vpop.permute.xlu0 %5190  ;;  %4689 = vadd.xlane.f32.xlu0 %v4688_v15  ;;  %v4748_v20 = vmul.f32 %v8886_v10, %v10306_v0  ;;  %v4657_v0 = vmul.f32 1.442695, %v4633_v36 }
 0x855   :  { %v8890_v18 = vpop.eup %8889  ;;  %8527 = vmatprep.subr.mxu1 %v5191_v57  ;;  %v4685_v53 = vsel %vm990_vm2, %v10396_v2, 0.0 }
 0x856   :  { %8528 = vmatpush3.msra.mxu1 %v5191_v57  ;;  %4686 = vadd.xlane.f32.xlu1 %v4685_v53  ;;  %v5189_v27 = vpop.permute.xlu1 %5188  ;;  %v4751_v51 = vmul.f32 %v8890_v18, %v10330_v3  ;;  %v4637_v3 = vsub.f32 %v10358_v63, %v4615_v30  ;;  %8893 = vpow2.f32 %v4657_v0  ;;  %v11140_v57 = vld [vmem:[#allocation14_spill] sm:$0xff] }
 0x857   :  { %8529 = vmatprep.subr.mxu1 %v5189_v27 }
 0x858   :  { %8530 = vmatpush3.msra.mxu1 %v5189_v27  ;;  %v4665_v56 = vmul.f32 1.442695, %v4637_v3 }
 0x859   :  { %8532 = vmatmul.mubr.msk.f32.vlgmr.msra.gmra.mxu1 %vm990_vm2, %v4748_v20 }
 0x85a   :  { %v10403_v59 = vpop.eup %8891  ;;  %8545 = vmatprep.mubr.msk.f32.mxu1 %vm990_vm2, %v4751_v51  ;;  %8895 = vpow2.f32 %v4665_v56 }
 0x85b   :  { %v4700_v42 = vsel %vm990_vm2, %v10403_v59, 0.0  ;;  %8897 = vpow2.f32 %v4667_v32 }
 0x85c   :  { %4701 = vadd.xlane.f32.xlu0 %v4700_v42 }
 0x863   :  { %v10415_v34 = vpop.eup %8893 }
 0x864   :  { %v4697_v10 = vsel %vm990_vm2, %v10415_v34, 0.0 }
 0x867   :  { %5275 = vrot.lane.b32.xlu1 %v9159_v50, %s8988_s13  ;;  %v10419_v15 = vpop.eup %8895 }
 0x868   :  { %v10421_v12 = vpop.eup %8897  ;;  %v4709_v63 = vsel %vm990_vm2, %v10419_v15, 0.0 }
 0x869   :  { %v4712_v55 = vsel %vm990_vm2, %v10421_v12, 0.0 }
 0x872   :  { %5277 = vrot.lane.b32.xlu0 %v9157_v48, %s8988_s13 }
 0x88b   :  { %4698 = vadd.xlane.f32.xlu1 %v4697_v10 }
 0x88f   :  { %4710 = vadd.xlane.f32.xlu1 %v4709_v63 }
 0x891   :  { %4713 = vadd.xlane.f32.xlu0 %v4712_v55 }
 0x8a0   :  { %5362 = vrot.lane.b32.xlu1 %v9171_v54, %s8988_s13 }
 0x8a4   :  { %5662 = vrot.lane.b32.xlu1 %v9103_v24, %s8989_s18 }
 0x8a7   :  { %5364 = vrot.lane.b32.xlu0 %v9165_v52, %s8988_s13 }
 0x8a8   :  { %5755 = vrot.lane.b32.xlu1 %v9107_v26, %s8989_s18 }
 0x8ab   :  { %5664 = vrot.lane.b32.xlu0 %v9101_v22, %s8989_s18 }
 0x8ac   :  { %5753 = vrot.lane.b32.xlu1 %v9112_v29, %s8989_s18 }
 0x8af   :  { %5658 = vrot.lane.b32.xlu0 %v11091_v14, %s8990_s19  ;;  %v11138_v14 = vld [vmem:[#allocation13_spill] sm:$0xff] }
 0x8b0   :  { %5846 = vrot.lane.b32.xlu1 %v9120_v31, %s8989_s18 }
 0x8b3   :  { %5660 = vrot.lane.b32.xlu0 %v11088_v49, %s8990_s19  ;;  %v11135_v49 = vld [vmem:[#allocation8_spill] sm:$0xff] }
 0x8b4   :  { %5844 = vrot.lane.b32.xlu1 %v9122_v33, %s8989_s18 }
 0x8b7   :  { %5749 = vrot.lane.b32.xlu0 %v11092_v19, %s8990_s19 }
 0x8b8   :  { %5937 = vrot.lane.b32.xlu1 %v9128_v35, %s8989_s18 }
 0x8bb   :  { %5751 = vrot.lane.b32.xlu0 %v11089_v40, %s8990_s19  ;;  %v11136_v40 = vld [vmem:[#allocation11_spill] sm:$0xff] }
 0x8bc   :  { %5935 = vrot.lane.b32.xlu1 %v9130_v37, %s8989_s18 }
 0x8bf   :  { %5840 = vrot.lane.b32.xlu0 %v11093_v9, %s8990_s19  ;;  %v11137_v9 = vld [vmem:[#allocation9_spill] sm:$0xff] }
 0x8c0   :  { %5931 = vrot.lane.b32.xlu1 %v11094_v23, %s8990_s19 }
 0x8c3   :  { %5842 = vrot.lane.b32.xlu0 %v11135_v49, %s8990_s19 }
 0x8c4   :  { %6026 = vrot.lane.b32.xlu1 %v9138_v41, %s8989_s18 }
 0x8c7   :  { %6028 = vrot.lane.b32.xlu0 %v11087_v39, %s8989_s18 }
 0x8c8   :  { %6022 = vrot.lane.b32.xlu1 %v9147_v44, %s8990_s19 }
 0x8cb   :  { %5933 = vrot.lane.b32.xlu0 %v11136_v40, %s8990_s19 }
 0x8cc   :  { %6117 = vrot.lane.b32.xlu1 %v9149_v46, %s8989_s18 }
 0x8cf   :  { %6119 = vrot.lane.b32.xlu0 %v9144_v43, %s8989_s18 }
 0x8d0   :  { %6113 = vrot.lane.b32.xlu1 %v9285_v17, %s8990_s19 }
 0x8d3   :  { %6024 = vrot.lane.b32.xlu0 %v11137_v9, %s8990_s19 }
 0x8d4   :  { %6208 = vrot.lane.b32.xlu1 %v9159_v50, %s8989_s18 }
 0x8d7   :  { %6210 = vrot.lane.b32.xlu0 %v9157_v48, %s8989_s18  ;;  %v4675_v44 = vpop.xlane.xlu1 %4674 }
 0x8d8   :  { %v4678_v23 = vpop.xlane.xlu0 %4677  ;;  %6204 = vrot.lane.b32.xlu1 %v9264_v11, %s8990_s19  ;;  %8899 = vrcp.f32 %v4675_v44  ;;  %v11139_v11 = vld [vmem:[#allocation12_spill] sm:$0xff] }
 0x8d9   :  { %8901 = vrcp.f32 %v4678_v23 }
 0x8db   :  { %6115 = vrot.lane.b32.xlu0 %v11138_v14, %s8990_s19 }
 0x8dc   :  { %6299 = vrot.lane.b32.xlu1 %v9171_v54, %s8989_s18 }
 0x8dd   :  { %v4690_v17 = vpop.xlane.xlu0 %4689 }
 0x8de   :  { %8903 = vrcp.f32 %v4690_v17 }
 0x8df   :  { %6301 = vrot.lane.b32.xlu0 %v9165_v52, %s8989_s18  ;;  %v4687_v19 = vpop.xlane.xlu1 %4686 }
 0x8e0   :  { %8905 = vrcp.f32 %v4687_v19  ;;  %6297 = vrot.lane.b32.xlu1 %v11095_v5, %s8990_s19 }
 0x8e1   :  { %8907 = vrcp.f32 %v10377_v45 }
 0x8e3   :  { %6206 = vrot.lane.b32.xlu0 %v11139_v11, %s8990_s19 }
 0x8e5   :  { %v8900_v21 = vpop.eup %8899 }
 0x8e6   :  { %v8902_v1 = vpop.eup %8901  ;;  %v4737_v30 = vmul.f32 %v8900_v21, %v10384_v38  ;;  %v4702_v38 = vpop.xlane.xlu0 %4701 }
 0x8e7   :  { %6295 = vrot.lane.b32.xlu0 %v11140_v57, %s8990_s19  ;;  %v4738_v18 = vmul.f32 %v8902_v1, %v10386_v13  ;;  %8909 = vrcp.f32 %v4702_v38 }
 0x8e8   :  { %8496 = vmatprep.mubr.msk.f32.mxu0 %vm990_vm2, %v4737_v30 }
 0x8e9   :  { %8497 = vmatmul.mubr.msk.f32.vlgmr.msra.gmra.mxu0 %vm990_vm2, %v4738_v18 }
 0x8ea   :  { %8507 = vmatpush3.msra.mxu0 %v10242_v47  ;;  %v5278_v47 = vpop.permute.xlu0 %5277 }
 0x8eb   :  { %8508 = vmatprep.subr.mxu0 %v10259_v8  ;;  %v8904_v5 = vpop.eup %8903 }
 0x8ec   :  { %8509 = vmatpush3.msra.mxu0 %v10259_v8  ;;  %v4742_v20 = vmul.f32 %v8904_v5, %v10392_v6  ;;  %v5276_v8 = vpop.permute.xlu1 %5275 }
 0x8ed   :  { %v8906_v53 = vpop.eup %8905  ;;  %8520 = vmatprep.subr.mxu0 %v10261_v58 }
 0x8ee   :  { %v4741_v27 = vmul.f32 %v8906_v53, %v10396_v2  ;;  %v8908_v42 = vpop.eup %8907 }
 0x8f0   :  { %8510 = vmatprep.mubr.msk.f32.mxu0 %vm990_vm2, %v4741_v27 }
 0x8f1   :  { %8511 = vmatmul.mubr.msk.f32.vlgmr.msra.gmra.mxu0 %vm990_vm2, %v4742_v20 }
 0x8f2   :  { %8521 = vmatpush3.msra.mxu0 %v10261_v58 }
 0x8f3   :  { %8522 = vmatprep.subr.mxu0 %v10271_v60 }
 0x8f4   :  { %8523 = vmatpush3.msra.mxu0 %v10271_v60  ;;  %v8910_v0 = vpop.eup %8909  ;;  %v4752_v60 = vmul.f32 %v8908_v42, %v10324_v7 }
 0x8f5   :  { %8534 = vmatprep.subr.mxu0 %v5278_v47  ;;  %v4746_v32 = vmul.f32 %v8910_v0, %v10403_v59 }
 0x914   :  { %v4699_v13 = vpop.xlane.xlu1 %4698 }
 0x915   :  { %8911 = vrcp.f32 %v4699_v13 }
 0x918   :  { %v4711_v2 = vpop.xlane.xlu1 %4710 }
 0x919   :  { %8913 = vrcp.f32 %v4711_v2 }
 0x91a   :  { %v4714_v6 = vpop.xlane.xlu0 %4713 }
 0x91b   :  { %8915 = vrcp.f32 %v4714_v6 }
 0x91c   :  { %v5363_v51 = vpop.permute.xlu1 %5362 }
 0x91e   :  { %v5365_v36 = vpop.permute.xlu0 %5364 }
 0x91f   :  { %8541 = vmatprep.subr.mxu1 %v5365_v36 }
 0x920   :  { %8542 = vmatpush3.msra.mxu1 %v5365_v36  ;;  %v5663_v58 = vpop.permute.xlu1 %5662  ;;  %v8505_v36 = vpop.f32.mrf.mxu1 }
 0x921   :  { %8543 = vmatprep.subr.mxu1 %v5363_v51 }
 0x922   :  { %v8912_v3 = vpop.eup %8911  ;;  %v5665_v25 = vpop.permute.xlu0 %5664  ;;  %8544 = vmatpush3.msra.mxu1 %v5363_v51 }
 0x923   :  { %8546 = vmatmul.mubr.msk.f32.vlgmr.msra.gmra.mxu1 %vm990_vm2, %v4752_v60  ;;  %8574 = vmatprep.subr.msk.mxu1 %vm267_vm1, %v5665_v25  ;;  %v4745_v45 = vmul.f32 %v8912_v3, %v10415_v34  ;;  %v259_v34 = vld [vmem:[%s11006_s3 + $0x10] sm:$0xff]  ;;  %v4918_v60 = vpop.f32.mrf.mxu1 }
 0x924   :  { %8575 = vmatpush3.xpose.msk.msra.mxu1 %vm267_vm1, %v5665_v25  ;;  %v5756_v56 = vpop.permute.xlu1 %5755 }
 0x925   :  { %8524 = vmatprep.mubr.msk.f32.mxu0 %vm990_vm2, %v4745_v45  ;;  %8576 = vmatprep.subr.msk.mxu1 %vm267_vm1, %v5663_v58  ;;  %v8519_v3 = vpop.f32.mrf.mxu1 }
 0x926   :  { %v8914_v10 = vpop.eup %8913  ;;  %v5659_v7 = vpop.permute.xlu0 %5658  ;;  %8525 = vmatmul.mubr.msk.f32.vlgmr.msra.gmra.mxu0 %vm990_vm2, %v4746_v32 }
 0x927   :  { %8535 = vmatpush3.msra.mxu0 %v5278_v47  ;;  %8578 = vmatprep.mubr.msk.f32.mxu1 %vm267_vm1, %v5659_v7  ;;  %v4749_v63 = vmul.f32 %v8914_v10, %v10419_v15 }
 0x928   :  { %v8916_v55 = vpop.eup %8915  ;;  %8536 = vmatprep.subr.mxu0 %v5276_v8  ;;  %8577 = vmatpush3.xpose.msk.msra.mxu1 %vm267_vm1, %v5663_v58  ;;  %v5754_v59 = vpop.permute.xlu1 %5753 }
 0x929   :  { %8537 = vmatpush3.msra.mxu0 %v5276_v8  ;;  %8538 = vmatprep.mubr.msk.f32.mxu0 %vm990_vm2, %v4749_v63  ;;  %v4750_v49 = vmul.f32 %v8916_v55, %v10421_v12 }
 0x92a   :  { %8581 = vmatprep.subr.msk.mxu1 %vm267_vm1, %v5756_v56  ;;  %v5661_v40 = vpop.permute.xlu0 %5660  ;;  %8548 = vmatprep.subr.mxu0 %v259_v34 }
 0x92b   :  { %8539 = vmatmul.mubr.msk.f32.vlgmr.msra.gmra.mxu0 %vm990_vm2, %v4750_v49  ;;  %8579 = vmatmul.mubr.msk.f32.vlgmr.msra.gmra.mxu1 %vm267_vm1, %v5661_v40 }
 0x92c   :  { %8582 = vmatpush3.xpose.msk.msra.mxu1 %vm267_vm1, %v5756_v56  ;;  %v5847_v15 = vpop.permute.xlu1 %5846  ;;  %8549 = vmatpush3.msra.mxu0 %v259_v34  ;;  %v5092_v56 = vpop.f32.mrf.mxu1 }
 0x92d   :  { %8583 = vmatprep.subr.msk.mxu1 %vm267_vm1, %v5754_v59 }
 0x92e   :  { %v5750_v9 = vpop.permute.xlu0 %5749  ;;  %v8533_v32 = vpop.f32.mrf.mxu1 }
 0x92f   :  { %8585 = vmatprep.mubr.msk.f32.mxu1 %vm267_vm1, %v5750_v9 }
 0x930   :  { %8584 = vmatpush3.xpose.msk.msra.mxu1 %vm267_vm1, %v5754_v59  ;;  %v5845_v12 = vpop.permute.xlu1 %5844  ;;  %v5266_v10 = vpop.f32.mrf.mxu1 }
 0x931   :  { %8588 = vmatprep.subr.msk.mxu1 %vm267_vm1, %v5847_v15 }
 0x932   :  { %v5752_v44 = vpop.permute.xlu0 %5751 }
 0x933   :  { %8586 = vmatmul.mubr.msk.f32.vlgmr.msra.gmra.mxu1 %vm267_vm1, %v5752_v44 }
 0x934   :  { %8589 = vmatpush3.xpose.msk.msra.mxu1 %vm267_vm1, %v5847_v15  ;;  %v5938_v23 = vpop.permute.xlu1 %5937 }
 0x935   :  { %8590 = vmatprep.subr.msk.mxu1 %vm267_vm1, %v5845_v12 }
 0x936   :  { %v5841_v14 = vpop.permute.xlu0 %5840 }
 0x937   :  { %8592 = vmatprep.mubr.msk.f32.mxu1 %vm267_vm1, %v5841_v14 }
 0x938   :  { %8591 = vmatpush3.xpose.msk.msra.mxu1 %vm267_vm1, %v5845_v12  ;;  %v5936_v17 = vpop.permute.xlu1 %5935 }
 0x939   :  { %8595 = vmatprep.subr.msk.mxu1 %vm267_vm1, %v5938_v23 }
 0x93a   :  { %v5843_v19 = vpop.permute.xlu0 %5842 }
 0x93b   :  { %8593 = vmatmul.mubr.msk.f32.vlgmr.msra.gmra.mxu1 %vm267_vm1, %v5843_v19 }
 0x93c   :  { %8596 = vmatpush3.xpose.msk.msra.mxu1 %vm267_vm1, %v5938_v23  ;;  %v5932_v11 = vpop.permute.xlu1 %5931 }
 0x93d   :  { %8597 = vmatprep.subr.msk.mxu1 %vm267_vm1, %v5936_v17  ;;  %8599 = vmatprep.mubr.msk.f32.mxu1 %vm267_vm1, %v5932_v11 }
 0x93e   :  { %v6029_v21 = vpop.permute.xlu0 %6028 }
 0x93f   :  { %8602 = vmatprep.subr.msk.mxu0 %vm267_vm1, %v6029_v21 }
 0x940   :  { %8598 = vmatpush3.xpose.msk.msra.mxu1 %vm267_vm1, %v5936_v17  ;;  %v6027_v1 = vpop.permute.xlu1 %6026 }
 0x942   :  { %v5934_v30 = vpop.permute.xlu0 %5933 }
 0x943   :  { %8600 = vmatmul.mubr.msk.f32.vlgmr.msra.gmra.mxu1 %vm267_vm1, %v5934_v30 }
 0x944   :  { %v10549_v57 = vpop.permute.xlu1 %6022 }
 0x946   :  { %v6120_v18 = vpop.permute.xlu0 %6119 }
 0x947   :  { %8609 = vmatprep.subr.msk.mxu1 %vm267_vm1, %v6120_v18 }
 0x948   :  { %8610 = vmatpush3.xpose.msk.msra.mxu1 %vm267_vm1, %v6120_v18  ;;  %v6118_v5 = vpop.permute.xlu1 %6117 }
 0x949   :  { %8611 = vmatprep.subr.msk.mxu1 %vm267_vm1, %v6118_v5 }
 0x94a   :  { %v10554_v53 = vpop.permute.xlu0 %6024 }
 0x94c   :  { %8612 = vmatpush3.xpose.msk.msra.mxu1 %vm267_vm1, %v6118_v5  ;;  %v6114_v38 = vpop.permute.xlu1 %6113 }
 0x94d   :  { %8613 = vmatprep.mubr.msk.f32.mxu1 %vm267_vm1, %v6114_v38 }
 0x94e   :  { %v10558_v27 = vpop.permute.xlu0 %6210 }
 0x950   :  { %v10560_v20 = vpop.permute.xlu1 %6208 }
 0x952   :  { %v6116_v47 = vpop.permute.xlu0 %6115 }
 0x953   :  { %8614 = vmatmul.mubr.msk.f32.vlgmr.msra.gmra.mxu1 %vm267_vm1, %v6116_v47 }
 0x954   :  { %v10563_v8 = vpop.permute.xlu1 %6204 }
 0x956   :  { %v6302_v13 = vpop.permute.xlu0 %6301 }
 0x957   :  { %8623 = vmatprep.subr.msk.mxu1 %vm267_vm1, %v6302_v13 }
 0x958   :  { %8624 = vmatpush3.xpose.msk.msra.mxu1 %vm267_vm1, %v6302_v13  ;;  %v6300_v2 = vpop.permute.xlu1 %6299 }
 0x959   :  { %8625 = vmatprep.subr.msk.mxu1 %vm267_vm1, %v6300_v2 }
 0x95a   :  { %v10568_v6 = vpop.permute.xlu0 %6206 }
 0x95c   :  { %8626 = vmatpush3.xpose.msk.msra.mxu1 %vm267_vm1, %v6300_v2  ;;  %v6298_v42 = vpop.permute.xlu1 %6297 }
 0x95e   :  { %v6296_v51 = vpop.permute.xlu0 %6295 }
 0x95f   :  { %8627 = vmatprep.mubr.msk.f32.mxu1 %vm267_vm1, %v6296_v51 }
 0x960   :  { %8628 = vmatmul.mubr.msk.f32.vlgmr.msra.gmra.mxu1 %vm267_vm1, %v6298_v42  ;;  %v3771_v42 = vadd.f32 %v10318_v4, %v10253_v28  ;;  %v11146_v4 = vld [vmem:[#allocation27_spill] sm:$0xff] }
 0x9a9   :  { %v8498_v58 = vpop.f32.mrf.mxu0 }
 0x9ab   :  { %v4831_v0 = vpop.f32.mrf.mxu0 }
 0x9ac   :  { %8550 = vmatprep.mubr.msk.f32.mxu0 %vm267_vm1, %v4831_v0  ;;  %v11141_v0 = vld [vmem:[#allocation31_spill] sm:$0xff] }
 0x9ad   :  { %8551 = vmatmul.mubr.msk.f32.vlgmr.msra.gmra.mxu0 %vm267_vm1, %v8498_v58 }
 0x9ae   :  { %8603 = vmatpush3.xpose.msk.msra.mxu0 %vm267_vm1, %v6029_v21  ;;  %8553 = vmatprep.mubr.msk.f32.mxu0 %vm267_vm1, %v4918_v60  ;;  %v3786_v60 = vadd.f32 %v11141_v0, %v10255_v62 }
 0x9af   :  { %8604 = vmatprep.subr.msk.mxu0 %vm267_vm1, %v6027_v1 }
 0x9b1   :  { %v8512_v25 = vpop.f32.mrf.mxu0  ;;  %8554 = vmatmul.mubr.msk.f32.gmra.mxu0 %vm267_vm1, %v8505_v36 }
 0x9b2   :  { %8605 = vmatpush3.xpose.msk.msra.mxu0 %vm267_vm1, %v6027_v1 }
 0x9b3   :  { %v5005_v45 = vpop.f32.mrf.mxu0  ;;  %8616 = vmatprep.subr.msk.mxu0 %vm267_vm1, %v10558_v27 }
 0x9b4   :  { %8556 = vmatprep.mubr.msk.f32.mxu0 %vm267_vm1, %v5005_v45  ;;  %v11142_v45 = vld [vmem:[#allocation22_spill] sm:$0xff] }
 0x9b5   :  { %8557 = vmatmul.mubr.msk.f32.gmra.mxu0 %vm267_vm1, %v8512_v25 }
 0x9b6   :  { %8559 = vmatprep.mubr.msk.f32.mxu0 %vm267_vm1, %v5092_v56  ;;  %v11143_v56 = vld [vmem:[#allocation32_spill] sm:$0xff] }
 0x9b9   :  { %8560 = vmatmul.mubr.msk.f32.gmra.mxu0 %vm267_vm1, %v8519_v3 }
 0x9e3   :  { %v8547_v7 = vpop.f32.mrf.mxu1 }
 0x9e5   :  { %v5440_v55 = vpop.f32.mrf.mxu1 }
 0x9e6   :  { %v8526_v63 = vpop.f32.mrf.mxu0 }
 0x9e8   :  { %v5179_v34 = vpop.f32.mrf.mxu0 }
 0x9e9   :  { %8562 = vmatprep.mubr.msk.f32.mxu0 %vm267_vm1, %v5179_v34 }
 0x9ea   :  { %8563 = vmatmul.mubr.msk.f32.gmra.mxu0 %vm267_vm1, %v8526_v63 }
 0x9eb   :  { %v8540_v59 = vpop.f32.mrf.mxu0  ;;  %8565 = vmatprep.mubr.msk.f32.mxu0 %vm267_vm1, %v5266_v10  ;;  %v10589_v49 = vpop.f32.mrf.mxu1 }
 0x9ec   :  { %v6389_v40 = vsel %vm990_vm2, %v10589_v49, -inf }
 0x9ed   :  { %v5353_v15 = vpop.f32.mrf.mxu0  ;;  %6390 = vmax.xlane.f32.xlu1 %v6389_v40  ;;  %v10593_v9 = vpop.f32.mrf.mxu1 }
 0x9ee   :  { %8566 = vmatmul.mubr.msk.f32.gmra.mxu0 %vm267_vm1, %v8533_v32  ;;  %v6386_v12 = vsel %vm990_vm2, %v10593_v9, -inf  ;;  %v3781_v32 = vadd.f32 %v11143_v56, %v11142_v45 }
 0x9ef   :  { %8568 = vmatprep.mubr.msk.f32.mxu0 %vm267_vm1, %v5353_v15  ;;  %6387 = vmax.xlane.f32.xlu0 %v6386_v12 }
 0x9f2   :  { %8569 = vmatmul.mubr.msk.f32.gmra.mxu0 %vm267_vm1, %v8540_v59 }
 0x9f3   :  { %8571 = vmatprep.mubr.msk.f32.mxu0 %vm267_vm1, %v5440_v55  ;;  %v10601_v44 = vpop.f32.mrf.mxu1  ;;  %v11147_v55 = vld [vmem:[#allocation34_spill] sm:$0xff] }
 0x9f4   :  { %v6395_v23 = vsel %vm990_vm2, %v10601_v44, -inf  ;;  %v3791_v59 = vadd.f32 %v11147_v55, %v11146_v4 }
 0x9f5   :  { %6396 = vmax.xlane.f32.xlu0 %v6395_v23  ;;  %v10605_v14 = vpop.f32.mrf.mxu1  ;;  %v11148_v23 = vld [vmem:[#allocation24_spill] sm:$0xff] }
 0x9f6   :  { %8572 = vmatmul.mubr.msk.f32.gmra.mxu0 %vm267_vm1, %v8547_v7  ;;  %v6392_v17 = vsel %vm990_vm2, %v10605_v14, -inf }
 0x9f7   :  { %8606 = vmatprep.mubr.msk.f32.mxu0 %vm267_vm1, %v10549_v57 }
 0x9f9   :  { %6393 = vmax.xlane.f32.xlu0 %v6392_v17  ;;  %v11149_v17 = vld [vmem:[#allocation3_spill] sm:$0xff] }
 0x9fa   :  { %8607 = vmatmul.mubr.msk.f32.vlgmr.msra.gmra.mxu0 %vm267_vm1, %v10554_v53 }
 0x9fb   :  { %8617 = vmatpush3.xpose.msk.msra.mxu0 %vm267_vm1, %v10558_v27  ;;  %v10616_v19 = vpop.f32.mrf.mxu1  ;;  %8620 = vmatprep.mubr.msk.f32.mxu0 %vm267_vm1, %v10563_v8 }
 0x9fc   :  { %8618 = vmatprep.subr.msk.mxu0 %vm267_vm1, %v10560_v20  ;;  %v6401_v11 = vsel %vm990_vm2, %v10616_v19, -inf }
 0x9fd   :  { %6402 = vmax.xlane.f32.xlu0 %v6401_v11  ;;  %v10624_v21 = vpop.f32.mrf.mxu1  ;;  %v3806_v11 = vadd.f32 %v11149_v17, %v11148_v23 }
 0x9fe   :  { %v6398_v1 = vsel %vm990_vm2, %v10624_v21, -inf }
 0x9ff   :  { %8619 = vmatpush3.xpose.msk.msra.mxu0 %vm267_vm1, %v10560_v20  ;;  %6399 = vmax.xlane.f32.xlu1 %v6398_v1 }
 0xa02   :  { %8621 = vmatmul.mubr.msk.f32.vlgmr.msra.gmra.mxu0 %vm267_vm1, %v10568_v6  ;;  %v3776_v6 = vadd.f32 %v10314_v16, %v10251_v61  ;;  %v11144_v61 = vld [vmem:[#allocation18_spill] sm:$0xff]  ;;  %v11145_v16 = vld [vmem:[#allocation33_spill] sm:$0xff] }
 0xa03   :  { %v10632_v30 = vpop.f32.mrf.mxu1  ;;  %v3796_v63 = vadd.f32 %v11145_v16, %v11144_v61 }
 0xa04   :  { %v6407_v57 = vsel %vm990_vm2, %v10632_v30, -inf }
 0xa05   :  { %6408 = vmax.xlane.f32.xlu0 %v6407_v57  ;;  %v10636_v18 = vpop.f32.mrf.mxu1 }
 0xa06   :  { %v6404_v5 = vsel %vm990_vm2, %v10636_v18, -inf }
 0xa07   :  { %6405 = vmax.xlane.f32.xlu1 %v6404_v5 }
 0xa13   :  { %v10640_v53 = vpop.f32.mrf.mxu1 }
 0xa14   :  { %v6419_v38 = vsel %vm990_vm2, %v10640_v53, -inf }
 0xa15   :  { %6420 = vmax.xlane.f32.xlu0 %v6419_v38  ;;  %v10644_v27 = vpop.f32.mrf.mxu1 }
 0xa16   :  { %v6416_v20 = vsel %vm990_vm2, %v10644_v27, -inf }
 0xa17   :  { %6417 = vmax.xlane.f32.xlu1 %v6416_v20 }
 0xa20   :  { %v10648_v47 = vpop.f32.mrf.mxu1 }
 0xa21   :  { %v6431_v8 = vsel %vm990_vm2, %v10648_v47, -inf }
 0xa22   :  { %6432 = vmax.xlane.f32.xlu0 %v6431_v8  ;;  %v10652_v13 = vpop.f32.mrf.mxu1  ;;  %v11150_v8 = vld [vmem:[#allocation17_spill] sm:$0xff] }
 0xa23   :  { %v6428_v2 = vsel %vm990_vm2, %v10652_v13, -inf }
 0xa24   :  { %6429 = vmax.xlane.f32.xlu1 %v6428_v2  ;;  %v11151_v2 = vld [vmem:[#allocation4_spill] sm:$0xff] }
 0xa6d   :  { %v8552_v51 = vpop.f32.mrf.mxu0 }
 0xa6e   :  { %v10660_v36 = vadd.f32 %v8552_v51, %v3776_v6  ;;  %v3801_v6 = vadd.f32 %v11151_v2, %v11150_v8 }
 0xa6f   :  { %v5563_v58 = vpop.f32.mrf.mxu0 }
 0xa70   :  { %v10664_v3 = vadd.f32 %v5563_v58, %v3771_v42 }
 0xa71   :  { %v8555_v25 = vpop.f32.mrf.mxu0 }
 0xa72   :  { %v10668_v10 = vadd.f32 %v8555_v25, %v3786_v60 }
 0xa73   :  { %v5573_v7 = vpop.f32.mrf.mxu0 }
 0xa74   :  { %v10672_v34 = vadd.f32 %v5573_v7, %v3781_v32 }
 0xa75   :  { %v8558_v28 = vpop.f32.mrf.mxu0 }
 0xa76   :  { %v10676_v40 = vadd.f32 %v8558_v28, %v3796_v63  ;;  %v6391_v62 = vpop.xlane.xlu1 %6390 }
 0xa77   :  { %v6435_v15 = vsub.f32 %v10589_v49, %v6391_v62  ;;  %v5583_v12 = vpop.f32.mrf.mxu0 }
 0xa78   :  { %v10681_v1 = vadd.f32 %v5583_v12, %v3791_v59  ;;  %v6388_v57 = vpop.xlane.xlu0 %6387 }
 0xa79   :  { %v6452_v5 = vmul.f32 1.442695, %v6435_v15  ;;  %v6434_v38 = vsub.f32 %v10593_v9, %v6388_v57  ;;  %v8561_v20 = vpop.f32.mrf.mxu0 }
 0xa7a   :  { %v10686_v51 = vadd.f32 %v8561_v20, %v3806_v11 }
 0xa7b   :  { %8917 = vpow2.f32 %v6452_v5  ;;  %v6450_v42 = vmul.f32 1.442695, %v6434_v38  ;;  %v5593_v58 = vpop.f32.mrf.mxu0 }
 0xa7c   :  { %v10688_v49 = vadd.f32 %v5593_v58, %v3801_v6 }
 0xa7d   :  { %8919 = vpow2.f32 %v6450_v42 }
 0xa7e   :  { %v6397_v0 = vpop.xlane.xlu0 %6396 }
 0xa7f   :  { %v6437_v60 = vsub.f32 %v10601_v44, %v6397_v0 }
 0xa81   :  { %v6456_v25 = vmul.f32 1.442695, %v6437_v60 }
 0xa82   :  { %v6394_v45 = vpop.xlane.xlu0 %6393 }
 0xa83   :  { %8921 = vpow2.f32 %v6456_v25  ;;  %v6436_v9 = vsub.f32 %v10605_v14, %v6394_v45 }
 0xa85   :  { %v6454_v56 = vmul.f32 1.442695, %v6436_v9  ;;  %v11153_v9 = vld [vmem:[#allocation5_spill] sm:$0xff] }
 0xa86   :  { %v6403_v32 = vpop.xlane.xlu0 %6402 }
 0xa87   :  { %8923 = vpow2.f32 %v6454_v56  ;;  %v6439_v7 = vsub.f32 %v10616_v19, %v6403_v32 }
 0xa88   :  { %v10693_v61 = vpop.eup %8917  ;;  %v6400_v16 = vpop.xlane.xlu1 %6399 }
 0xa89   :  { %v6460_v63 = vmul.f32 1.442695, %v6439_v7  ;;  %v6438_v28 = vsub.f32 %v10624_v21, %v6400_v16  ;;  %v6485_v4 = vsel %vm990_vm2, %v10693_v61, 0.0  ;;  %v11154_v7 = vld [vmem:[#allocation25_spill] sm:$0xff]  ;;  %v11155_v16 = vld [vmem:[#allocation2_spill] sm:$0xff] }
 0xa8a   :  { %v10698_v44 = vpop.eup %8919  ;;  %6486 = vadd.xlane.f32.xlu0 %v6485_v4  ;;  %v11156_v4 = vld [vmem:[#allocation20_spill] sm:$0xff] }
 0xa8b   :  { %8925 = vpow2.f32 %v6460_v63  ;;  %v6458_v55 = vmul.f32 1.442695, %v6438_v28  ;;  %v6482_v14 = vsel %vm990_vm2, %v10698_v44, 0.0 }
 0xa8c   :  { %6483 = vadd.xlane.f32.xlu1 %v6482_v14 }
 0xa8d   :  { %8927 = vpow2.f32 %v6458_v55  ;;  %v11157_v55 = vld [vmem:[#allocation6_spill] sm:$0xff] }
 0xa8e   :  { %v6409_v19 = vpop.xlane.xlu0 %6408  ;;  %v3826_v14 = vadd.f32 %v11157_v55, %v11156_v4  ;;  %v11166_v4 = vld [vmem:[#allocation30_spill] sm:$0xff]  ;;  %v11167_v55 = vld [vmem:[#allocation23_spill] sm:$0xff] }
 0xa8f   :  { %v6441_v59 = vsub.f32 %v10632_v30, %v6409_v19 }
 0xa90   :  { %v10703_v62 = vpop.eup %8921  ;;  %v6406_v15 = vpop.xlane.xlu1 %6405 }
 0xa91   :  { %v6464_v21 = vmul.f32 1.442695, %v6441_v59  ;;  %v6440_v12 = vsub.f32 %v10636_v18, %v6406_v15  ;;  %v6491_v23 = vsel %vm990_vm2, %v10703_v62, 0.0  ;;  %v11158_v15 = vld [vmem:[#allocation19_spill] sm:$0xff] }
 0xa92   :  { %6492 = vadd.xlane.f32.xlu0 %v6491_v23 }
 0xa93   :  { %8929 = vpow2.f32 %v6464_v21  ;;  %v6462_v17 = vmul.f32 1.442695, %v6440_v12  ;;  %v11159_v21 = vld [vmem:[#allocation7_spill] sm:$0xff] }
 0xa94   :  { %v10708_v11 = vpop.eup %8923  ;;  %v3821_v12 = vadd.f32 %v11159_v21, %v11158_v15 }
 0xa95   :  { %8931 = vpow2.f32 %v6462_v17  ;;  %v6488_v57 = vsel %vm990_vm2, %v10708_v11, 0.0 }
 0xa96   :  { %6489 = vadd.xlane.f32.xlu1 %v6488_v57 }
 0xa98   :  { %v10712_v30 = vpop.eup %8925 }
 0xa99   :  { %v6497_v5 = vsel %vm990_vm2, %v10712_v30, 0.0 }
 0xa9a   :  { %v10716_v38 = vpop.eup %8927  ;;  %6498 = vadd.xlane.f32.xlu0 %v6497_v5  ;;  %v11160_v5 = vld [vmem:[#allocation26_spill] sm:$0xff] }
 0xa9b   :  { %v6494_v18 = vsel %vm990_vm2, %v10716_v38, 0.0 }
 0xa9c   :  { %6495 = vadd.xlane.f32.xlu1 %v6494_v18  ;;  %v11161_v18 = vld [vmem:[#allocation10_spill] sm:$0xff] }
 0xa9e   :  { %v6421_v20 = vpop.xlane.xlu0 %6420 }
 0xa9f   :  { %v6445_v8 = vsub.f32 %v10640_v53, %v6421_v20  ;;  %v11152_v53 = vld [vmem:[#allocation16_spill] sm:$0xff]  ;;  %v3836_v20 = vadd.f32 %v11161_v18, %v11160_v5 }
 0xaa0   :  { %v10721_v2 = vpop.eup %8929  ;;  %v6418_v6 = vpop.xlane.xlu1 %6417  ;;  %v3816_v56 = vadd.f32 %v11153_v9, %v11152_v53 }
 0xaa1   :  { %v6472_v42 = vmul.f32 1.442695, %v6445_v8  ;;  %v6444_v58 = vsub.f32 %v10644_v27, %v6418_v6  ;;  %v6503_v0 = vsel %vm990_vm2, %v10721_v2, 0.0  ;;  %v3811_v27 = vadd.f32 %v11155_v16, %v11154_v7  ;;  %v11165_v7 = vld [vmem:[#allocation21_spill] sm:$0xff] }
 0xaa2   :  { %v10726_v60 = vpop.eup %8931  ;;  %6504 = vadd.xlane.f32.xlu0 %v6503_v0  ;;  %v11162_v0 = vld [vmem:[#allocation28_spill] sm:$0xff] }
 0xaa3   :  { %8933 = vpow2.f32 %v6472_v42  ;;  %v6470_v25 = vmul.f32 1.442695, %v6444_v58  ;;  %v6500_v45 = vsel %vm990_vm2, %v10726_v60, 0.0 }
 0xaa4   :  { %6501 = vadd.xlane.f32.xlu1 %v6500_v45 }
 0xaa5   :  { %8935 = vpow2.f32 %v6470_v25  ;;  %v11163_v25 = vld [vmem:[#allocation15_spill] sm:$0xff] }
 0xaa6   :  { %v3831_v45 = vadd.f32 %v11163_v25, %v11162_v0 }
 0xaaa   :  { %v8564_v32 = vpop.f32.mrf.mxu0 }
 0xaab   :  { %v10734_v63 = vadd.f32 %v8564_v32, %v3816_v56  ;;  %v11164_v32 = vld [vmem:[#allocation29_spill] sm:$0xff] }
 0xaac   :  { %v5603_v28 = vpop.f32.mrf.mxu0  ;;  %v3846_v16 = vadd.f32 %v11165_v7, %v11164_v32 }
 0xaad   :  { %v10738_v19 = vadd.f32 %v5603_v28, %v3811_v27 }
 0xaae   :  { %v8567_v59 = vpop.f32.mrf.mxu0 }
 0xaaf   :  { %v10742_v23 = vadd.f32 %v8567_v59, %v3826_v14  ;;  %v3841_v14 = vadd.f32 %v11167_v55, %v11166_v4 }
 0xab0   :  { %v10744_v17 = vpop.eup %8933  ;;  %v5613_v57 = vpop.f32.mrf.mxu0 }
 0xab1   :  { %v10748_v8 = vadd.f32 %v5613_v57, %v3821_v12  ;;  %v6515_v6 = vsel %vm990_vm2, %v10744_v17, 0.0 }
 0xab2   :  { %v10752_v42 = vpop.eup %8935  ;;  %v8570_v58 = vpop.f32.mrf.mxu0  ;;  %6516 = vadd.xlane.f32.xlu0 %v6515_v6 }
 0xab3   :  { %v10756_v53 = vadd.f32 %v8570_v58, %v3836_v20  ;;  %v6512_v9 = vsel %vm990_vm2, %v10752_v42, 0.0  ;;  %v6433_v20 = vpop.xlane.xlu0 %6432  ;;  %v6430_v6 = vpop.xlane.xlu1 %6429 }
 0xab4   :  { %v5623_v56 = vpop.f32.mrf.mxu0  ;;  %6513 = vadd.xlane.f32.xlu1 %v6512_v9  ;;  %v6449_v58 = vsub.f32 %v10648_v47, %v6433_v20  ;;  %v6448_v0 = vsub.f32 %v10652_v13, %v6430_v6 }
 0xab5   :  { %v10762_v27 = vadd.f32 %v5623_v56, %v3831_v45 }
 0xab6   :  { %v8573_v28 = vpop.f32.mrf.mxu0  ;;  %v6480_v25 = vmul.f32 1.442695, %v6449_v58  ;;  %v6478_v45 = vmul.f32 1.442695, %v6448_v0 }
 0xab7   :  { %v10766_v59 = vadd.f32 %v8573_v28, %v3846_v16 }
 0xab8   :  { %v5633_v15 = vpop.f32.mrf.mxu0  ;;  %8937 = vpow2.f32 %v6480_v25 }
 0xab9   :  { %v10768_v21 = vadd.f32 %v5633_v15, %v3841_v14  ;;  %8939 = vpow2.f32 %v6478_v45 }
 0xaba   :  { %v10770_v12 = vpop.f32.mrf.mxu0 }
 0xabb   :  { %v6413_v57 = vsel %vm990_vm2, %v10770_v12, -inf }
 0xabc   :  { %v10774_v5 = vpop.f32.mrf.mxu0  ;;  %6414 = vmax.xlane.f32.xlu0 %v6413_v57 }
 0xabd   :  { %v6410_v18 = vsel %vm990_vm2, %v10774_v5, -inf }
 0xabe   :  { %6411 = vmax.xlane.f32.xlu1 %v6410_v18 }
 0xac2   :  { %v10784_v9 = vpop.f32.mrf.mxu0 }
 0xac4   :  { %v10786_v56 = vpop.f32.mrf.mxu0 }
 0xac5   :  { %v10790_v32 = vpop.eup %8937 }
 0xac6   :  { %v10794_v47 = vpop.eup %8939  ;;  %v6527_v13 = vsel %vm990_vm2, %v10790_v32, 0.0 }
 0xac7   :  { %v6524_v7 = vsel %vm990_vm2, %v10794_v47, 0.0 }
 0xacf   :  { %6564 = vrot.lane.b32.xlu1 %v9101_v22, %s8991_s22  ;;  %v6425_v22 = vsel %vm990_vm2, %v10784_v9, -inf }
 0xad2   :  { %6562 = vrot.lane.b32.xlu0 %v9103_v24, %s8991_s22  ;;  %v6422_v24 = vsel %vm990_vm2, %v10786_v56, -inf }
 0xaf1   :  { %6426 = vmax.xlane.f32.xlu0 %v6425_v22 }
 0xaf3   :  { %6423 = vmax.xlane.f32.xlu1 %v6422_v24 }
 0xaf5   :  { %6528 = vadd.xlane.f32.xlu0 %v6527_v13 }
 0xaf7   :  { %6525 = vadd.xlane.f32.xlu1 %v6524_v7 }
 0xb08   :  { %6651 = vrot.lane.b32.xlu1 %v9107_v26, %s8991_s22 }
 0xb0b   :  { %6649 = vrot.lane.b32.xlu0 %v9112_v29, %s8991_s22 }
 0xb0c   :  { %6738 = vrot.lane.b32.xlu1 %v9120_v31, %s8991_s22 }
 0xb0f   :  { %6825 = vrot.lane.b32.xlu0 %v9128_v35, %s8991_s22 }
 0xb10   :  { %6736 = vrot.lane.b32.xlu1 %v9122_v33, %s8991_s22 }
 0xb13   :  { %6912 = vrot.lane.b32.xlu0 %v11087_v39, %s8991_s22  ;;  %v6487_v35 = vpop.xlane.xlu0 %6486 }
 0xb14   :  { %6823 = vrot.lane.b32.xlu1 %v9130_v37, %s8991_s22 }
 0xb15   :  { %v6484_v16 = vpop.xlane.xlu1 %6483 }
 0xb16   :  { %8941 = vrcp.f32 %v6484_v16 }
 0xb17   :  { %6999 = vrot.lane.b32.xlu0 %v9144_v43, %s8991_s22 }
 0xb18   :  { %6910 = vrot.lane.b32.xlu1 %v9138_v41, %s8991_s22 }
 0xb1b   :  { %v6493_v39 = vpop.xlane.xlu0 %6492 }
 0xb1c   :  { %6997 = vrot.lane.b32.xlu1 %v9149_v46, %s8991_s22 }
 0xb1f   :  { %v6490_v26 = vpop.xlane.xlu1 %6489 }
 0xb20   :  { %7084 = vrot.lane.b32.xlu1 %v9159_v50, %s8991_s22 }
 0xb23   :  { %v8942_v29 = vpop.eup %8941  ;;  %v6499_v41 = vpop.xlane.xlu0 %6498 }
 0xb24   :  { %v6546_v31 = vmul.f32 %v8942_v29, %v10698_v44 }
 0xb25   :  { %v6496_v33 = vpop.xlane.xlu1 %6495 }
 0xb26   :  { %8943 = vrcp.f32 %v6496_v33  ;;  %8634 = vmatprep.mubr.msk.f32.mxu0 %vm990_vm2, %v6546_v31 }
 0xb27   :  { %8945 = vrcp.f32 %v6487_v35 }
 0xb28   :  { %8947 = vrcp.f32 %v6490_v26 }
 0xb2b   :  { %v6505_v46 = vpop.xlane.xlu0 %6504 }
 0xb2d   :  { %v6502_v50 = vpop.xlane.xlu1 %6501 }
 0xb33   :  { %v8944_v37 = vpop.eup %8943 }
 0xb34   :  { %v6550_v43 = vmul.f32 %v8944_v37, %v10716_v38  ;;  %v8946_v38 = vpop.eup %8945 }
 0xb35   :  { %v8948_v6 = vpop.eup %8947  ;;  %v6547_v0 = vmul.f32 %v8946_v38, %v10693_v61 }
 0xb36   :  { %8648 = vmatprep.mubr.msk.f32.mxu1 %vm990_vm2, %v6550_v43  ;;  %v6548_v25 = vmul.f32 %v8948_v6, %v10708_v11 }
 0xb3b   :  { %v6517_v28 = vpop.xlane.xlu0 %6516 }
 0xb3d   :  { %v6514_v4 = vpop.xlane.xlu1 %6513 }
 0xb45   :  { %v6415_v55 = vpop.xlane.xlu0 %6414 }
 0xb46   :  { %v6443_v44 = vsub.f32 %v10770_v12, %v6415_v55 }
 0xb47   :  { %v6412_v14 = vpop.xlane.xlu1 %6411 }
 0xb48   :  { %v6468_v15 = vmul.f32 1.442695, %v6443_v44  ;;  %v6442_v57 = vsub.f32 %v10774_v5, %v6412_v14 }
 0xb49   :  { %v6563_v58 = vpop.permute.xlu0 %6562 }
 0xb4a   :  { %8949 = vpow2.f32 %v6468_v15  ;;  %v6466_v18 = vmul.f32 1.442695, %v6442_v57 }
 0xb4b   :  { %v6565_v20 = vpop.permute.xlu1 %6564 }
 0xb4c   :  { %8951 = vpow2.f32 %v6466_v18  ;;  %8630 = vmatprep.subr.mxu0 %v6565_v20 }
 0xb4d   :  { %8631 = vmatpush3.msra.mxu0 %v6565_v20  ;;  %8953 = vrcp.f32 %v6493_v39 }
 0xb4e   :  { %8632 = vmatprep.subr.mxu0 %v6563_v58  ;;  %8955 = vrcp.f32 %v6502_v50 }
 0xb4f   :  { %8633 = vmatpush3.msra.mxu0 %v6563_v58  ;;  %8957 = vrcp.f32 %v6499_v41 }
 0xb50   :  { %8635 = vmatmul.mubr.msk.f32.vlgmr.msra.gmra.mxu0 %vm990_vm2, %v6547_v0 }
 0xb51   :  { %8641 = vmatprep.mubr.msk.f32.mxu0 %vm990_vm2, %v6548_v25 }
 0xb57   :  { %v10832_v12 = vpop.eup %8949 }
 0xb58   :  { %v6509_v5 = vsel %vm990_vm2, %v10832_v12, 0.0 }
 0xb59   :  { %v10836_v45 = vpop.eup %8951  ;;  %6510 = vadd.xlane.f32.xlu0 %v6509_v5 }
 0xb5a   :  { %v6506_v22 = vsel %vm990_vm2, %v10836_v45, 0.0 }
 0xb5b   :  { %6507 = vadd.xlane.f32.xlu1 %v6506_v22 }
 0xb6f   :  { %7086 = vrot.lane.b32.xlu0 %v9157_v48, %s8991_s22  ;;  %v8954_v48 = vpop.eup %8953 }
 0xb70   :  { %v8956_v35 = vpop.eup %8955 }
 0xb71   :  { %v6552_v43 = vmul.f32 %v8956_v35, %v10726_v60  ;;  %v8958_v39 = vpop.eup %8957 }
 0xb7a   :  { %v6427_v61 = vpop.xlane.xlu0 %6426 }
 0xb7b   :  { %v6447_v11 = vsub.f32 %v10784_v9, %v6427_v61  ;;  %v6549_v9 = vmul.f32 %v8954_v48, %v10703_v62 }
 0xb7c   :  { %v6424_v24 = vpop.xlane.xlu1 %6423 }
 0xb7d   :  { %v6476_v13 = vmul.f32 1.442695, %v6447_v11  ;;  %v6446_v7 = vsub.f32 %v10786_v56, %v6424_v24 }
 0xb7e   :  { %v10844_v16 = vpop.xlane.xlu0 %6528 }
 0xb7f   :  { %8959 = vpow2.f32 %v6476_v13  ;;  %v6474_v26 = vmul.f32 1.442695, %v6446_v7 }
 0xb80   :  { %8961 = vrcp.f32 %v6505_v46  ;;  %v6526_v29 = vpop.xlane.xlu1 %6525 }
 0xb81   :  { %8963 = vpow2.f32 %v6474_v26 }
 0xb82   :  { %8965 = vrcp.f32 %v6514_v4  ;;  %v6650_v31 = vpop.permute.xlu0 %6649  ;;  %v6551_v4 = vmul.f32 %v8958_v39, %v10712_v30 }
 0xb83   :  { %8967 = vrcp.f32 %v6517_v28 }
 0xb84   :  { %v6652_v33 = vpop.permute.xlu1 %6651  ;;  %8969 = vrcp.f32 %v6526_v29 }
 0xb85   :  { %8637 = vmatprep.subr.mxu0 %v6652_v33 }
 0xb86   :  { %v6826_v37 = vpop.permute.xlu0 %6825  ;;  %8638 = vmatpush3.msra.mxu0 %v6652_v33 }
 0xb87   :  { %8639 = vmatprep.subr.mxu0 %v6650_v31 }
 0xb88   :  { %8640 = vmatpush3.msra.mxu0 %v6650_v31  ;;  %v6739_v56 = vpop.permute.xlu1 %6738 }
 0xb89   :  { %8642 = vmatmul.mubr.msk.f32.vlgmr.msra.gmra.mxu0 %vm990_vm2, %v6549_v9  ;;  %8644 = vmatprep.subr.mxu1 %v6739_v56 }
 0xb8a   :  { %8651 = vmatprep.subr.mxu0 %v6826_v37  ;;  %8645 = vmatpush3.msra.mxu1 %v6739_v56  ;;  %v6913_v46 = vpop.permute.xlu0 %6912 }
 0xb8b   :  { %8652 = vmatpush3.msra.mxu0 %v6826_v37  ;;  %8655 = vmatprep.mubr.msk.f32.mxu0 %vm990_vm2, %v6552_v43 }
 0xb8c   :  { %v10850_v41 = vpop.eup %8959  ;;  %v6737_v50 = vpop.permute.xlu1 %6736 }
 0xb8d   :  { %v8962_v62 = vpop.eup %8961  ;;  %8646 = vmatprep.subr.mxu1 %v6737_v50  ;;  %v6521_v28 = vsel %vm990_vm2, %v10850_v41, 0.0 }
 0xb8e   :  { %v10855_v55 = vpop.eup %8963  ;;  %6522 = vadd.xlane.f32.xlu0 %v6521_v28  ;;  %8647 = vmatpush3.msra.mxu1 %v6737_v50  ;;  %v6553_v15 = vmul.f32 %v8962_v62, %v10721_v2  ;;  %v7000_v57 = vpop.permute.xlu0 %6999 }
 0xb8f   :  { %v8966_v60 = vpop.eup %8965  ;;  %8649 = vmatmul.mubr.msk.f32.vlgmr.msra.gmra.mxu1 %vm990_vm2, %v6551_v4  ;;  %8658 = vmatprep.subr.mxu1 %v6913_v46  ;;  %v6518_v44 = vsel %vm990_vm2, %v10855_v55, 0.0 }
 0xb90   :  { %6519 = vadd.xlane.f32.xlu1 %v6518_v44  ;;  %8659 = vmatpush3.msra.mxu1 %v6913_v46  ;;  %v6824_v14 = vpop.permute.xlu1 %6823  ;;  %v6556_v30 = vmul.f32 %v8966_v60, %v10752_v42  ;;  %v8968_v38 = vpop.eup %8967  ;;  %v10902_v60 = vld [vmem:[%s11007_s4] ss:$0 sm:$0xff] }
 0xb91   :  { %8653 = vmatprep.subr.mxu0 %v6824_v14  ;;  %v8970_v20 = vpop.eup %8969  ;;  %v6557_v58 = vmul.f32 %v8968_v38, %v10744_v17 }
 0xb92   :  { %8654 = vmatpush3.msra.mxu0 %v6824_v14  ;;  %v6560_v2 = vmul.f32 %v8970_v20, %v10794_v47 }
 0xb93   :  { %8656 = vmatmul.mubr.msk.f32.vlgmr.msra.gmra.mxu0 %vm990_vm2, %v6553_v15  ;;  %8665 = vmatprep.subr.mxu0 %v7000_v57 }
 0xb94   :  { %8666 = vmatpush3.msra.mxu0 %v7000_v57  ;;  %8669 = vmatprep.mubr.msk.f32.mxu0 %vm990_vm2, %v6556_v30  ;;  %v6911_v18 = vpop.permute.xlu1 %6910 }
 0xb95   :  { %8660 = vmatprep.subr.mxu1 %v6911_v18 }
 0xb96   :  { %8661 = vmatpush3.msra.mxu1 %v6911_v18 }
 0xb98   :  { %v6998_v6 = vpop.permute.xlu1 %6997 }
 0xb99   :  { %8667 = vmatprep.subr.mxu0 %v6998_v6 }
 0xb9a   :  { %8668 = vmatpush3.msra.mxu0 %v6998_v6 }
 0xb9b   :  { %8670 = vmatmul.mubr.msk.f32.vlgmr.msra.gmra.mxu0 %vm990_vm2, %v6557_v58 }
 0xb9c   :  { %8683 = vmatprep.mubr.msk.f32.mxu0 %vm990_vm2, %v6560_v2  ;;  %v7085_v42 = vpop.permute.xlu1 %7084 }
 0xba1   :  { %7171 = vrot.lane.b32.xlu1 %v9171_v54, %s8991_s22 }
 0xba4   :  { %7173 = vrot.lane.b32.xlu0 %v9165_v52, %s8991_s22  ;;  %v260_v52 = vld [vmem:[%s11006_s3 + $0x18] sm:$0xff] }
 0xbe2   :  { %v6511_v0 = vpop.xlane.xlu0 %6510 }
 0xbe3   :  { %8971 = vrcp.f32 %v6511_v0 }
 0xbe4   :  { %v6508_v25 = vpop.xlane.xlu1 %6507 }
 0xbe5   :  { %8973 = vrcp.f32 %v6508_v25 }
 0xbe6   :  { %v7087_v5 = vpop.permute.xlu0 %7086  ;;  %8975 = vrcp.f32 %v10844_v16 }
 0xbe7   :  { %8672 = vmatprep.subr.mxu1 %v7087_v5 }
 0xbf0   :  { %v8972_v17 = vpop.eup %8971 }
 0xbf1   :  { %v6555_v61 = vmul.f32 %v8972_v17, %v10832_v12 }
 0xbf2   :  { %v8974_v22 = vpop.eup %8973 }
 0xbf3   :  { %v6554_v47 = vmul.f32 %v8974_v22, %v10836_v45  ;;  %v8976_v45 = vpop.eup %8975 }
 0xbf4   :  { %v6561_v13 = vmul.f32 %v8976_v45, %v10790_v32 }
 0xbf5   :  { %8662 = vmatprep.mubr.msk.f32.mxu1 %vm990_vm2, %v6554_v47 }
 0xbf6   :  { %8663 = vmatmul.mubr.msk.f32.vlgmr.msra.gmra.mxu1 %vm990_vm2, %v6555_v61 }
 0xbf7   :  { %8673 = vmatpush3.msra.mxu1 %v7087_v5 }
 0xbf8   :  { %8674 = vmatprep.subr.mxu1 %v7085_v42 }
 0xbf9   :  { %8675 = vmatpush3.msra.mxu1 %v7085_v42 }
 0xbfa   :  { %8686 = vmatprep.subr.mxu1 %v260_v52 }
 0xc10   :  { %v8636_v29 = vpop.f32.mrf.mxu0 }
 0xc12   :  { %v6640_v48 = vpop.f32.mrf.mxu0 }
 0xc17   :  { %v6523_v54 = vpop.xlane.xlu0 %6522 }
 0xc18   :  { %8977 = vrcp.f32 %v6523_v54 }
 0xc19   :  { %v6520_v11 = vpop.xlane.xlu1 %6519 }
 0xc1a   :  { %8979 = vrcp.f32 %v6520_v11 }
 0xc1b   :  { %v7174_v12 = vpop.permute.xlu0 %7173 }
 0xc1c   :  { %8679 = vmatprep.subr.mxu0 %v7174_v12 }
 0xc1d   :  { %8680 = vmatpush3.msra.mxu0 %v7174_v12  ;;  %v7172_v24 = vpop.permute.xlu1 %7171 }
 0xc1e   :  { %8681 = vmatprep.subr.mxu0 %v7172_v24 }
 0xc1f   :  { %8682 = vmatpush3.msra.mxu0 %v7172_v24 }
 0xc20   :  { %8684 = vmatmul.mubr.msk.f32.vlgmr.msra.gmra.mxu0 %vm990_vm2, %v6561_v13 }
 0xc25   :  { %v8978_v7 = vpop.eup %8977 }
 0xc26   :  { %v6559_v31 = vmul.f32 %v8978_v7, %v10850_v41 }
 0xc27   :  { %v8980_v26 = vpop.eup %8979 }
 0xc28   :  { %v6558_v16 = vmul.f32 %v8980_v26, %v10855_v55 }
 0xc2a   :  { %8676 = vmatprep.mubr.msk.f32.mxu1 %vm990_vm2, %v6558_v16 }
 0xc2b   :  { %8677 = vmatmul.mubr.msk.f32.vlgmr.msra.gmra.mxu1 %vm990_vm2, %v6559_v31 }
 0xc2c   :  { %8688 = vmatprep.mubr.msk.f32.mxu1 %vm267_vm1, %v6640_v48  ;;  %8687 = vmatpush3.msra.mxu1 %v260_v52 }
 0xc2f   :  { %8689 = vmatmul.mubr.msk.f32.vlgmr.msra.gmra.mxu1 %vm267_vm1, %v8636_v29 }
 0xc49   :  { %v8643_v32 = vpop.f32.mrf.mxu0 }
 0xc4b   :  { %v6727_v33 = vpop.f32.mrf.mxu0 }
 0xc4c   :  { %8691 = vmatprep.mubr.msk.f32.mxu1 %vm267_vm1, %v6727_v33 }
 0xc4d   :  { %8692 = vmatmul.mubr.msk.f32.gmra.mxu1 %vm267_vm1, %v8643_v32 }
 0xc4f   :  { %v8650_v35 = vpop.f32.mrf.mxu1 }
 0xc51   :  { %v6814_v37 = vpop.f32.mrf.mxu1 }
 0xc52   :  { %8694 = vmatprep.mubr.msk.f32.mxu1 %vm267_vm1, %v6814_v37 }
 0xc53   :  { %v8657_v9 = vpop.f32.mrf.mxu0  ;;  %8695 = vmatmul.mubr.msk.f32.gmra.mxu1 %vm267_vm1, %v8650_v35 }
 0xc55   :  { %v6901_v56 = vpop.f32.mrf.mxu0 }
 0xc56   :  { %8697 = vmatprep.mubr.msk.f32.mxu1 %vm267_vm1, %v6901_v56 }
 0xc57   :  { %8698 = vmatmul.mubr.msk.f32.gmra.mxu1 %vm267_vm1, %v8657_v9 }
 0xc5b   :  { %v8671_v43 = vpop.f32.mrf.mxu0 }
 0xc5d   :  { %v7075_v46 = vpop.f32.mrf.mxu0 }
 0xcb6   :  { %v8664_v39 = vpop.f32.mrf.mxu1 }
 0xcb8   :  { %v6988_v41 = vpop.f32.mrf.mxu1 }
 0xcb9   :  { %8700 = vmatprep.mubr.msk.f32.mxu1 %vm267_vm1, %v6988_v41 }
 0xcba   :  { %8701 = vmatmul.mubr.msk.f32.gmra.mxu1 %vm267_vm1, %v8664_v39 }
 0xcbb   :  { %8703 = vmatprep.mubr.msk.f32.mxu1 %vm267_vm1, %v7075_v46 }
 0xcbe   :  { %8704 = vmatmul.mubr.msk.f32.gmra.mxu1 %vm267_vm1, %v8671_v43 }
 0xce0   :  { %v8685_v50 = vpop.f32.mrf.mxu0 }
 0xce2   :  { %v7249_v4 = vpop.f32.mrf.mxu0 }
 0xceb   :  { %v8678_v62 = vpop.f32.mrf.mxu1 }
 0xced   :  { %v7162_v28 = vpop.f32.mrf.mxu1 }
 0xcee   :  { %8706 = vmatprep.mubr.msk.f32.mxu1 %vm267_vm1, %v7162_v28 }
 0xcef   :  { %v8690_v55 = vpop.f32.mrf.mxu1  ;;  %8707 = vmatmul.mubr.msk.f32.gmra.mxu1 %vm267_vm1, %v8678_v62 }
 0xcf0   :  { %v7452_v44 = vadd.f32 %v8690_v55, %v10660_v36  ;;  %8709 = vmatprep.mubr.msk.f32.mxu1 %vm267_vm1, %v7249_v4 }
 0xcf1   :  { %v7372_v14 = vpop.f32.mrf.mxu1 }
 0xcf2   :  { %v7475_v15 = vadd.f32 %v10902_v60, %v7452_v44  ;;  %v7451_v57 = vadd.f32 %v7372_v14, %v10664_v3 }
 0xcf3   :  { %8710 = vmatmul.mubr.msk.f32.gmra.mxu1 %vm267_vm1, %v8685_v50 }
 0xcf4   :  { %7491 = vst.msk [vmem:[%s11008_s5 + $0x8] sm:$0xff] %vm47_vm0, %v7475_v15  ;;  %v7474_v30 = vadd.f32 %v10902_v60, %v7451_v57 }
 0xcf6   :  { %7490 = vst.msk [vmem:[%s11008_s5] sm:$0xff] %vm47_vm0, %v7474_v30 }
 0xd0d   :  { %v8693_v36 = vpop.f32.mrf.mxu1 }
 0xd0e   :  { %v7454_v18 = vadd.f32 %v8693_v36, %v10668_v10 }
 0xd0f   :  { %v7382_v38 = vpop.f32.mrf.mxu1 }
 0xd10   :  { %v7477_v3 = vadd.f32 %v10902_v60, %v7454_v18  ;;  %v7453_v20 = vadd.f32 %v7382_v38, %v10672_v34 }
 0xd12   :  { %7493 = vst.msk [vmem:[%s11008_s5 + $0x18] sm:$0xff] %vm47_vm0, %v7477_v3  ;;  %v7476_v6 = vadd.f32 %v10902_v60, %v7453_v20 }
 0xd13   :  { %v8696_v58 = vpop.f32.mrf.mxu1 }
 0xd14   :  { %7492 = vst.msk [vmem:[%s11008_s5 + $0x10] sm:$0xff] %vm47_vm0, %v7476_v6  ;;  %v7456_v10 = vadd.f32 %v8696_v58, %v10676_v40 }
 0xd15   :  { %v7392_v2 = vpop.f32.mrf.mxu1 }
 0xd16   :  { %v7479_v42 = vadd.f32 %v10902_v60, %v7456_v10  ;;  %v7455_v34 = vadd.f32 %v7392_v2, %v10681_v1 }
 0xd17   :  { %v8699_v0 = vpop.f32.mrf.mxu1 }
 0xd18   :  { %7495 = vst.msk [vmem:[%s11008_s5 + $0x28] sm:$0xff] %vm47_vm0, %v7479_v42  ;;  %v7478_v25 = vadd.f32 %v10902_v60, %v7455_v34  ;;  %v7458_v5 = vadd.f32 %v8699_v0, %v10686_v51 }
 0xd19   :  { %v7402_v17 = vpop.f32.mrf.mxu1 }
 0xd1a   :  { %7494 = vst.msk [vmem:[%s11008_s5 + $0x20] sm:$0xff] %vm47_vm0, %v7478_v25  ;;  %v7481_v40 = vadd.f32 %v10902_v60, %v7458_v5  ;;  %v7457_v1 = vadd.f32 %v7402_v17, %v10688_v49 }
 0xd1c   :  { %7497 = vst.msk [vmem:[%s11008_s5 + $0x38] sm:$0xff] %vm47_vm0, %v7481_v40  ;;  %v7480_v22 = vadd.f32 %v10902_v60, %v7457_v1 }
 0xd1e   :  { %7496 = vst.msk [vmem:[%s11008_s5 + $0x30] sm:$0xff] %vm47_vm0, %v7480_v22 }
 0xd7a   :  { %v8702_v51 = vpop.f32.mrf.mxu1 }
 0xd7b   :  { %v7460_v47 = vadd.f32 %v8702_v51, %v10734_v63 }
 0xd7c   :  { %v7412_v61 = vpop.f32.mrf.mxu1 }
 0xd7d   :  { %v7483_v52 = vadd.f32 %v10902_v60, %v7460_v47  ;;  %v7459_v49 = vadd.f32 %v7412_v61, %v10738_v19 }
 0xd7e   :  { %v8705_v54 = vpop.f32.mrf.mxu1 }
 0xd7f   :  { %7499 = vst.msk [vmem:[%s11008_s5 + $0x48] sm:$0xff] %vm47_vm0, %v7483_v52  ;;  %v7482_v11 = vadd.f32 %v10902_v60, %v7459_v49  ;;  %v7462_v45 = vadd.f32 %v8705_v54, %v10742_v23 }
 0xd80   :  { %v7422_v12 = vpop.f32.mrf.mxu1 }
 0xd81   :  { %7498 = vst.msk [vmem:[%s11008_s5 + $0x40] sm:$0xff] %vm47_vm0, %v7482_v11  ;;  %v7485_v63 = vadd.f32 %v10902_v60, %v7462_v45  ;;  %v7461_v19 = vadd.f32 %v7422_v12, %v10748_v8 }
 0xd83   :  { %7501 = vst.msk [vmem:[%s11008_s5 + $0x58] sm:$0xff] %vm47_vm0, %v7485_v63  ;;  %v7484_v24 = vadd.f32 %v10902_v60, %v7461_v19 }
 0xd85   :  { %7500 = vst.msk [vmem:[%s11008_s5 + $0x50] sm:$0xff] %vm47_vm0, %v7484_v24 }
 0xdaf   :  { %v8708_v23 = vpop.f32.mrf.mxu1 }
 0xdb0   :  { %v7464_v13 = vadd.f32 %v8708_v23, %v10756_v53 }
 0xdb1   :  { %v7432_v7 = vpop.f32.mrf.mxu1 }
 0xdb2   :  { %v7487_v26 = vadd.f32 %v10902_v60, %v7464_v13  ;;  %v7463_v8 = vadd.f32 %v7432_v7, %v10762_v27 }
 0xdb3   :  { %v8711_v29 = vpop.f32.mrf.mxu1 }
 0xdb4   :  { %7503 = vst.msk [vmem:[%s11008_s5 + $0x68] sm:$0xff] %vm47_vm0, %v7487_v26  ;;  %v7486_v16 = vadd.f32 %v10902_v60, %v7463_v8  ;;  %v7466_v31 = vadd.f32 %v8711_v29, %v10766_v59 }
 0xdb5   :  { %v7442_v48 = vpop.f32.mrf.mxu1 }
 0xdb6   :  { %7502 = vst.msk [vmem:[%s11008_s5 + $0x60] sm:$0xff] %vm47_vm0, %v7486_v16  ;;  %v7489_v53 = vadd.f32 %v10902_v60, %v7466_v31  ;;  %v7465_v27 = vadd.f32 %v7442_v48, %v10768_v21 }
 0xdb8   :  { %7505 = vst.msk [vmem:[%s11008_s5 + $0x78] sm:$0xff] %vm47_vm0, %v7489_v53  ;;  %v7488_v32 = vadd.f32 %v10902_v60, %v7465_v27 }
 0xdba   :  { %7504 = vst.msk [vmem:[%s11008_s5 + $0x70] sm:$0xff] %vm47_vm0, %v7488_v32 }

</bundles_post_ra>
